<compile_context>
chip_gen: v7x
topology: tpu7x:2x2x1
jax: 0.10.0
libtpu: 0.0.40
codegen_flags: <defaults>
</compile_context>

<pallas_src>
import math

import jax
import jax.numpy as jnp
import numpy as np
from jax.experimental import pallas as pl
from jax.experimental.pallas import tpu as pltpu


def _round_up(x, m):
    return ((x + m - 1) // m) * m


def fat_conv2d(x_nchw, w_oihw, b):
    """FatConv2d forward. x: (N, Cin, H, W); w: (Cout, Cin, k, k); b: (Cout,)."""
    N, Cin, H, W = x_nchw.shape
    Cout, _, k, _ = w_oihw.shape
    assert H == W, "FatConv2d accepts only square inputs"

    p_fat = abs(H - k) // 2            # process_inputs() padding
    p_lo = (k - 1) // 2                # 'same' top/left pad (matches torch, odd k)
    Hout = H + 2 * p_fat
    Wout = W + 2 * p_fat
    Hp = Hout + (k - 1)                # rows of the fat+same padded image
    Wp_min = Wout + (k - 1)            # min cols of the fat+same padded image

    # Pick padded width Wp >= Wp_min so Hout*Wp is a multiple of 128 (the flat
    # accumulator then fills whole vregs). Falls back to Wp_min if not found.
    Wp = Wp_min
    for cand in range(Wp_min, Wp_min + 129):
        if (Hout * cand) % 128 == 0:
            Wp = cand
            break
    L = Hout * Wp                      # flat output length per image (incl. garbage cols)
    KK = k * k * Cin                   # contraction length of the single dot
    Lin = _round_up(Hp * Wp + (k - 1), 128)   # padded-slab length (covers tap over-read)
    pad0 = p_fat + p_lo                # top/left offset of the image inside the slab

    # Batch blocking: Nb images per grid step, but keep >= 2 parallel steps
    # when N >= 2 so both v7x TensorCores are fed (v5e/v6e: serial loop, fine).
    Nb = 1
    for cand in (4, 3, 2):
        if N % cand == 0 and (N // cand) >= 2:
            Nb = cand
            break
    num_blocks = N // Nb

    # matmul-ready weights: w_packed[co, (kh*k+kw)*Cin + ci] = w[co, ci, kh, kw]
    w_packed = jnp.transpose(w_oihw, (0, 2, 3, 1)).reshape(Cout, KK).astype(jnp.float32)
    b2 = b.reshape(Cout, 1).astype(jnp.float32)

    def kernel(x_ref, w_ref, b_ref, o_ref, slab_ref, col_ref):
        # x_ref:    (Nb, Cin, H, W)        raw image block
        # w_ref:    (Cout, KK)             packed weights
        # b_ref:    (Cout, 1)              bias
        # o_ref:    (Nb, Cout, Hout, Wout) final output block
        # slab_ref: (Cin, Lin)             fat+same zero-padded image, flat (Hp, Wp)
        # col_ref:  (KK, L)                im2col slab
        for n in range(Nb):
            # Build the zero-padded image slab (padding regions stay zero).
            slab_ref[...] = jnp.zeros_like(slab_ref)
            for h in range(H):
                s = (pad0 + h) * Wp + pad0
                slab_ref[:, s:s + W] = x_ref[n, :, h, :].astype(jnp.float32)

            # im2col: tap (kh, kw) is the contiguous shifted slice of the flat slab.
            for t in range(k * k):
                kh, kw = t // k, t % k
                off = kh * Wp + kw
                col_ref[t * Cin:(t + 1) * Cin, :] = slab_ref[:, off:off + L]

            # One MXU contraction: (Cout, KK) @ (KK, L) with f32 accumulation.
            acc = jnp.dot(w_ref[...], col_ref[...],
                          preferred_element_type=jnp.float32)
            res = (acc + b_ref[...]).astype(o_ref.dtype)   # (Cout, L)

            # Drop the Wp-Wout garbage columns while storing the final output
            # (fused here instead of a separate HBM slice op in the wrapper).
            for ho in range(Hout):
                o_ref[n, :, ho, :] = res[:, ho * Wp: ho * Wp + Wout]

    out = pl.pallas_call(
        kernel,
        out_shape=jax.ShapeDtypeStruct((N, Cout, Hout, Wout), x_nchw.dtype),
        grid=(num_blocks,),
        in_specs=[
            pl.BlockSpec((Nb, Cin, H, W), lambda i: (i, 0, 0, 0)),
            pl.BlockSpec((Cout, KK), lambda i: (0, 0)),
            pl.BlockSpec((Cout, 1), lambda i: (0, 0)),
        ],
        out_specs=pl.BlockSpec((Nb, Cout, Hout, Wout), lambda i: (i, 0, 0, 0)),
        scratch_shapes=[
            pltpu.VMEM((Cin, Lin), jnp.float32),
            pltpu.VMEM((KK, L), jnp.float32),
        ],
        compiler_params=pltpu.CompilerParams(
            dimension_semantics=("parallel",)),
    )(x_nchw, w_packed, b2)

    return out


def _reference(x_nchw, w_oihw, b):
    """Pure-JAX reference mirroring the PyTorch forward pass."""
    N, Cin, H, W = x_nchw.shape
    k = w_oihw.shape[2]
    p_fat = abs(H - k) // 2
    x_fat = jnp.pad(x_nchw, ((0, 0), (0, 0), (p_fat, p_fat), (p_fat, p_fat)))
    y = jax.lax.conv_general_dilated(
        x_fat, w_oihw, window_strides=(1, 1), padding="SAME",
        dimension_numbers=("NCHW", "OIHW", "NCHW"),
        precision=jax.lax.Precision.HIGHEST)
    return y + b[None, :, None, None]


if __name__ == "__main__":
    # Module config: input_channels=4, output_channels=8, kernel_size=3,
    # 16x16 square input, batch=2  ->  output (2, 8, 28, 28).
    N, Cin, Cout, k = 2, 4, 8, 3
    H = W = 16

    key = jax.random.PRNGKey(0)
    kx, kw_, kb = jax.random.split(key, 3)
    x = jax.random.normal(kx, (N, Cin, H, W), jnp.float32)

    # Deterministic Conv2d-style init (uniform with bound = 1/sqrt(fan_in)).
    fan_in = Cin * k * k
    bound = 1.0 / math.sqrt(fan_in)
    w = jax.random.uniform(kw_, (Cout, Cin, k, k), jnp.float32, -bound, bound)
    b = jax.random.uniform(kb, (Cout,), jnp.float32, -bound, bound)

    out = jax.block_until_ready(jax.jit(fat_conv2d)(x, w, b))

    p_fat = abs(H - k) // 2
    assert out.shape == (N, Cout, H + 2 * p_fat, W + 2 * p_fat), out.shape

    ref = _reference(x, w, b)
    np.testing.assert_allclose(np.asarray(out), np.asarray(ref),
                               rtol=1e-4, atol=1e-4)

    print("KERNEL_OK")
</pallas_src>

<mosaic_0001>
module attributes {stable_mosaic.version = 11 : i64} {
  func.func @kernel(%arg0: i32, %arg1: memref<1x4x16x16xf32, #tpu.memory_space<vmem>>, %arg2: memref<8x36xf32, #tpu.memory_space<vmem>>, %arg3: memref<8x1xf32, #tpu.memory_space<vmem>>, %arg4: memref<1x8x28x28xf32, #tpu.memory_space<vmem>>, %arg5: memref<4x1024xf32, #tpu.memory_space<vmem>>, %arg6: memref<36x896xf32, #tpu.memory_space<vmem>>) attributes {dimension_semantics = [#tpu.dimension_semantics<parallel>], iteration_bounds = array<i64: 2>, scalar_prefetch = 0 : i64, scratch_operands = 2 : i64, tpu.core_type = #tpu.core_type<tc>, window_params = [{transform_indices = @transform_0, window_bounds = array<i64: 1, 4, 16, 16>}, {pipeline_mode = #tpu.pipeline_mode<synchronous>, transform_indices = @transform_1, window_bounds = array<i64: 8, 36>}, {pipeline_mode = #tpu.pipeline_mode<synchronous>, transform_indices = @transform_2, window_bounds = array<i64: 8, 1>}, {transform_indices = @transform_3, window_bounds = array<i64: 1, 8, 28, 28>}]} {
    %cst = arith.constant 0.000000e+00 : f32
    %0 = vector.broadcast %cst : f32 to vector<4x1024xf32>
    %c0 = arith.constant 0 : index
    %c0_0 = arith.constant 0 : index
    %1 = vector.load %arg5[%c0, %c0_0] : memref<4x1024xf32, #tpu.memory_space<vmem>>, vector<4x1024xf32>
    tpu.vector_store %arg5[%c0, %c0_0], %0 {strides = array<i32>} : memref<4x1024xf32, #tpu.memory_space<vmem>>, vector<4x1024xf32>,
    %c0_1 = arith.constant 0 : index
    %c0_2 = arith.constant 0 : index
    %c0_3 = arith.constant 0 : index
    %c0_4 = arith.constant 0 : index
    %2 = vector.load %arg1[%c0_1, %c0_2, %c0_3, %c0_4] : memref<1x4x16x16xf32, #tpu.memory_space<vmem>>, vector<1x4x1x16xf32>
    %3 = vector.shape_cast %2 : vector<1x4x1x16xf32> to vector<4x16xf32>
    %c0_5 = arith.constant 0 : index
    %c231 = arith.constant 231 : index
    %4 = vector.load %arg5[%c0_5, %c231] : memref<4x1024xf32, #tpu.memory_space<vmem>>, vector<4x16xf32>
    tpu.vector_store %arg5[%c0_5, %c231], %3 {strides = array<i32>} : memref<4x1024xf32, #tpu.memory_space<vmem>>, vector<4x16xf32>,
    %c0_6 = arith.constant 0 : index
    %c0_7 = arith.constant 0 : index
    %c1 = arith.constant 1 : index
    %c0_8 = arith.constant 0 : index
    %5 = vector.load %arg1[%c0_6, %c0_7, %c1, %c0_8] : memref<1x4x16x16xf32, #tpu.memory_space<vmem>>, vector<1x4x1x16xf32>
    %6 = vector.shape_cast %5 : vector<1x4x1x16xf32> to vector<4x16xf32>
    %c0_9 = arith.constant 0 : index
    %c263 = arith.constant 263 : index
    %7 = vector.load %arg5[%c0_9, %c263] : memref<4x1024xf32, #tpu.memory_space<vmem>>, vector<4x16xf32>
    tpu.vector_store %arg5[%c0_9, %c263], %6 {strides = array<i32>} : memref<4x1024xf32, #tpu.memory_space<vmem>>, vector<4x16xf32>,
    %c0_10 = arith.constant 0 : index
    %c0_11 = arith.constant 0 : index
    %c2 = arith.constant 2 : index
    %c0_12 = arith.constant 0 : index
    %8 = vector.load %arg1[%c0_10, %c0_11, %c2, %c0_12] : memref<1x4x16x16xf32, #tpu.memory_space<vmem>>, vector<1x4x1x16xf32>
    %9 = vector.shape_cast %8 : vector<1x4x1x16xf32> to vector<4x16xf32>
    %c0_13 = arith.constant 0 : index
    %c295 = arith.constant 295 : index
    %10 = vector.load %arg5[%c0_13, %c295] : memref<4x1024xf32, #tpu.memory_space<vmem>>, vector<4x16xf32>
    tpu.vector_store %arg5[%c0_13, %c295], %9 {strides = array<i32>} : memref<4x1024xf32, #tpu.memory_space<vmem>>, vector<4x16xf32>,
    %c0_14 = arith.constant 0 : index
    %c0_15 = arith.constant 0 : index
    %c3 = arith.constant 3 : index
    %c0_16 = arith.constant 0 : index
    %11 = vector.load %arg1[%c0_14, %c0_15, %c3, %c0_16] : memref<1x4x16x16xf32, #tpu.memory_space<vmem>>, vector<1x4x1x16xf32>
    %12 = vector.shape_cast %11 : vector<1x4x1x16xf32> to vector<4x16xf32>
    %c0_17 = arith.constant 0 : index
    %c327 = arith.constant 327 : index
    %13 = vector.load %arg5[%c0_17, %c327] : memref<4x1024xf32, #tpu.memory_space<vmem>>, vector<4x16xf32>
    tpu.vector_store %arg5[%c0_17, %c327], %12 {strides = array<i32>} : memref<4x1024xf32, #tpu.memory_space<vmem>>, vector<4x16xf32>,
    %c0_18 = arith.constant 0 : index
    %c0_19 = arith.constant 0 : index
    %c4 = arith.constant 4 : index
    %c0_20 = arith.constant 0 : index
    %14 = vector.load %arg1[%c0_18, %c0_19, %c4, %c0_20] : memref<1x4x16x16xf32, #tpu.memory_space<vmem>>, vector<1x4x1x16xf32>
    %15 = vector.shape_cast %14 : vector<1x4x1x16xf32> to vector<4x16xf32>
    %c0_21 = arith.constant 0 : index
    %c359 = arith.constant 359 : index
    %16 = vector.load %arg5[%c0_21, %c359] : memref<4x1024xf32, #tpu.memory_space<vmem>>, vector<4x16xf32>
    tpu.vector_store %arg5[%c0_21, %c359], %15 {strides = array<i32>} : memref<4x1024xf32, #tpu.memory_space<vmem>>, vector<4x16xf32>,
    %c0_22 = arith.constant 0 : index
    %c0_23 = arith.constant 0 : index
    %c5 = arith.constant 5 : index
    %c0_24 = arith.constant 0 : index
    %17 = vector.load %arg1[%c0_22, %c0_23, %c5, %c0_24] : memref<1x4x16x16xf32, #tpu.memory_space<vmem>>, vector<1x4x1x16xf32>
    %18 = vector.shape_cast %17 : vector<1x4x1x16xf32> to vector<4x16xf32>
    %c0_25 = arith.constant 0 : index
    %c391 = arith.constant 391 : index
    %19 = vector.load %arg5[%c0_25, %c391] : memref<4x1024xf32, #tpu.memory_space<vmem>>, vector<4x16xf32>
    tpu.vector_store %arg5[%c0_25, %c391], %18 {strides = array<i32>} : memref<4x1024xf32, #tpu.memory_space<vmem>>, vector<4x16xf32>,
    %c0_26 = arith.constant 0 : index
    %c0_27 = arith.constant 0 : index
    %c6 = arith.constant 6 : index
    %c0_28 = arith.constant 0 : index
    %20 = vector.load %arg1[%c0_26, %c0_27, %c6, %c0_28] : memref<1x4x16x16xf32, #tpu.memory_space<vmem>>, vector<1x4x1x16xf32>
    %21 = vector.shape_cast %20 : vector<1x4x1x16xf32> to vector<4x16xf32>
    %c0_29 = arith.constant 0 : index
    %c423 = arith.constant 423 : index
    %22 = vector.load %arg5[%c0_29, %c423] : memref<4x1024xf32, #tpu.memory_space<vmem>>, vector<4x16xf32>
    tpu.vector_store %arg5[%c0_29, %c423], %21 {strides = array<i32>} : memref<4x1024xf32, #tpu.memory_space<vmem>>, vector<4x16xf32>,
    %c0_30 = arith.constant 0 : index
    %c0_31 = arith.constant 0 : index
    %c7 = arith.constant 7 : index
    %c0_32 = arith.constant 0 : index
    %23 = vector.load %arg1[%c0_30, %c0_31, %c7, %c0_32] : memref<1x4x16x16xf32, #tpu.memory_space<vmem>>, vector<1x4x1x16xf32>
    %24 = vector.shape_cast %23 : vector<1x4x1x16xf32> to vector<4x16xf32>
    %c0_33 = arith.constant 0 : index
    %c455 = arith.constant 455 : index
    %25 = vector.load %arg5[%c0_33, %c455] : memref<4x1024xf32, #tpu.memory_space<vmem>>, vector<4x16xf32>
    tpu.vector_store %arg5[%c0_33, %c455], %24 {strides = array<i32>} : memref<4x1024xf32, #tpu.memory_space<vmem>>, vector<4x16xf32>,
    %c0_34 = arith.constant 0 : index
    %c0_35 = arith.constant 0 : index
    %c8 = arith.constant 8 : index
    %c0_36 = arith.constant 0 : index
    %26 = vector.load %arg1[%c0_34, %c0_35, %c8, %c0_36] : memref<1x4x16x16xf32, #tpu.memory_space<vmem>>, vector<1x4x1x16xf32>
    %27 = vector.shape_cast %26 : vector<1x4x1x16xf32> to vector<4x16xf32>
    %c0_37 = arith.constant 0 : index
    %c487 = arith.constant 487 : index
    %28 = vector.load %arg5[%c0_37, %c487] : memref<4x1024xf32, #tpu.memory_space<vmem>>, vector<4x16xf32>
    tpu.vector_store %arg5[%c0_37, %c487], %27 {strides = array<i32>} : memref<4x1024xf32, #tpu.memory_space<vmem>>, vector<4x16xf32>,
    %c0_38 = arith.constant 0 : index
    %c0_39 = arith.constant 0 : index
    %c9 = arith.constant 9 : index
    %c0_40 = arith.constant 0 : index
    %29 = vector.load %arg1[%c0_38, %c0_39, %c9, %c0_40] : memref<1x4x16x16xf32, #tpu.memory_space<vmem>>, vector<1x4x1x16xf32>
    %30 = vector.shape_cast %29 : vector<1x4x1x16xf32> to vector<4x16xf32>
    %c0_41 = arith.constant 0 : index
    %c519 = arith.constant 519 : index
    %31 = vector.load %arg5[%c0_41, %c519] : memref<4x1024xf32, #tpu.memory_space<vmem>>, vector<4x16xf32>
    tpu.vector_store %arg5[%c0_41, %c519], %30 {strides = array<i32>} : memref<4x1024xf32, #tpu.memory_space<vmem>>, vector<4x16xf32>,
    %c0_42 = arith.constant 0 : index
    %c0_43 = arith.constant 0 : index
    %c10 = arith.constant 10 : index
    %c0_44 = arith.constant 0 : index
    %32 = vector.load %arg1[%c0_42, %c0_43, %c10, %c0_44] : memref<1x4x16x16xf32, #tpu.memory_space<vmem>>, vector<1x4x1x16xf32>
    %33 = vector.shape_cast %32 : vector<1x4x1x16xf32> to vector<4x16xf32>
    %c0_45 = arith.constant 0 : index
    %c551 = arith.constant 551 : index
    %34 = vector.load %arg5[%c0_45, %c551] : memref<4x1024xf32, #tpu.memory_space<vmem>>, vector<4x16xf32>
    tpu.vector_store %arg5[%c0_45, %c551], %33 {strides = array<i32>} : memref<4x1024xf32, #tpu.memory_space<vmem>>, vector<4x16xf32>,
    %c0_46 = arith.constant 0 : index
    %c0_47 = arith.constant 0 : index
    %c11 = arith.constant 11 : index
    %c0_48 = arith.constant 0 : index
    %35 = vector.load %arg1[%c0_46, %c0_47, %c11, %c0_48] : memref<1x4x16x16xf32, #tpu.memory_space<vmem>>, vector<1x4x1x16xf32>
    %36 = vector.shape_cast %35 : vector<1x4x1x16xf32> to vector<4x16xf32>
    %c0_49 = arith.constant 0 : index
    %c583 = arith.constant 583 : index
    %37 = vector.load %arg5[%c0_49, %c583] : memref<4x1024xf32, #tpu.memory_space<vmem>>, vector<4x16xf32>
    tpu.vector_store %arg5[%c0_49, %c583], %36 {strides = array<i32>} : memref<4x1024xf32, #tpu.memory_space<vmem>>, vector<4x16xf32>,
    %c0_50 = arith.constant 0 : index
    %c0_51 = arith.constant 0 : index
    %c12 = arith.constant 12 : index
    %c0_52 = arith.constant 0 : index
    %38 = vector.load %arg1[%c0_50, %c0_51, %c12, %c0_52] : memref<1x4x16x16xf32, #tpu.memory_space<vmem>>, vector<1x4x1x16xf32>
    %39 = vector.shape_cast %38 : vector<1x4x1x16xf32> to vector<4x16xf32>
    %c0_53 = arith.constant 0 : index
    %c615 = arith.constant 615 : index
    %40 = vector.load %arg5[%c0_53, %c615] : memref<4x1024xf32, #tpu.memory_space<vmem>>, vector<4x16xf32>
    tpu.vector_store %arg5[%c0_53, %c615], %39 {strides = array<i32>} : memref<4x1024xf32, #tpu.memory_space<vmem>>, vector<4x16xf32>,
    %c0_54 = arith.constant 0 : index
    %c0_55 = arith.constant 0 : index
    %c13 = arith.constant 13 : index
    %c0_56 = arith.constant 0 : index
    %41 = vector.load %arg1[%c0_54, %c0_55, %c13, %c0_56] : memref<1x4x16x16xf32, #tpu.memory_space<vmem>>, vector<1x4x1x16xf32>
    %42 = vector.shape_cast %41 : vector<1x4x1x16xf32> to vector<4x16xf32>
    %c0_57 = arith.constant 0 : index
    %c647 = arith.constant 647 : index
    %43 = vector.load %arg5[%c0_57, %c647] : memref<4x1024xf32, #tpu.memory_space<vmem>>, vector<4x16xf32>
    tpu.vector_store %arg5[%c0_57, %c647], %42 {strides = array<i32>} : memref<4x1024xf32, #tpu.memory_space<vmem>>, vector<4x16xf32>,
    %c0_58 = arith.constant 0 : index
    %c0_59 = arith.constant 0 : index
    %c14 = arith.constant 14 : index
    %c0_60 = arith.constant 0 : index
    %44 = vector.load %arg1[%c0_58, %c0_59, %c14, %c0_60] : memref<1x4x16x16xf32, #tpu.memory_space<vmem>>, vector<1x4x1x16xf32>
    %45 = vector.shape_cast %44 : vector<1x4x1x16xf32> to vector<4x16xf32>
    %c0_61 = arith.constant 0 : index
    %c679 = arith.constant 679 : index
    %46 = vector.load %arg5[%c0_61, %c679] : memref<4x1024xf32, #tpu.memory_space<vmem>>, vector<4x16xf32>
    tpu.vector_store %arg5[%c0_61, %c679], %45 {strides = array<i32>} : memref<4x1024xf32, #tpu.memory_space<vmem>>, vector<4x16xf32>,
    %c0_62 = arith.constant 0 : index
    %c0_63 = arith.constant 0 : index
    %c15 = arith.constant 15 : index
    %c0_64 = arith.constant 0 : index
    %47 = vector.load %arg1[%c0_62, %c0_63, %c15, %c0_64] : memref<1x4x16x16xf32, #tpu.memory_space<vmem>>, vector<1x4x1x16xf32>
    %48 = vector.shape_cast %47 : vector<1x4x1x16xf32> to vector<4x16xf32>
    %c0_65 = arith.constant 0 : index
    %c711 = arith.constant 711 : index
    %49 = vector.load %arg5[%c0_65, %c711] : memref<4x1024xf32, #tpu.memory_space<vmem>>, vector<4x16xf32>
    tpu.vector_store %arg5[%c0_65, %c711], %48 {strides = array<i32>} : memref<4x1024xf32, #tpu.memory_space<vmem>>, vector<4x16xf32>,
    %c0_66 = arith.constant 0 : index
    %c0_67 = arith.constant 0 : index
    %50 = vector.load %arg5[%c0_66, %c0_67] : memref<4x1024xf32, #tpu.memory_space<vmem>>, vector<4x896xf32>
    %c0_68 = arith.constant 0 : index
    %c0_69 = arith.constant 0 : index
    %51 = vector.load %arg6[%c0_68, %c0_69] : memref<36x896xf32, #tpu.memory_space<vmem>>, vector<4x896xf32>
    tpu.vector_store %arg6[%c0_68, %c0_69], %50 {strides = array<i32>} : memref<36x896xf32, #tpu.memory_space<vmem>>, vector<4x896xf32>,
    %c0_70 = arith.constant 0 : index
    %c1_71 = arith.constant 1 : index
    %52 = vector.load %arg5[%c0_70, %c1_71] : memref<4x1024xf32, #tpu.memory_space<vmem>>, vector<4x896xf32>
    %c4_72 = arith.constant 4 : index
    %c0_73 = arith.constant 0 : index
    %53 = vector.load %arg6[%c4_72, %c0_73] : memref<36x896xf32, #tpu.memory_space<vmem>>, vector<4x896xf32>
    tpu.vector_store %arg6[%c4_72, %c0_73], %52 {strides = array<i32>} : memref<36x896xf32, #tpu.memory_space<vmem>>, vector<4x896xf32>,
    %c0_74 = arith.constant 0 : index
    %c2_75 = arith.constant 2 : index
    %54 = vector.load %arg5[%c0_74, %c2_75] : memref<4x1024xf32, #tpu.memory_space<vmem>>, vector<4x896xf32>
    %c8_76 = arith.constant 8 : index
    %c0_77 = arith.constant 0 : index
    %55 = vector.load %arg6[%c8_76, %c0_77] : memref<36x896xf32, #tpu.memory_space<vmem>>, vector<4x896xf32>
    tpu.vector_store %arg6[%c8_76, %c0_77], %54 {strides = array<i32>} : memref<36x896xf32, #tpu.memory_space<vmem>>, vector<4x896xf32>,
    %c0_78 = arith.constant 0 : index
    %c32 = arith.constant 32 : index
    %56 = vector.load %arg5[%c0_78, %c32] : memref<4x1024xf32, #tpu.memory_space<vmem>>, vector<4x896xf32>
    %c12_79 = arith.constant 12 : index
    %c0_80 = arith.constant 0 : index
    %57 = vector.load %arg6[%c12_79, %c0_80] : memref<36x896xf32, #tpu.memory_space<vmem>>, vector<4x896xf32>
    tpu.vector_store %arg6[%c12_79, %c0_80], %56 {strides = array<i32>} : memref<36x896xf32, #tpu.memory_space<vmem>>, vector<4x896xf32>,
    %c0_81 = arith.constant 0 : index
    %c33 = arith.constant 33 : index
    %58 = vector.load %arg5[%c0_81, %c33] : memref<4x1024xf32, #tpu.memory_space<vmem>>, vector<4x896xf32>
    %c16 = arith.constant 16 : index
    %c0_82 = arith.constant 0 : index
    %59 = vector.load %arg6[%c16, %c0_82] : memref<36x896xf32, #tpu.memory_space<vmem>>, vector<4x896xf32>
    tpu.vector_store %arg6[%c16, %c0_82], %58 {strides = array<i32>} : memref<36x896xf32, #tpu.memory_space<vmem>>, vector<4x896xf32>,
    %c0_83 = arith.constant 0 : index
    %c34 = arith.constant 34 : index
    %60 = vector.load %arg5[%c0_83, %c34] : memref<4x1024xf32, #tpu.memory_space<vmem>>, vector<4x896xf32>
    %c20 = arith.constant 20 : index
    %c0_84 = arith.constant 0 : index
    %61 = vector.load %arg6[%c20, %c0_84] : memref<36x896xf32, #tpu.memory_space<vmem>>, vector<4x896xf32>
    tpu.vector_store %arg6[%c20, %c0_84], %60 {strides = array<i32>} : memref<36x896xf32, #tpu.memory_space<vmem>>, vector<4x896xf32>,
    %c0_85 = arith.constant 0 : index
    %c64 = arith.constant 64 : index
    %62 = vector.load %arg5[%c0_85, %c64] : memref<4x1024xf32, #tpu.memory_space<vmem>>, vector<4x896xf32>
    %c24 = arith.constant 24 : index
    %c0_86 = arith.constant 0 : index
    %63 = vector.load %arg6[%c24, %c0_86] : memref<36x896xf32, #tpu.memory_space<vmem>>, vector<4x896xf32>
    tpu.vector_store %arg6[%c24, %c0_86], %62 {strides = array<i32>} : memref<36x896xf32, #tpu.memory_space<vmem>>, vector<4x896xf32>,
    %c0_87 = arith.constant 0 : index
    %c65 = arith.constant 65 : index
    %64 = vector.load %arg5[%c0_87, %c65] : memref<4x1024xf32, #tpu.memory_space<vmem>>, vector<4x896xf32>
    %c28 = arith.constant 28 : index
    %c0_88 = arith.constant 0 : index
    %65 = vector.load %arg6[%c28, %c0_88] : memref<36x896xf32, #tpu.memory_space<vmem>>, vector<4x896xf32>
    tpu.vector_store %arg6[%c28, %c0_88], %64 {strides = array<i32>} : memref<36x896xf32, #tpu.memory_space<vmem>>, vector<4x896xf32>,
    %c0_89 = arith.constant 0 : index
    %c66 = arith.constant 66 : index
    %66 = vector.load %arg5[%c0_89, %c66] : memref<4x1024xf32, #tpu.memory_space<vmem>>, vector<4x896xf32>
    %c32_90 = arith.constant 32 : index
    %c0_91 = arith.constant 0 : index
    %67 = vector.load %arg6[%c32_90, %c0_91] : memref<36x896xf32, #tpu.memory_space<vmem>>, vector<4x896xf32>
    tpu.vector_store %arg6[%c32_90, %c0_91], %66 {strides = array<i32>} : memref<36x896xf32, #tpu.memory_space<vmem>>, vector<4x896xf32>,
    %c0_92 = arith.constant 0 : index
    %c0_93 = arith.constant 0 : index
    %68 = vector.load %arg2[%c0_92, %c0_93] : memref<8x36xf32, #tpu.memory_space<vmem>>, vector<8x36xf32>
    %c0_94 = arith.constant 0 : index
    %c0_95 = arith.constant 0 : index
    %69 = vector.load %arg6[%c0_94, %c0_95] : memref<36x896xf32, #tpu.memory_space<vmem>>, vector<36x896xf32>
    %cst_96 = arith.constant dense<0.000000e+00> : vector<8x896xf32>
    %70 = tpu.matmul %68, %69, %cst_96 {dimension_numbers = #tpu.dot_dimension_numbers<[1], [0], [0], [1], [0, 0, 1, 1], [], []>} : vector<8x36xf32>, vector<36x896xf32>, vector<8x896xf32> -> vector<8x896xf32>
    %c0_97 = arith.constant 0 : index
    %c0_98 = arith.constant 0 : index
    %71 = vector.load %arg3[%c0_97, %c0_98] : memref<8x1xf32, #tpu.memory_space<vmem>>, vector<8x1xf32>
    %72 = vector.broadcast %71 : vector<8x1xf32> to vector<8x896xf32>
    %73 = arith.addf %70, %72 : vector<8x896xf32>
    %74 = vector.extract_strided_slice %73 {offsets = [0, 0], sizes = [8, 28], strides = [1, 1]} : vector<8x896xf32> to vector<8x28xf32>
    %c0_99 = arith.constant 0 : index
    %c0_100 = arith.constant 0 : index
    %c0_101 = arith.constant 0 : index
    %c0_102 = arith.constant 0 : index
    %75 = vector.load %arg4[%c0_99, %c0_100, %c0_101, %c0_102] : memref<1x8x28x28xf32, #tpu.memory_space<vmem>>, vector<1x8x1x28xf32>
    %76 = vector.shape_cast %75 : vector<1x8x1x28xf32> to vector<8x28xf32>
    %77 = vector.shape_cast %74 : vector<8x28xf32> to vector<1x8x1x28xf32>
    tpu.vector_store %arg4[%c0_99, %c0_100, %c0_101, %c0_102], %77 {strides = array<i32>} : memref<1x8x28x28xf32, #tpu.memory_space<vmem>>, vector<1x8x1x28xf32>,
    %78 = vector.extract_strided_slice %73 {offsets = [0, 32], sizes = [8, 28], strides = [1, 1]} : vector<8x896xf32> to vector<8x28xf32>
    %c0_103 = arith.constant 0 : index
    %c0_104 = arith.constant 0 : index
    %c1_105 = arith.constant 1 : index
    %c0_106 = arith.constant 0 : index
    %79 = vector.load %arg4[%c0_103, %c0_104, %c1_105, %c0_106] : memref<1x8x28x28xf32, #tpu.memory_space<vmem>>, vector<1x8x1x28xf32>
    %80 = vector.shape_cast %79 : vector<1x8x1x28xf32> to vector<8x28xf32>
    %81 = vector.shape_cast %78 : vector<8x28xf32> to vector<1x8x1x28xf32>
    tpu.vector_store %arg4[%c0_103, %c0_104, %c1_105, %c0_106], %81 {strides = array<i32>} : memref<1x8x28x28xf32, #tpu.memory_space<vmem>>, vector<1x8x1x28xf32>,
    %82 = vector.extract_strided_slice %73 {offsets = [0, 64], sizes = [8, 28], strides = [1, 1]} : vector<8x896xf32> to vector<8x28xf32>
    %c0_107 = arith.constant 0 : index
    %c0_108 = arith.constant 0 : index
    %c2_109 = arith.constant 2 : index
    %c0_110 = arith.constant 0 : index
    %83 = vector.load %arg4[%c0_107, %c0_108, %c2_109, %c0_110] : memref<1x8x28x28xf32, #tpu.memory_space<vmem>>, vector<1x8x1x28xf32>
    %84 = vector.shape_cast %83 : vector<1x8x1x28xf32> to vector<8x28xf32>
    %85 = vector.shape_cast %82 : vector<8x28xf32> to vector<1x8x1x28xf32>
    tpu.vector_store %arg4[%c0_107, %c0_108, %c2_109, %c0_110], %85 {strides = array<i32>} : memref<1x8x28x28xf32, #tpu.memory_space<vmem>>, vector<1x8x1x28xf32>,
    %86 = vector.extract_strided_slice %73 {offsets = [0, 96], sizes = [8, 28], strides = [1, 1]} : vector<8x896xf32> to vector<8x28xf32>
    %c0_111 = arith.constant 0 : index
    %c0_112 = arith.constant 0 : index
    %c3_113 = arith.constant 3 : index
    %c0_114 = arith.constant 0 : index
    %87 = vector.load %arg4[%c0_111, %c0_112, %c3_113, %c0_114] : memref<1x8x28x28xf32, #tpu.memory_space<vmem>>, vector<1x8x1x28xf32>
    %88 = vector.shape_cast %87 : vector<1x8x1x28xf32> to vector<8x28xf32>
    %89 = vector.shape_cast %86 : vector<8x28xf32> to vector<1x8x1x28xf32>
    tpu.vector_store %arg4[%c0_111, %c0_112, %c3_113, %c0_114], %89 {strides = array<i32>} : memref<1x8x28x28xf32, #tpu.memory_space<vmem>>, vector<1x8x1x28xf32>,
    %90 = vector.extract_strided_slice %73 {offsets = [0, 128], sizes = [8, 28], strides = [1, 1]} : vector<8x896xf32> to vector<8x28xf32>
    %c0_115 = arith.constant 0 : index
    %c0_116 = arith.constant 0 : index
    %c4_117 = arith.constant 4 : index
    %c0_118 = arith.constant 0 : index
    %91 = vector.load %arg4[%c0_115, %c0_116, %c4_117, %c0_118] : memref<1x8x28x28xf32, #tpu.memory_space<vmem>>, vector<1x8x1x28xf32>
    %92 = vector.shape_cast %91 : vector<1x8x1x28xf32> to vector<8x28xf32>
    %93 = vector.shape_cast %90 : vector<8x28xf32> to vector<1x8x1x28xf32>
    tpu.vector_store %arg4[%c0_115, %c0_116, %c4_117, %c0_118], %93 {strides = array<i32>} : memref<1x8x28x28xf32, #tpu.memory_space<vmem>>, vector<1x8x1x28xf32>,
    %94 = vector.extract_strided_slice %73 {offsets = [0, 160], sizes = [8, 28], strides = [1, 1]} : vector<8x896xf32> to vector<8x28xf32>
    %c0_119 = arith.constant 0 : index
    %c0_120 = arith.constant 0 : index
    %c5_121 = arith.constant 5 : index
    %c0_122 = arith.constant 0 : index
    %95 = vector.load %arg4[%c0_119, %c0_120, %c5_121, %c0_122] : memref<1x8x28x28xf32, #tpu.memory_space<vmem>>, vector<1x8x1x28xf32>
    %96 = vector.shape_cast %95 : vector<1x8x1x28xf32> to vector<8x28xf32>
    %97 = vector.shape_cast %94 : vector<8x28xf32> to vector<1x8x1x28xf32>
    tpu.vector_store %arg4[%c0_119, %c0_120, %c5_121, %c0_122], %97 {strides = array<i32>} : memref<1x8x28x28xf32, #tpu.memory_space<vmem>>, vector<1x8x1x28xf32>,
    %98 = vector.extract_strided_slice %73 {offsets = [0, 192], sizes = [8, 28], strides = [1, 1]} : vector<8x896xf32> to vector<8x28xf32>
    %c0_123 = arith.constant 0 : index
    %c0_124 = arith.constant 0 : index
    %c6_125 = arith.constant 6 : index
    %c0_126 = arith.constant 0 : index
    %99 = vector.load %arg4[%c0_123, %c0_124, %c6_125, %c0_126] : memref<1x8x28x28xf32, #tpu.memory_space<vmem>>, vector<1x8x1x28xf32>
    %100 = vector.shape_cast %99 : vector<1x8x1x28xf32> to vector<8x28xf32>
    %101 = vector.shape_cast %98 : vector<8x28xf32> to vector<1x8x1x28xf32>
    tpu.vector_store %arg4[%c0_123, %c0_124, %c6_125, %c0_126], %101 {strides = array<i32>} : memref<1x8x28x28xf32, #tpu.memory_space<vmem>>, vector<1x8x1x28xf32>,
    %102 = vector.extract_strided_slice %73 {offsets = [0, 224], sizes = [8, 28], strides = [1, 1]} : vector<8x896xf32> to vector<8x28xf32>
    %c0_127 = arith.constant 0 : index
    %c0_128 = arith.constant 0 : index
    %c7_129 = arith.constant 7 : index
    %c0_130 = arith.constant 0 : index
    %103 = vector.load %arg4[%c0_127, %c0_128, %c7_129, %c0_130] : memref<1x8x28x28xf32, #tpu.memory_space<vmem>>, vector<1x8x1x28xf32>
    %104 = vector.shape_cast %103 : vector<1x8x1x28xf32> to vector<8x28xf32>
    %105 = vector.shape_cast %102 : vector<8x28xf32> to vector<1x8x1x28xf32>
    tpu.vector_store %arg4[%c0_127, %c0_128, %c7_129, %c0_130], %105 {strides = array<i32>} : memref<1x8x28x28xf32, #tpu.memory_space<vmem>>, vector<1x8x1x28xf32>,
    %106 = vector.extract_strided_slice %73 {offsets = [0, 256], sizes = [8, 28], strides = [1, 1]} : vector<8x896xf32> to vector<8x28xf32>
    %c0_131 = arith.constant 0 : index
    %c0_132 = arith.constant 0 : index
    %c8_133 = arith.constant 8 : index
    %c0_134 = arith.constant 0 : index
    %107 = vector.load %arg4[%c0_131, %c0_132, %c8_133, %c0_134] : memref<1x8x28x28xf32, #tpu.memory_space<vmem>>, vector<1x8x1x28xf32>
    %108 = vector.shape_cast %107 : vector<1x8x1x28xf32> to vector<8x28xf32>
    %109 = vector.shape_cast %106 : vector<8x28xf32> to vector<1x8x1x28xf32>
    tpu.vector_store %arg4[%c0_131, %c0_132, %c8_133, %c0_134], %109 {strides = array<i32>} : memref<1x8x28x28xf32, #tpu.memory_space<vmem>>, vector<1x8x1x28xf32>,
    %110 = vector.extract_strided_slice %73 {offsets = [0, 288], sizes = [8, 28], strides = [1, 1]} : vector<8x896xf32> to vector<8x28xf32>
    %c0_135 = arith.constant 0 : index
    %c0_136 = arith.constant 0 : index
    %c9_137 = arith.constant 9 : index
    %c0_138 = arith.constant 0 : index
    %111 = vector.load %arg4[%c0_135, %c0_136, %c9_137, %c0_138] : memref<1x8x28x28xf32, #tpu.memory_space<vmem>>, vector<1x8x1x28xf32>
    %112 = vector.shape_cast %111 : vector<1x8x1x28xf32> to vector<8x28xf32>
    %113 = vector.shape_cast %110 : vector<8x28xf32> to vector<1x8x1x28xf32>
    tpu.vector_store %arg4[%c0_135, %c0_136, %c9_137, %c0_138], %113 {strides = array<i32>} : memref<1x8x28x28xf32, #tpu.memory_space<vmem>>, vector<1x8x1x28xf32>,
    %114 = vector.extract_strided_slice %73 {offsets = [0, 320], sizes = [8, 28], strides = [1, 1]} : vector<8x896xf32> to vector<8x28xf32>
    %c0_139 = arith.constant 0 : index
    %c0_140 = arith.constant 0 : index
    %c10_141 = arith.constant 10 : index
    %c0_142 = arith.constant 0 : index
    %115 = vector.load %arg4[%c0_139, %c0_140, %c10_141, %c0_142] : memref<1x8x28x28xf32, #tpu.memory_space<vmem>>, vector<1x8x1x28xf32>
    %116 = vector.shape_cast %115 : vector<1x8x1x28xf32> to vector<8x28xf32>
    %117 = vector.shape_cast %114 : vector<8x28xf32> to vector<1x8x1x28xf32>
    tpu.vector_store %arg4[%c0_139, %c0_140, %c10_141, %c0_142], %117 {strides = array<i32>} : memref<1x8x28x28xf32, #tpu.memory_space<vmem>>, vector<1x8x1x28xf32>,
    %118 = vector.extract_strided_slice %73 {offsets = [0, 352], sizes = [8, 28], strides = [1, 1]} : vector<8x896xf32> to vector<8x28xf32>
    %c0_143 = arith.constant 0 : index
    %c0_144 = arith.constant 0 : index
    %c11_145 = arith.constant 11 : index
    %c0_146 = arith.constant 0 : index
    %119 = vector.load %arg4[%c0_143, %c0_144, %c11_145, %c0_146] : memref<1x8x28x28xf32, #tpu.memory_space<vmem>>, vector<1x8x1x28xf32>
    %120 = vector.shape_cast %119 : vector<1x8x1x28xf32> to vector<8x28xf32>
    %121 = vector.shape_cast %118 : vector<8x28xf32> to vector<1x8x1x28xf32>
    tpu.vector_store %arg4[%c0_143, %c0_144, %c11_145, %c0_146], %121 {strides = array<i32>} : memref<1x8x28x28xf32, #tpu.memory_space<vmem>>, vector<1x8x1x28xf32>,
    %122 = vector.extract_strided_slice %73 {offsets = [0, 384], sizes = [8, 28], strides = [1, 1]} : vector<8x896xf32> to vector<8x28xf32>
    %c0_147 = arith.constant 0 : index
    %c0_148 = arith.constant 0 : index
    %c12_149 = arith.constant 12 : index
    %c0_150 = arith.constant 0 : index
    %123 = vector.load %arg4[%c0_147, %c0_148, %c12_149, %c0_150] : memref<1x8x28x28xf32, #tpu.memory_space<vmem>>, vector<1x8x1x28xf32>
    %124 = vector.shape_cast %123 : vector<1x8x1x28xf32> to vector<8x28xf32>
    %125 = vector.shape_cast %122 : vector<8x28xf32> to vector<1x8x1x28xf32>
    tpu.vector_store %arg4[%c0_147, %c0_148, %c12_149, %c0_150], %125 {strides = array<i32>} : memref<1x8x28x28xf32, #tpu.memory_space<vmem>>, vector<1x8x1x28xf32>,
    %126 = vector.extract_strided_slice %73 {offsets = [0, 416], sizes = [8, 28], strides = [1, 1]} : vector<8x896xf32> to vector<8x28xf32>
    %c0_151 = arith.constant 0 : index
    %c0_152 = arith.constant 0 : index
    %c13_153 = arith.constant 13 : index
    %c0_154 = arith.constant 0 : index
    %127 = vector.load %arg4[%c0_151, %c0_152, %c13_153, %c0_154] : memref<1x8x28x28xf32, #tpu.memory_space<vmem>>, vector<1x8x1x28xf32>
    %128 = vector.shape_cast %127 : vector<1x8x1x28xf32> to vector<8x28xf32>
    %129 = vector.shape_cast %126 : vector<8x28xf32> to vector<1x8x1x28xf32>
    tpu.vector_store %arg4[%c0_151, %c0_152, %c13_153, %c0_154], %129 {strides = array<i32>} : memref<1x8x28x28xf32, #tpu.memory_space<vmem>>, vector<1x8x1x28xf32>,
    %130 = vector.extract_strided_slice %73 {offsets = [0, 448], sizes = [8, 28], strides = [1, 1]} : vector<8x896xf32> to vector<8x28xf32>
    %c0_155 = arith.constant 0 : index
    %c0_156 = arith.constant 0 : index
    %c14_157 = arith.constant 14 : index
    %c0_158 = arith.constant 0 : index
    %131 = vector.load %arg4[%c0_155, %c0_156, %c14_157, %c0_158] : memref<1x8x28x28xf32, #tpu.memory_space<vmem>>, vector<1x8x1x28xf32>
    %132 = vector.shape_cast %131 : vector<1x8x1x28xf32> to vector<8x28xf32>
    %133 = vector.shape_cast %130 : vector<8x28xf32> to vector<1x8x1x28xf32>
    tpu.vector_store %arg4[%c0_155, %c0_156, %c14_157, %c0_158], %133 {strides = array<i32>} : memref<1x8x28x28xf32, #tpu.memory_space<vmem>>, vector<1x8x1x28xf32>,
    %134 = vector.extract_strided_slice %73 {offsets = [0, 480], sizes = [8, 28], strides = [1, 1]} : vector<8x896xf32> to vector<8x28xf32>
    %c0_159 = arith.constant 0 : index
    %c0_160 = arith.constant 0 : index
    %c15_161 = arith.constant 15 : index
    %c0_162 = arith.constant 0 : index
    %135 = vector.load %arg4[%c0_159, %c0_160, %c15_161, %c0_162] : memref<1x8x28x28xf32, #tpu.memory_space<vmem>>, vector<1x8x1x28xf32>
    %136 = vector.shape_cast %135 : vector<1x8x1x28xf32> to vector<8x28xf32>
    %137 = vector.shape_cast %134 : vector<8x28xf32> to vector<1x8x1x28xf32>
    tpu.vector_store %arg4[%c0_159, %c0_160, %c15_161, %c0_162], %137 {strides = array<i32>} : memref<1x8x28x28xf32, #tpu.memory_space<vmem>>, vector<1x8x1x28xf32>,
    %138 = vector.extract_strided_slice %73 {offsets = [0, 512], sizes = [8, 28], strides = [1, 1]} : vector<8x896xf32> to vector<8x28xf32>
    %c0_163 = arith.constant 0 : index
    %c0_164 = arith.constant 0 : index
    %c16_165 = arith.constant 16 : index
    %c0_166 = arith.constant 0 : index
    %139 = vector.load %arg4[%c0_163, %c0_164, %c16_165, %c0_166] : memref<1x8x28x28xf32, #tpu.memory_space<vmem>>, vector<1x8x1x28xf32>
    %140 = vector.shape_cast %139 : vector<1x8x1x28xf32> to vector<8x28xf32>
    %141 = vector.shape_cast %138 : vector<8x28xf32> to vector<1x8x1x28xf32>
    tpu.vector_store %arg4[%c0_163, %c0_164, %c16_165, %c0_166], %141 {strides = array<i32>} : memref<1x8x28x28xf32, #tpu.memory_space<vmem>>, vector<1x8x1x28xf32>,
    %142 = vector.extract_strided_slice %73 {offsets = [0, 544], sizes = [8, 28], strides = [1, 1]} : vector<8x896xf32> to vector<8x28xf32>
    %c0_167 = arith.constant 0 : index
    %c0_168 = arith.constant 0 : index
    %c17 = arith.constant 17 : index
    %c0_169 = arith.constant 0 : index
    %143 = vector.load %arg4[%c0_167, %c0_168, %c17, %c0_169] : memref<1x8x28x28xf32, #tpu.memory_space<vmem>>, vector<1x8x1x28xf32>
    %144 = vector.shape_cast %143 : vector<1x8x1x28xf32> to vector<8x28xf32>
    %145 = vector.shape_cast %142 : vector<8x28xf32> to vector<1x8x1x28xf32>
    tpu.vector_store %arg4[%c0_167, %c0_168, %c17, %c0_169], %145 {strides = array<i32>} : memref<1x8x28x28xf32, #tpu.memory_space<vmem>>, vector<1x8x1x28xf32>,
    %146 = vector.extract_strided_slice %73 {offsets = [0, 576], sizes = [8, 28], strides = [1, 1]} : vector<8x896xf32> to vector<8x28xf32>
    %c0_170 = arith.constant 0 : index
    %c0_171 = arith.constant 0 : index
    %c18 = arith.constant 18 : index
    %c0_172 = arith.constant 0 : index
    %147 = vector.load %arg4[%c0_170, %c0_171, %c18, %c0_172] : memref<1x8x28x28xf32, #tpu.memory_space<vmem>>, vector<1x8x1x28xf32>
    %148 = vector.shape_cast %147 : vector<1x8x1x28xf32> to vector<8x28xf32>
    %149 = vector.shape_cast %146 : vector<8x28xf32> to vector<1x8x1x28xf32>
    tpu.vector_store %arg4[%c0_170, %c0_171, %c18, %c0_172], %149 {strides = array<i32>} : memref<1x8x28x28xf32, #tpu.memory_space<vmem>>, vector<1x8x1x28xf32>,
    %150 = vector.extract_strided_slice %73 {offsets = [0, 608], sizes = [8, 28], strides = [1, 1]} : vector<8x896xf32> to vector<8x28xf32>
    %c0_173 = arith.constant 0 : index
    %c0_174 = arith.constant 0 : index
    %c19 = arith.constant 19 : index
    %c0_175 = arith.constant 0 : index
    %151 = vector.load %arg4[%c0_173, %c0_174, %c19, %c0_175] : memref<1x8x28x28xf32, #tpu.memory_space<vmem>>, vector<1x8x1x28xf32>
    %152 = vector.shape_cast %151 : vector<1x8x1x28xf32> to vector<8x28xf32>
    %153 = vector.shape_cast %150 : vector<8x28xf32> to vector<1x8x1x28xf32>
    tpu.vector_store %arg4[%c0_173, %c0_174, %c19, %c0_175], %153 {strides = array<i32>} : memref<1x8x28x28xf32, #tpu.memory_space<vmem>>, vector<1x8x1x28xf32>,
    %154 = vector.extract_strided_slice %73 {offsets = [0, 640], sizes = [8, 28], strides = [1, 1]} : vector<8x896xf32> to vector<8x28xf32>
    %c0_176 = arith.constant 0 : index
    %c0_177 = arith.constant 0 : index
    %c20_178 = arith.constant 20 : index
    %c0_179 = arith.constant 0 : index
    %155 = vector.load %arg4[%c0_176, %c0_177, %c20_178, %c0_179] : memref<1x8x28x28xf32, #tpu.memory_space<vmem>>, vector<1x8x1x28xf32>
    %156 = vector.shape_cast %155 : vector<1x8x1x28xf32> to vector<8x28xf32>
    %157 = vector.shape_cast %154 : vector<8x28xf32> to vector<1x8x1x28xf32>
    tpu.vector_store %arg4[%c0_176, %c0_177, %c20_178, %c0_179], %157 {strides = array<i32>} : memref<1x8x28x28xf32, #tpu.memory_space<vmem>>, vector<1x8x1x28xf32>,
    %158 = vector.extract_strided_slice %73 {offsets = [0, 672], sizes = [8, 28], strides = [1, 1]} : vector<8x896xf32> to vector<8x28xf32>
    %c0_180 = arith.constant 0 : index
    %c0_181 = arith.constant 0 : index
    %c21 = arith.constant 21 : index
    %c0_182 = arith.constant 0 : index
    %159 = vector.load %arg4[%c0_180, %c0_181, %c21, %c0_182] : memref<1x8x28x28xf32, #tpu.memory_space<vmem>>, vector<1x8x1x28xf32>
    %160 = vector.shape_cast %159 : vector<1x8x1x28xf32> to vector<8x28xf32>
    %161 = vector.shape_cast %158 : vector<8x28xf32> to vector<1x8x1x28xf32>
    tpu.vector_store %arg4[%c0_180, %c0_181, %c21, %c0_182], %161 {strides = array<i32>} : memref<1x8x28x28xf32, #tpu.memory_space<vmem>>, vector<1x8x1x28xf32>,
    %162 = vector.extract_strided_slice %73 {offsets = [0, 704], sizes = [8, 28], strides = [1, 1]} : vector<8x896xf32> to vector<8x28xf32>
    %c0_183 = arith.constant 0 : index
    %c0_184 = arith.constant 0 : index
    %c22 = arith.constant 22 : index
    %c0_185 = arith.constant 0 : index
    %163 = vector.load %arg4[%c0_183, %c0_184, %c22, %c0_185] : memref<1x8x28x28xf32, #tpu.memory_space<vmem>>, vector<1x8x1x28xf32>
    %164 = vector.shape_cast %163 : vector<1x8x1x28xf32> to vector<8x28xf32>
    %165 = vector.shape_cast %162 : vector<8x28xf32> to vector<1x8x1x28xf32>
    tpu.vector_store %arg4[%c0_183, %c0_184, %c22, %c0_185], %165 {strides = array<i32>} : memref<1x8x28x28xf32, #tpu.memory_space<vmem>>, vector<1x8x1x28xf32>,
    %166 = vector.extract_strided_slice %73 {offsets = [0, 736], sizes = [8, 28], strides = [1, 1]} : vector<8x896xf32> to vector<8x28xf32>
    %c0_186 = arith.constant 0 : index
    %c0_187 = arith.constant 0 : index
    %c23 = arith.constant 23 : index
    %c0_188 = arith.constant 0 : index
    %167 = vector.load %arg4[%c0_186, %c0_187, %c23, %c0_188] : memref<1x8x28x28xf32, #tpu.memory_space<vmem>>, vector<1x8x1x28xf32>
    %168 = vector.shape_cast %167 : vector<1x8x1x28xf32> to vector<8x28xf32>
    %169 = vector.shape_cast %166 : vector<8x28xf32> to vector<1x8x1x28xf32>
    tpu.vector_store %arg4[%c0_186, %c0_187, %c23, %c0_188], %169 {strides = array<i32>} : memref<1x8x28x28xf32, #tpu.memory_space<vmem>>, vector<1x8x1x28xf32>,
    %170 = vector.extract_strided_slice %73 {offsets = [0, 768], sizes = [8, 28], strides = [1, 1]} : vector<8x896xf32> to vector<8x28xf32>
    %c0_189 = arith.constant 0 : index
    %c0_190 = arith.constant 0 : index
    %c24_191 = arith.constant 24 : index
    %c0_192 = arith.constant 0 : index
    %171 = vector.load %arg4[%c0_189, %c0_190, %c24_191, %c0_192] : memref<1x8x28x28xf32, #tpu.memory_space<vmem>>, vector<1x8x1x28xf32>
    %172 = vector.shape_cast %171 : vector<1x8x1x28xf32> to vector<8x28xf32>
    %173 = vector.shape_cast %170 : vector<8x28xf32> to vector<1x8x1x28xf32>
    tpu.vector_store %arg4[%c0_189, %c0_190, %c24_191, %c0_192], %173 {strides = array<i32>} : memref<1x8x28x28xf32, #tpu.memory_space<vmem>>, vector<1x8x1x28xf32>,
    %174 = vector.extract_strided_slice %73 {offsets = [0, 800], sizes = [8, 28], strides = [1, 1]} : vector<8x896xf32> to vector<8x28xf32>
    %c0_193 = arith.constant 0 : index
    %c0_194 = arith.constant 0 : index
    %c25 = arith.constant 25 : index
    %c0_195 = arith.constant 0 : index
    %175 = vector.load %arg4[%c0_193, %c0_194, %c25, %c0_195] : memref<1x8x28x28xf32, #tpu.memory_space<vmem>>, vector<1x8x1x28xf32>
    %176 = vector.shape_cast %175 : vector<1x8x1x28xf32> to vector<8x28xf32>
    %177 = vector.shape_cast %174 : vector<8x28xf32> to vector<1x8x1x28xf32>
    tpu.vector_store %arg4[%c0_193, %c0_194, %c25, %c0_195], %177 {strides = array<i32>} : memref<1x8x28x28xf32, #tpu.memory_space<vmem>>, vector<1x8x1x28xf32>,
    %178 = vector.extract_strided_slice %73 {offsets = [0, 832], sizes = [8, 28], strides = [1, 1]} : vector<8x896xf32> to vector<8x28xf32>
    %c0_196 = arith.constant 0 : index
    %c0_197 = arith.constant 0 : index
    %c26 = arith.constant 26 : index
    %c0_198 = arith.constant 0 : index
    %179 = vector.load %arg4[%c0_196, %c0_197, %c26, %c0_198] : memref<1x8x28x28xf32, #tpu.memory_space<vmem>>, vector<1x8x1x28xf32>
    %180 = vector.shape_cast %179 : vector<1x8x1x28xf32> to vector<8x28xf32>
    %181 = vector.shape_cast %178 : vector<8x28xf32> to vector<1x8x1x28xf32>
    tpu.vector_store %arg4[%c0_196, %c0_197, %c26, %c0_198], %181 {strides = array<i32>} : memref<1x8x28x28xf32, #tpu.memory_space<vmem>>, vector<1x8x1x28xf32>,
    %182 = vector.extract_strided_slice %73 {offsets = [0, 864], sizes = [8, 28], strides = [1, 1]} : vector<8x896xf32> to vector<8x28xf32>
    %c0_199 = arith.constant 0 : index
    %c0_200 = arith.constant 0 : index
    %c27 = arith.constant 27 : index
    %c0_201 = arith.constant 0 : index
    %183 = vector.load %arg4[%c0_199, %c0_200, %c27, %c0_201] : memref<1x8x28x28xf32, #tpu.memory_space<vmem>>, vector<1x8x1x28xf32>
    %184 = vector.shape_cast %183 : vector<1x8x1x28xf32> to vector<8x28xf32>
    %185 = vector.shape_cast %182 : vector<8x28xf32> to vector<1x8x1x28xf32>
    tpu.vector_store %arg4[%c0_199, %c0_200, %c27, %c0_201], %185 {strides = array<i32>} : memref<1x8x28x28xf32, #tpu.memory_space<vmem>>, vector<1x8x1x28xf32>,
    return
  }
  func.func @transform_0(%arg0: i32) -> (i32, i32, i32, i32) {
    %c0_i32 = arith.constant 0 : i32
    %c0_i32_0 = arith.constant 0 : i32
    %c0_i32_1 = arith.constant 0 : i32
    %c0_i32_2 = arith.constant 0 : i32
    return %arg0, %c0_i32, %c0_i32_0, %c0_i32_1 : i32, i32, i32, i32
  }
  func.func @transform_1(%arg0: i32) -> (i32, i32) {
    %c0_i32 = arith.constant 0 : i32
    %c0_i32_0 = arith.constant 0 : i32
    %c0_i32_1 = arith.constant 0 : i32
    return %c0_i32, %c0_i32_0 : i32, i32
  }
  func.func @transform_2(%arg0: i32) -> (i32, i32) {
    %c0_i32 = arith.constant 0 : i32
    %c0_i32_0 = arith.constant 0 : i32
    %c0_i32_1 = arith.constant 0 : i32
    return %c0_i32, %c0_i32_0 : i32, i32
  }
  func.func @transform_3(%arg0: i32) -> (i32, i32, i32, i32) {
    %c0_i32 = arith.constant 0 : i32
    %c0_i32_0 = arith.constant 0 : i32
    %c0_i32_1 = arith.constant 0 : i32
    %c0_i32_2 = arith.constant 0 : i32
    return %arg0, %c0_i32, %c0_i32_0, %c0_i32_1 : i32, i32, i32, i32
  }
}

</mosaic_0001>

<bundles_post_ra>
// kernel: fat_conv2d.1
= control target key start
LH: loop header
LB: loop body
LE: loop exit
PB: predicated region body
PF: predicated region fallthrough
CT: control target
= control target key end

     0   :  { %s2855_s12 = smov 0   ;;  %s4484_s0 = inlined_call_operand.vmem [shape: f32[2,4,16,16], index: 0, kind: input, shape index: {}]   ;;  %s4485_s1 = inlined_call_operand.vmem [shape: f32[8,36], index: 1, kind: input, shape index: {}]   ;;  %s4486_s2 = inlined_call_operand.vmem [shape: f32[8,1], index: 2, kind: input, shape index: {}]   ;;  %s4487_s3 = inlined_call_operand.vmem [shape: f32[2,8,28,28], index: 3, kind: output, shape index: {}]  }
   0x1 LB: > { %s2706_s13 = sadd.s32 4294967295, %s2815_s12   ;;  %p2710_p0 = scmp.ge.s32.totalorder %s2815_s12, 1  ;;  %s2815_s12 = sphi %s2855_s12, %s13_s12  }
   0x2   : > { %p137_p1 = scmp.lt.s32.totalorder %s2815_s12, 3 }
   0x4   : > { %p138_p2 = pnand %p2710_p0, %p137_p1 }
   0x5   : > { %p161_p3 = scmp.lt.s32.totalorder (!%p138_p2), %s2706_s13, 1  ;;  %v2817_v0 = vmov (!%p138_p2), 0.0   ;;  %vm184_vm0 = vcmask (!%p138_p2), 1041409   ;;  %vm186_vm1 = vcmask (!%p138_p2), 1045509   ;;  %vm189_vm2 = vcmask (!%p138_p2), 1042434   ;;  %s2818_s18 = smov (!%p138_p2), 103  }
   0x6   : > { %141 = sbr.rel (%p138_p2) target bundleno = 1037 (0x40d), region = 32  ;;  %174 = vst [vmem:[#allocation2 + $0x18] sm:$0xff] (!%p138_p2), %v2817_v0  ;;  %171 = vst [vmem:[#allocation2] sm:$0xff] (!%p138_p2), %v2817_v0  ;;  %1073 = vmatprep.mubr.f32.mxu0 (!%p138_p2), %v2817_v0  ;;  %1144 = vmatprep.mubr.f32.mxu1 (!%p138_p2), %v2817_v0  ;;  %vm191_vm3 = vcmask (!%p138_p2), 1046534   ;;  %vm194_vm4 = vcmask (!%p138_p2), 1043459   ;;  %vm196_vm5 = vcmask (!%p138_p2), 1047559  }
   0x7   : > { %172 = vst [vmem:[#allocation2 + $0x8] sm:$0xff] (!%p138_p2), %v2817_v0  ;;  %173 = vst [vmem:[#allocation2 + $0x10] sm:$0xff] (!%p138_p2), %v2817_v0  ;;  %s2819_s19 = smov (!%p138_p2), 39   ;;  %s2820_s20 = smov (!%p138_p2), 7   ;;  %vm201_vm6 = vcmask (!%p138_p2), 970552   ;;  %vm223_vm7 = vcmask (!%p138_p2), 183352  }
   0x8   : > { %s2821_s21 = smov (!%p138_p2), 71   ;;  %s2822_s22 = smov (!%p138_p2), 127   ;;  %vm245_vm8 = vcmask (!%p138_p2), 445752   ;;  %vm267_vm9 = vcmask (!%p138_p2), 708152   ;;  %vm569_vm10 = vcmask (!%p138_p2), 1039360   ;;  %vm619_vm11 = vcmask (!%p138_p2), 1031168  }
   0x9   : > { %s2823_s23 = smov (!%p138_p2), 126   ;;  %s2824_s24 = smov (!%p138_p2), 96   ;;  %vm669_vm12 = vcmask (!%p138_p2), 785408   ;;  %vm719_vm13 = vcmask (!%p138_p2), 777216   ;;  %vm769_vm14 = vcmask (!%p138_p2), 769024   ;;  %vm819_vm15 = vcmask (!%p138_p2), 523264  }
   0xa   : > { %s2825_s25 = smov (!%p138_p2), 95   ;;  %s2826_s26 = smov (!%p138_p2), 94  }
   0xb   : > { %s2827_s27 = smov (!%p138_p2), 64   ;;  %s2828_s28 = smov (!%p138_p2), 63  }
   0xc   : > { %s2829_s29 = smov (!%p138_p2), 62   ;;  %s2834_s11 = smov (!%p138_p2), 32  }
   0xd   : > { %s4489_s13 = smov (!%p161_p3, %s2706_s13), 1 }
   0xe   : > { %s2728_s14 = sshll.u32 %s4489_s13, 6  ;;  %s2729_s7 = sshll.u32 %s4489_s13, 8 }
   0xf   : > { %s2875_s17 = scalar_lea.vmem %s4484_s0, %s2728_s14  ;;  %s3329_s10 = scalar_lea.vmem %s4487_s3, %s2729_s7 }
  0x10   : > { %v175_v1 = vld [vmem:[%s2875_s17] sm:$0x1]  ;;  %v176_v2 = vld [vmem:[%s2875_s17 + $0x10] sm:$0x1]  ;;  %v225_v7 = vld [vmem:[%s2875_s17 + $0x2] sm:$0x1] }
  0x11   : > { %v177_v3 = vld [vmem:[%s2875_s17 + $0x20] sm:$0x1]  ;;  %v178_v4 = vld [vmem:[%s2875_s17 + $0x30] sm:$0x1]  ;;  %v183_v5 = vrot.slane %v176_v2, 7 }
  0x12   : > { %v188_v6 = vrot.slane %v177_v3, 6  ;;  %v193_v8 = vrot.slane %v178_v4, 5  ;;  %v226_v9 = vld [vmem:[%s2875_s17 + $0x12] sm:$0x1]  ;;  %v227_v10 = vld [vmem:[%s2875_s17 + $0x22] sm:$0x1] }
  0x13   : > { %v185_v11 = vsel %vm184_vm0, %v183_v5, %v175_v1  ;;  %v228_v12 = vld [vmem:[%s2875_s17 + $0x32] sm:$0x1]  ;;  %v233_v13 = vrot.slane %v226_v9, 7  ;;  %v236_v14 = vrot.slane %v227_v10, 6  ;;  %v203_v15 = vld [vmem:[%s2875_s17 + $0x1] sm:$0x1] }
  0x14   : > { %v187_v16 = vsel %vm186_vm1, %v183_v5, %v185_v11  ;;  %v239_v17 = vrot.slane %v228_v12, 5  ;;  %v204_v18 = vld [vmem:[%s2875_s17 + $0x11] sm:$0x1]  ;;  %v205_v19 = vld [vmem:[%s2875_s17 + $0x21] sm:$0x1] }
  0x15   : > { %v190_v20 = vsel %vm189_vm2, %v188_v6, %v187_v16  ;;  %v234_v21 = vsel %vm184_vm0, %v233_v13, %v225_v7  ;;  %v206_v22 = vld [vmem:[%s2875_s17 + $0x31] sm:$0x1]  ;;  %v211_v23 = vrot.slane %v204_v18, 7  ;;  %v214_v24 = vrot.slane %v205_v19, 6  ;;  %v247_v25 = vld [vmem:[%s2875_s17 + $0x3] sm:$0x1] }
  0x16   : > { %v192_v26 = vsel %vm191_vm3, %v188_v6, %v190_v20  ;;  %v235_v27 = vsel %vm186_vm1, %v233_v13, %v234_v21  ;;  %v217_v28 = vrot.slane %v206_v22, 5  ;;  %v248_v29 = vld [vmem:[%s2875_s17 + $0x13] sm:$0x1]  ;;  %v249_v30 = vld [vmem:[%s2875_s17 + $0x23] sm:$0x1] }
  0x17   : > { %v195_v31 = vsel %vm194_vm4, %v193_v8, %v192_v26  ;;  %v237_v32 = vsel %vm189_vm2, %v236_v14, %v235_v27  ;;  %v212_v33 = vsel %vm184_vm0, %v211_v23, %v203_v15  ;;  %v250_v34 = vld [vmem:[%s2875_s17 + $0x33] sm:$0x1]  ;;  %v255_v35 = vrot.slane %v248_v29, 7  ;;  %v270_v40 = vld [vmem:[%s2875_s17 + $0x14] sm:$0x1] }
  0x18   : > { %v197_v36 = vsel %vm196_vm5, %v193_v8, %v195_v31  ;;  %v238_v37 = vsel %vm191_vm3, %v236_v14, %v237_v32  ;;  %v213_v38 = vsel %vm186_vm1, %v211_v23, %v212_v33  ;;  %v258_v39 = vrot.slane %v249_v30, 6  ;;  %v271_v41 = vld [vmem:[%s2875_s17 + $0x24] sm:$0x1]  ;;  %v272_v47 = vld [vmem:[%s2875_s17 + $0x34] sm:$0x1] }
  0x19   : > { %198 = vrot.lane.b32.xlu0 %v197_v36, %s2818_s18  ;;  %v240_v42 = vsel %vm194_vm4, %v239_v17, %v238_v37  ;;  %v215_v43 = vsel %vm189_vm2, %v214_v24, %v213_v38  ;;  %v256_v44 = vsel %vm184_vm0, %v255_v35, %v247_v25  ;;  %v261_v45 = vrot.slane %v250_v34, 5  ;;  %v269_v46 = vld [vmem:[%s2875_s17 + $0x4] sm:$0x1]  ;;  %v291_v52 = vld [vmem:[%s2875_s17 + $0x15] sm:$0x1] }
  0x1a   : > { %v241_v48 = vsel %vm196_vm5, %v239_v17, %v240_v42  ;;  %v216_v49 = vsel %vm191_vm3, %v214_v24, %v215_v43  ;;  %v257_v50 = vsel %vm186_vm1, %v255_v35, %v256_v44  ;;  %v277_v51 = vrot.slane %v270_v40, 7  ;;  %v292_v53 = vld [vmem:[%s2875_s17 + $0x25] sm:$0x1]  ;;  %v293_v59 = vld [vmem:[%s2875_s17 + $0x35] sm:$0x1] }
  0x1b   : > { %242 = vrot.lane.b32.xlu1 %v241_v48, %s2819_s19  ;;  %v218_v54 = vsel %vm194_vm4, %v217_v28, %v216_v49  ;;  %v259_v55 = vsel %vm189_vm2, %v258_v39, %v257_v50  ;;  %v280_v56 = vrot.slane %v271_v41, 6  ;;  %v283_v57 = vrot.slane %v272_v47, 5  ;;  %v290_v58 = vld [vmem:[%s2875_s17 + $0x5] sm:$0x1]  ;;  %v312_v1 = vld [vmem:[%s2875_s17 + $0x16] sm:$0x1] }
  0x1c   : > { %v219_v60 = vsel %vm196_vm5, %v217_v28, %v218_v54  ;;  %v260_v61 = vsel %vm191_vm3, %v258_v39, %v259_v55  ;;  %v278_v62 = vsel %vm184_vm0, %v277_v51, %v269_v46  ;;  %v298_v63 = vrot.slane %v291_v52, 7  ;;  %v313_v2 = vld [vmem:[%s2875_s17 + $0x26] sm:$0x1]  ;;  %v314_v8 = vld [vmem:[%s2875_s17 + $0x36] sm:$0x1] }
  0x1d   : > { %220 = vrot.lane.b32.xlu0 %v219_v60, %s2820_s20  ;;  %v262_v3 = vsel %vm194_vm4, %v261_v45, %v260_v61  ;;  %v279_v4 = vsel %vm186_vm1, %v277_v51, %v278_v62  ;;  %v301_v5 = vrot.slane %v292_v53, 6  ;;  %v304_v6 = vrot.slane %v293_v59, 5  ;;  %v311_v7 = vld [vmem:[%s2875_s17 + $0x6] sm:$0x1]  ;;  %v333_v13 = vld [vmem:[%s2875_s17 + $0x17] sm:$0x1] }
  0x1e   : > { %v263_v9 = vsel %vm196_vm5, %v261_v45, %v262_v3  ;;  %v281_v10 = vsel %vm189_vm2, %v280_v56, %v279_v4  ;;  %v299_v11 = vsel %vm184_vm0, %v298_v63, %v290_v58  ;;  %v319_v12 = vrot.slane %v312_v1, 7  ;;  %v334_v14 = vld [vmem:[%s2875_s17 + $0x27] sm:$0x1]  ;;  %v335_v20 = vld [vmem:[%s2875_s17 + $0x37] sm:$0x1] }
  0x1f   : > { %264 = vrot.lane.b32.xlu1 %v263_v9, %s2821_s21  ;;  %v282_v15 = vsel %vm191_vm3, %v280_v56, %v281_v10  ;;  %v300_v16 = vsel %vm186_vm1, %v298_v63, %v299_v11  ;;  %v322_v17 = vrot.slane %v313_v2, 6  ;;  %v325_v18 = vrot.slane %v314_v8, 5  ;;  %v332_v19 = vld [vmem:[%s2875_s17 + $0x7] sm:$0x1]  ;;  %v354_v25 = vld [vmem:[%s2875_s17 + $0x18] sm:$0x1] }
  0x20   : > { %v284_v21 = vsel %vm194_vm4, %v283_v57, %v282_v15  ;;  %v302_v22 = vsel %vm189_vm2, %v301_v5, %v300_v16  ;;  %v320_v23 = vsel %vm184_vm0, %v319_v12, %v311_v7  ;;  %v340_v24 = vrot.slane %v333_v13, 7  ;;  %v355_v30 = vld [vmem:[%s2875_s17 + $0x28] sm:$0x1]  ;;  %v356_v31 = vld [vmem:[%s2875_s17 + $0x38] sm:$0x1] }
  0x21   : > { %v285_v26 = vsel %vm196_vm5, %v283_v57, %v284_v21  ;;  %v303_v27 = vsel %vm191_vm3, %v301_v5, %v302_v22  ;;  %v321_v28 = vsel %vm186_vm1, %v319_v12, %v320_v23  ;;  %v343_v29 = vrot.slane %v334_v14, 6  ;;  %v353_v36 = vld [vmem:[%s2875_s17 + $0x8] sm:$0x1]  ;;  %v375_v37 = vld [vmem:[%s2875_s17 + $0x19] sm:$0x1] }
  0x22   : > { %286 = vrot.lane.b32.xlu0 %v285_v26, %s2818_s18  ;;  %v305_v32 = vsel %vm194_vm4, %v304_v6, %v303_v27  ;;  %v323_v33 = vsel %vm189_vm2, %v322_v17, %v321_v28  ;;  %v341_v34 = vsel %vm184_vm0, %v340_v24, %v332_v19  ;;  %v346_v35 = vrot.slane %v335_v20, 5  ;;  %v376_v42 = vld [vmem:[%s2875_s17 + $0x29] sm:$0x1]  ;;  %v377_v43 = vld [vmem:[%s2875_s17 + $0x39] sm:$0x1] }
  0x23   : > { %v306_v38 = vsel %vm196_vm5, %v304_v6, %v305_v32  ;;  %v324_v39 = vsel %vm191_vm3, %v322_v17, %v323_v33  ;;  %v342_v40 = vsel %vm186_vm1, %v340_v24, %v341_v34  ;;  %v361_v41 = vrot.slane %v354_v25, 7  ;;  %v374_v48 = vld [vmem:[%s2875_s17 + $0x9] sm:$0x1]  ;;  %v396_v49 = vld [vmem:[%s2875_s17 + $0x1a] sm:$0x1] }
  0x24   : > { %307 = vrot.lane.b32.xlu1 %v306_v38, %s2820_s20  ;;  %v326_v44 = vsel %vm194_vm4, %v325_v18, %v324_v39  ;;  %v344_v45 = vsel %vm189_vm2, %v343_v29, %v342_v40  ;;  %v364_v46 = vrot.slane %v355_v30, 6  ;;  %v367_v47 = vrot.slane %v356_v31, 5  ;;  %v397_v54 = vld [vmem:[%s2875_s17 + $0x2a] sm:$0x1]  ;;  %v398_v55 = vld [vmem:[%s2875_s17 + $0x3a] sm:$0x1] }
  0x25   : > { %v327_v50 = vsel %vm196_vm5, %v325_v18, %v326_v44  ;;  %v345_v51 = vsel %vm191_vm3, %v343_v29, %v344_v45  ;;  %v362_v52 = vsel %vm184_vm0, %v361_v41, %v353_v36  ;;  %v382_v53 = vrot.slane %v375_v37, 7  ;;  %v395_v60 = vld [vmem:[%s2875_s17 + $0xa] sm:$0x1]  ;;  %v417_v61 = vld [vmem:[%s2875_s17 + $0x1b] sm:$0x1] }
  0x26   : > { %328 = vrot.lane.b32.xlu0 %v327_v50, %s2819_s19  ;;  %v347_v56 = vsel %vm194_vm4, %v346_v35, %v345_v51  ;;  %v363_v57 = vsel %vm186_vm1, %v361_v41, %v362_v52  ;;  %v385_v58 = vrot.slane %v376_v42, 6  ;;  %v388_v59 = vrot.slane %v377_v43, 5  ;;  %v418_v3 = vld [vmem:[%s2875_s17 + $0x2b] sm:$0x1]  ;;  %v419_v9 = vld [vmem:[%s2875_s17 + $0x3b] sm:$0x1] }
  0x27   : > { %v348_v62 = vsel %vm196_vm5, %v346_v35, %v347_v56  ;;  %v365_v63 = vsel %vm189_vm2, %v364_v46, %v363_v57  ;;  %v383_v1 = vsel %vm184_vm0, %v382_v53, %v374_v48  ;;  %v403_v2 = vrot.slane %v396_v49, 7  ;;  %v416_v8 = vld [vmem:[%s2875_s17 + $0xb] sm:$0x1]  ;;  %v438_v14 = vld [vmem:[%s2875_s17 + $0x1c] sm:$0x1] }
  0x28   : > { %349 = vrot.lane.b32.xlu1 %v348_v62, %s2821_s21  ;;  %v366_v4 = vsel %vm191_vm3, %v364_v46, %v365_v63  ;;  %v384_v5 = vsel %vm186_vm1, %v382_v53, %v383_v1  ;;  %v406_v6 = vrot.slane %v397_v54, 6  ;;  %v409_v7 = vrot.slane %v398_v55, 5  ;;  %v439_v19 = vld [vmem:[%s2875_s17 + $0x2c] sm:$0x1]  ;;  %v440_v20 = vld [vmem:[%s2875_s17 + $0x3c] sm:$0x1] }
  0x29   : > { %v368_v10 = vsel %vm194_vm4, %v367_v47, %v366_v4  ;;  %v386_v11 = vsel %vm189_vm2, %v385_v58, %v384_v5  ;;  %v404_v12 = vsel %vm184_vm0, %v403_v2, %v395_v60  ;;  %v424_v13 = vrot.slane %v417_v61, 7  ;;  %v437_v25 = vld [vmem:[%s2875_s17 + $0xc] sm:$0x1]  ;;  %v459_v26 = vld [vmem:[%s2875_s17 + $0x1d] sm:$0x1] }
  0x2a   : > { %v369_v15 = vsel %vm196_vm5, %v367_v47, %v368_v10  ;;  %v387_v16 = vsel %vm191_vm3, %v385_v58, %v386_v11  ;;  %v405_v17 = vsel %vm186_vm1, %v403_v2, %v404_v12  ;;  %v427_v18 = vrot.slane %v418_v3, 6  ;;  %v460_v31 = vld [vmem:[%s2875_s17 + $0x2d] sm:$0x1]  ;;  %v461_v32 = vld [vmem:[%s2875_s17 + $0x3d] sm:$0x1] }
  0x2b   : > { %370 = vrot.lane.b32.xlu0 %v369_v15, %s2818_s18  ;;  %v389_v21 = vsel %vm194_vm4, %v388_v59, %v387_v16  ;;  %v407_v22 = vsel %vm189_vm2, %v406_v6, %v405_v17  ;;  %v425_v23 = vsel %vm184_vm0, %v424_v13, %v416_v8  ;;  %v430_v24 = vrot.slane %v419_v9, 5  ;;  %v458_v37 = vld [vmem:[%s2875_s17 + $0xd] sm:$0x1]  ;;  %v480_v38 = vld [vmem:[%s2875_s17 + $0x1e] sm:$0x1] }
  0x2c   : > { %v390_v27 = vsel %vm196_vm5, %v388_v59, %v389_v21  ;;  %v408_v28 = vsel %vm191_vm3, %v406_v6, %v407_v22  ;;  %v426_v29 = vsel %vm186_vm1, %v424_v13, %v425_v23  ;;  %v445_v30 = vrot.slane %v438_v14, 7  ;;  %v481_v43 = vld [vmem:[%s2875_s17 + $0x2e] sm:$0x1]  ;;  %v482_v44 = vld [vmem:[%s2875_s17 + $0x3e] sm:$0x1] }
  0x2d   : > { %391 = vrot.lane.b32.xlu1 %v390_v27, %s2820_s20  ;;  %v410_v33 = vsel %vm194_vm4, %v409_v7, %v408_v28  ;;  %v428_v34 = vsel %vm189_vm2, %v427_v18, %v426_v29  ;;  %v448_v35 = vrot.slane %v439_v19, 6  ;;  %v451_v36 = vrot.slane %v440_v20, 5  ;;  %v479_v49 = vld [vmem:[%s2875_s17 + $0xe] sm:$0x1]  ;;  %v501_v50 = vld [vmem:[%s2875_s17 + $0x1f] sm:$0x1] }
  0x2e   : > { %v411_v39 = vsel %vm196_vm5, %v409_v7, %v410_v33  ;;  %v429_v40 = vsel %vm191_vm3, %v427_v18, %v428_v34  ;;  %v446_v41 = vsel %vm184_vm0, %v445_v30, %v437_v25  ;;  %v466_v42 = vrot.slane %v459_v26, 7  ;;  %v502_v55 = vld [vmem:[%s2875_s17 + $0x2f] sm:$0x1]  ;;  %v503_v61 = vld [vmem:[%s2875_s17 + $0x3f] sm:$0x1] }
  0x2f   : > { %412 = vrot.lane.b32.xlu0 %v411_v39, %s2819_s19  ;;  %v431_v45 = vsel %vm194_vm4, %v430_v24, %v429_v40  ;;  %v447_v46 = vsel %vm186_vm1, %v445_v30, %v446_v41  ;;  %v469_v47 = vrot.slane %v460_v31, 6  ;;  %v472_v48 = vrot.slane %v461_v32, 5  ;;  %v500_v60 = vld [vmem:[%s2875_s17 + $0xf] sm:$0x1]  ;;  %v524_v22 = vld [vmem:[#allocation2 + $0x18] sm:$0xf] }
  0x30   : > { %v432_v51 = vsel %vm196_vm5, %v430_v24, %v431_v45  ;;  %v449_v52 = vsel %vm189_vm2, %v448_v35, %v447_v46  ;;  %v467_v53 = vsel %vm184_vm0, %v466_v42, %v458_v37  ;;  %v487_v54 = vrot.slane %v480_v38, 7  ;;  %540 = vst [vmem:[#allocation3 + $0x30] sm:$0xf] %v524_v22 }
  0x31   : > { %433 = vrot.lane.b32.xlu1 %v432_v51, %s2821_s21  ;;  %v450_v56 = vsel %vm191_vm3, %v448_v35, %v449_v52  ;;  %v468_v57 = vsel %vm186_vm1, %v466_v42, %v467_v53  ;;  %v490_v58 = vrot.slane %v481_v43, 6  ;;  %v493_v59 = vrot.slane %v482_v44, 5 }
  0x32   : > { %v452_v62 = vsel %vm194_vm4, %v451_v36, %v450_v56  ;;  %v470_v63 = vsel %vm189_vm2, %v469_v47, %v468_v57  ;;  %v488_v1 = vsel %vm184_vm0, %v487_v54, %v479_v49  ;;  %v508_v2 = vrot.slane %v501_v50, 7 }
  0x33   : > { %v453_v3 = vsel %vm196_vm5, %v451_v36, %v452_v62  ;;  %v471_v4 = vsel %vm191_vm3, %v469_v47, %v470_v63  ;;  %v489_v5 = vsel %vm186_vm1, %v487_v54, %v488_v1  ;;  %v511_v6 = vrot.slane %v502_v55, 6 }
  0x34   : > { %454 = vrot.lane.b32.xlu0 %v453_v3, %s2818_s18  ;;  %v473_v7 = vsel %vm194_vm4, %v472_v48, %v471_v4  ;;  %v491_v8 = vsel %vm189_vm2, %v490_v58, %v489_v5  ;;  %v509_v9 = vsel %vm184_vm0, %v508_v2, %v500_v60  ;;  %v514_v10 = vrot.slane %v503_v61, 5  ;;  %v977_v4 = vld [vmem:[%s4486_s2] sm:$0xff] }
  0x35   : > { %v474_v11 = vsel %vm196_vm5, %v472_v48, %v473_v7  ;;  %v492_v12 = vsel %vm191_vm3, %v490_v58, %v491_v8  ;;  %v510_v13 = vsel %vm186_vm1, %v508_v2, %v509_v9  ;;  %v3053_v19 = vcombine.low %v2817_v0, %v2817_v0 }
  0x36   : > { %475 = vrot.lane.b32.xlu1 %v474_v11, %s2820_s20  ;;  %v494_v14 = vsel %vm194_vm4, %v493_v59, %v492_v12  ;;  %v512_v15 = vsel %vm189_vm2, %v511_v6, %v510_v13  ;;  %v3063_v21 = vcombine.high %v2817_v0, %v2817_v0  ;;  %v2830_v3 = vmov 0  }
  0x37   : > { %v495_v16 = vsel %vm196_vm5, %v493_v59, %v494_v14  ;;  %v513_v17 = vsel %vm191_vm3, %v511_v6, %v512_v15  ;;  %2805 = vset.pattern.permute.xlu0 %v2830_v3  ;;  %vm869_vm0 = vcmask 515072   ;;  %vm919_vm1 = vcmask 506880  }
  0x38   : > { %496 = vrot.lane.b32.xlu0 %v495_v16, %s2819_s19  ;;  %v515_v18 = vsel %vm194_vm4, %v514_v10, %v513_v17  ;;  %vm987_vm2 = vcmask 1043456   ;;  %vm983_vm3 = vcmask 293888   ;;  %vm2832_vm4 = vmmov 0  }
  0x39   : > { %v516_v20 = vsel %vm196_vm5, %v514_v10, %v515_v18  ;;  %vm1350_vm5 = vcmask 221184  }
  0x3a   : > { %517 = vrot.lane.b32.xlu1 %v516_v20, %s2821_s21 }
  0x3c   : > { %565 = vrot.lane.b32.xlu0 %v3053_v19, %s2822_s22 }
  0x3e   : > { %567 = vrot.lane.b32.xlu1 %v2817_v0, %s2822_s22 }
  0x40   : > { %615 = vrot.lane.b32.xlu0 %v2817_v0, %s2823_s23 }
  0x42   : > { %617 = vrot.lane.b32.xlu1 %v3063_v21, %s2823_s23 }
  0x44   : > { %665 = vrot.lane.b32.xlu0 %v3053_v19, %s2824_s24 }
  0x46   : > { %667 = vrot.lane.b32.xlu1 %v2817_v0, %s2824_s24 }
  0x48   : > { %715 = vrot.lane.b32.xlu0 %v2817_v0, %s2825_s25 }
  0x4a   : > { %717 = vrot.lane.b32.xlu1 %v3063_v21, %s2825_s25 }
  0x4c   : > { %765 = vrot.lane.b32.xlu0 %v3053_v19, %s2826_s26 }
  0x4e   : > { %767 = vrot.lane.b32.xlu1 %v2817_v0, %s2826_s26 }
  0x50   : > { %815 = vrot.lane.b32.xlu0 %v2817_v0, %s2827_s27 }
  0x52   : > { %817 = vrot.lane.b32.xlu1 %v3063_v21, %s2827_s27 }
  0x8b   : > { %v199_v23 = vpop.permute.xlu0 %198 }
  0x8c   : > { %202 = vst.msk [vmem:[#allocation2 + $0x4] sm:$0xf] %vm201_vm6, %v199_v23 }
  0x8d   : > { %v243_v24 = vpop.permute.xlu1 %242 }
  0x8f   : > { %v221_v25 = vpop.permute.xlu0 %220 }
  0x90   : > { %224 = vst.msk [vmem:[#allocation2 + $0x8] sm:$0xf] %vm223_vm7, %v221_v25 }
  0x91   : > { %v265_v26 = vpop.permute.xlu1 %264  ;;  %246 = vst.msk [vmem:[#allocation2 + $0x8] sm:$0xf] %vm245_vm8, %v243_v24 }
  0x92   : > { %268 = vst.msk [vmem:[#allocation2 + $0x8] sm:$0xf] %vm267_vm9, %v265_v26 }
  0x93   : > { %v521_v27 = vld [vmem:[#allocation2] sm:$0xff] }
  0x94   : > { %534 = vst [vmem:[#allocation3] sm:$0xf] %v521_v27  ;;  %v287_v28 = vpop.permute.xlu0 %286  ;;  %603 = vrot.lane.b32.xlu0 %v521_v27, %s2823_s23  ;;  %v599_v29 = vcombine.high %v521_v27, %v521_v27  ;;  %555 = vrot.lane.b32.xlu1 %v521_v27, %s2822_s22  ;;  %v549_v34 = vcombine.low %v521_v27, %v521_v27 }
  0x95   : > { %289 = vst.msk [vmem:[#allocation2 + $0x8] sm:$0xf] %vm201_vm6, %v287_v28 }
  0x96   : > { %v308_v30 = vpop.permute.xlu1 %307  ;;  %535 = vst [vmem:[#allocation3 + $0x8] sm:$0xf] %v599_v29 }
  0x97   : > { %310 = vst.msk [vmem:[#allocation2 + $0xc] sm:$0xf] %vm223_vm7, %v308_v30 }
  0x98   : > { %v329_v31 = vpop.permute.xlu0 %328  ;;  %703 = vrot.lane.b32.xlu0 %v521_v27, %s2825_s25  ;;  %655 = vrot.lane.b32.xlu1 %v521_v27, %s2824_s24 }
  0x99   : > { %331 = vst.msk [vmem:[#allocation2 + $0xc] sm:$0xf] %vm245_vm8, %v329_v31 }
  0x9a   : > { %v350_v32 = vpop.permute.xlu1 %349 }
  0x9b   : > { %352 = vst.msk [vmem:[#allocation2 + $0xc] sm:$0xf] %vm267_vm9, %v350_v32 }
  0x9c   : > { %803 = vrot.lane.b32.xlu0 %v521_v27, %s2827_s27  ;;  %755 = vrot.lane.b32.xlu1 %v521_v27, %s2826_s26 }
  0x9d   : > { %v371_v33 = vpop.permute.xlu0 %370 }
  0x9e   : > { %373 = vst.msk [vmem:[#allocation2 + $0xc] sm:$0xf] %vm201_vm6, %v371_v33 }
  0x9f   : > { %v392_v35 = vpop.permute.xlu1 %391 }
  0xa0   : > { %394 = vst.msk [vmem:[#allocation2 + $0x10] sm:$0xf] %vm223_vm7, %v392_v35  ;;  %855 = vrot.lane.b32.xlu1 %v521_v27, %s2828_s28  ;;  %553 = vrot.lane.b32.xlu0 %v549_v34, %s2822_s22 }
  0xa1   : > { %v413_v36 = vpop.permute.xlu0 %412 }
  0xa2   : > { %415 = vst.msk [vmem:[#allocation2 + $0x10] sm:$0xf] %vm245_vm8, %v413_v36 }
  0xa3   : > { %v434_v37 = vpop.permute.xlu1 %433 }
  0xa4   : > { %436 = vst.msk [vmem:[#allocation2 + $0x10] sm:$0xf] %vm267_vm9, %v434_v37  ;;  %903 = vrot.lane.b32.xlu1 %v521_v27, %s2829_s29  ;;  %653 = vrot.lane.b32.xlu0 %v549_v34, %s2824_s24 }
  0xa5   : > { %v3107_v38 = vld [vmem:[#allocation2 + $0x8] sm:$0xff] }
  0xa6   : > { %536 = vst [vmem:[#allocation3 + $0x10] sm:$0xf] %v3107_v38  ;;  %v455_v39 = vpop.permute.xlu0 %454  ;;  %v3112_v40 = vcombine.high %v3107_v38, %v3107_v38  ;;  %v550_v1 = vcombine.low %v3107_v38, %v3107_v38 }
  0xa7   : > { %457 = vst.msk [vmem:[#allocation2 + $0x10] sm:$0xf] %vm201_vm6, %v455_v39 }
  0xa8   : > { %v476_v41 = vpop.permute.xlu1 %475  ;;  %605 = vrot.lane.b32.xlu1 %v599_v29, %s2823_s23  ;;  %753 = vrot.lane.b32.xlu0 %v549_v34, %s2826_s26  ;;  %537 = vst [vmem:[#allocation3 + $0x18] sm:$0xf] %v3112_v40 }
  0xa9   : > { %478 = vst.msk [vmem:[#allocation2 + $0x14] sm:$0xf] %vm223_vm7, %v476_v41 }
  0xaa   : > { %v497_v42 = vpop.permute.xlu0 %496 }
  0xab   : > { %499 = vst.msk [vmem:[#allocation2 + $0x14] sm:$0xf] %vm245_vm8, %v497_v42 }
  0xac   : > { %v518_v43 = vpop.permute.xlu1 %517  ;;  %705 = vrot.lane.b32.xlu1 %v599_v29, %s2825_s25  ;;  %853 = vrot.lane.b32.xlu0 %v549_v34, %s2828_s28 }
  0xad   : > { %520 = vst.msk [vmem:[#allocation2 + $0x14] sm:$0xf] %vm267_vm9, %v518_v43 }
  0xae   : > { %v3123_v44 = vpop.permute.xlu0 %565 }
  0xb0   : > { %805 = vrot.lane.b32.xlu1 %v599_v29, %s2827_s27  ;;  %607 = vrot.lane.b32.xlu0 %v3107_v38, %s2823_s23  ;;  %v568_v45 = vpop.permute.xlu1 %567 }
  0xb1   : > { %v576_v46 = vsel %vm569_vm10, %v3123_v44, %v568_v45 }
  0xb2   : > { %590 = vst [vmem:[#allocation3 + $0x30] sm:$0xf0] %v576_v46  ;;  %v3130_v47 = vpop.permute.xlu0 %615 }
  0xb4   : > { %v523_v48 = vld [vmem:[#allocation2 + $0x10] sm:$0xff]  ;;  %905 = vrot.lane.b32.xlu1 %v599_v29, %s2829_s29  ;;  %v618_v49 = vpop.permute.xlu1 %617 }
  0xb5   : > { %v530_v50 = vcombine.high %v523_v48, %v523_v48  ;;  %538 = vst [vmem:[#allocation3 + $0x20] sm:$0xf] %v523_v48  ;;  %611 = vrot.lane.b32.xlu0 %v523_v48, %s2823_s23  ;;  %v626_v51 = vsel %vm619_vm11, %v3130_v47, %v618_v49  ;;  %v551_v2 = vcombine.low %v523_v48, %v523_v48 }
  0xb6   : > { %640 = vst [vmem:[#allocation3 + $0x68] sm:$0xf] %v626_v51  ;;  %v3136_v52 = vpop.permute.xlu0 %665 }
  0xb7   : > { %539 = vst [vmem:[#allocation3 + $0x28] sm:$0xf] %v530_v50 }
  0xb8   : > { %559 = vrot.lane.b32.xlu1 %v3107_v38, %s2822_s22  ;;  %v668_v53 = vpop.permute.xlu1 %667 }
  0xb9   : > { %707 = vrot.lane.b32.xlu0 %v3107_v38, %s2825_s25  ;;  %v676_v54 = vsel %vm669_vm12, %v3136_v52, %v668_v53 }
  0xba   : > { %690 = vst [vmem:[#allocation3 + $0x68] sm:$0xf0] %v676_v54  ;;  %v3144_v55 = vpop.permute.xlu0 %715 }
  0xbc   : > { %563 = vrot.lane.b32.xlu1 %v523_v48, %s2822_s22  ;;  %v718_v56 = vpop.permute.xlu1 %717 }
  0xbd   : > { %711 = vrot.lane.b32.xlu0 %v523_v48, %s2825_s25  ;;  %v726_v57 = vsel %vm719_vm13, %v3144_v55, %v718_v56 }
  0xbe   : > { %740 = vst [vmem:[#allocation3 + $0xa0] sm:$0xf] %v726_v57  ;;  %v3150_v58 = vpop.permute.xlu0 %765 }
  0xc0   : > { %659 = vrot.lane.b32.xlu1 %v3107_v38, %s2824_s24  ;;  %v768_v59 = vpop.permute.xlu1 %767 }
  0xc1   : > { %807 = vrot.lane.b32.xlu0 %v3107_v38, %s2827_s27  ;;  %v776_v60 = vsel %vm769_vm14, %v3150_v58, %v768_v59 }
  0xc2   : > { %790 = vst [vmem:[#allocation3 + $0xa0] sm:$0xf0] %v776_v60  ;;  %v3158_v61 = vpop.permute.xlu0 %815 }
  0xc4   : > { %663 = vrot.lane.b32.xlu1 %v523_v48, %s2824_s24  ;;  %v818_v62 = vpop.permute.xlu1 %817 }
  0xc5   : > { %811 = vrot.lane.b32.xlu0 %v523_v48, %s2827_s27  ;;  %v826_v63 = vsel %vm819_vm15, %v3158_v61, %v818_v62 }
  0xc6   : > { %840 = vst [vmem:[#allocation3 + $0xd8] sm:$0xf] %v826_v63 }
  0xc8   : > { %759 = vrot.lane.b32.xlu1 %v3107_v38, %s2826_s26 }
  0xc9   : > { %907 = vrot.lane.b32.xlu0 %v3107_v38, %s2829_s29 }
  0xcc   : > { %763 = vrot.lane.b32.xlu1 %v523_v48, %s2826_s26 }
  0xcd   : > { %557 = vrot.lane.b32.xlu0 %v550_v1, %s2822_s22 }
  0xd0   : > { %859 = vrot.lane.b32.xlu1 %v3107_v38, %s2828_s28 }
  0xd1   : > { %561 = vrot.lane.b32.xlu0 %v551_v2, %s2822_s22 }
  0xd4   : > { %609 = vrot.lane.b32.xlu1 %v3112_v40, %s2823_s23 }
  0xd5   : > { %657 = vrot.lane.b32.xlu0 %v550_v1, %s2824_s24 }
  0xd8   : > { %613 = vrot.lane.b32.xlu1 %v530_v50, %s2823_s23 }
  0xd9   : > { %661 = vrot.lane.b32.xlu0 %v551_v2, %s2824_s24 }
  0xdc   : > { %709 = vrot.lane.b32.xlu1 %v3112_v40, %s2825_s25 }
  0xdd   : > { %757 = vrot.lane.b32.xlu0 %v550_v1, %s2826_s26 }
  0xe0   : > { %713 = vrot.lane.b32.xlu1 %v530_v50, %s2825_s25 }
  0xe1   : > { %761 = vrot.lane.b32.xlu0 %v551_v2, %s2826_s26 }
  0xe4   : > { %809 = vrot.lane.b32.xlu1 %v3112_v40, %s2827_s27 }
  0xe5   : > { %857 = vrot.lane.b32.xlu0 %v550_v1, %s2828_s28 }
  0xe8   : > { %813 = vrot.lane.b32.xlu1 %v530_v50, %s2827_s27 }
  0xe9   : > { %861 = vrot.lane.b32.xlu0 %v551_v2, %s2828_s28 }
  0xec   : > { %911 = vrot.lane.b32.xlu1 %v523_v48, %s2829_s29 }
  0xed   : > { %909 = vrot.lane.b32.xlu0 %v3112_v40, %s2829_s29 }
  0xf0   : > { %865 = vrot.lane.b32.xlu1 %v3053_v19, %s2828_s28 }
  0xf1   : > { %863 = vrot.lane.b32.xlu0 %v523_v48, %s2828_s28 }
  0xf4   : > { %913 = vrot.lane.b32.xlu1 %v530_v50, %s2829_s29 }
  0xf5   : > { %867 = vrot.lane.b32.xlu0 %v2817_v0, %s2828_s28 }
  0xf8   : > { %917 = vrot.lane.b32.xlu1 %v3063_v21, %s2829_s29 }
  0xf9   : > { %915 = vrot.lane.b32.xlu0 %v2817_v0, %s2829_s29 }
  0xfd   : > { %980 = vperm.xlu0 %2805, %v977_v4  }
 0x106   : > { %v3206_v5 = vpop.permute.xlu1 %555  ;;  %v604_v6 = vpop.permute.xlu0 %603 }
 0x10a   : > { %v3208_v7 = vpop.permute.xlu1 %655  ;;  %v704_v8 = vpop.permute.xlu0 %703 }
 0x10e   : > { %v3210_v9 = vpop.permute.xlu1 %755  ;;  %v804_v10 = vpop.permute.xlu0 %803 }
 0x112   : > { %v3212_v11 = vpop.permute.xlu1 %855  ;;  %v554_v12 = vpop.permute.xlu0 %553 }
 0x113   : > { %v570_v0 = vsel %vm569_vm10, %v554_v12, %v3206_v5 }
 0x114   : > { %584 = vst [vmem:[#allocation3] sm:$0xf0] %v570_v0 }
 0x116   : > { %v904_v13 = vpop.permute.xlu1 %903  ;;  %v654_v14 = vpop.permute.xlu0 %653 }
 0x117   : > { %v670_v15 = vsel %vm669_vm12, %v654_v14, %v3208_v7 }
 0x118   : > { %684 = vst [vmem:[#allocation3 + $0x38] sm:$0xf0] %v670_v15 }
 0x11a   : > { %v606_v16 = vpop.permute.xlu1 %605  ;;  %v754_v17 = vpop.permute.xlu0 %753 }
 0x11b   : > { %v620_v18 = vsel %vm619_vm11, %v604_v6, %v606_v16  ;;  %v770_v19 = vsel %vm769_vm14, %v754_v17, %v3210_v9  ;;  %v942_v17 = vld [vmem:[#allocation3] sm:$0xff] }
 0x11c   : > { %634 = vst [vmem:[#allocation3 + $0x38] sm:$0xf] %v620_v18  ;;  %784 = vst [vmem:[#allocation3 + $0x70] sm:$0xf0] %v770_v19 }
 0x11e   : > { %v706_v20 = vpop.permute.xlu1 %705  ;;  %v854_v21 = vpop.permute.xlu0 %853 }
 0x11f   : > { %v720_v22 = vsel %vm719_vm13, %v704_v8, %v706_v20  ;;  %v870_v23 = vsel %vm869_vm0, %v854_v21, %v3212_v11 }
 0x120   : > { %734 = vst [vmem:[#allocation3 + $0x70] sm:$0xf] %v720_v22  ;;  %884 = vst [vmem:[#allocation3 + $0xa8] sm:$0xf0] %v870_v23 }
 0x122   : > { %v806_v24 = vpop.permute.xlu1 %805  ;;  %v608_v25 = vpop.permute.xlu0 %607 }
 0x123   : > { %v820_v26 = vsel %vm819_vm15, %v804_v10, %v806_v24  ;;  %v621_v27 = vsel %vm619_vm11, %v606_v16, %v608_v25  ;;  %v949_v0 = vld [vmem:[#allocation3 + $0x38] sm:$0xff] }
 0x124   : > { %834 = vst [vmem:[#allocation3 + $0xa8] sm:$0xf] %v820_v26  ;;  %635 = vst [vmem:[#allocation3 + $0x40] sm:$0xf] %v621_v27  ;;  %v2751_v19 = vpack.c.bf16 %v949_v0, %v942_v17 }
 0x126   : > { %v906_v28 = vpop.permute.xlu1 %905 }
 0x127   : > { %v920_v29 = vsel %vm919_vm1, %v904_v13, %v906_v28  ;;  %v612_v30 = vpop.permute.xlu0 %611 }
 0x128   : > { %934 = vst [vmem:[#allocation3 + $0xe0] sm:$0xf] %v920_v29 }
 0x12a   : > { %v560_v31 = vpop.permute.xlu1 %559 }
 0x12b   : > { %v708_v32 = vpop.permute.xlu0 %707 }
 0x12c   : > { %v721_v33 = vsel %vm719_vm13, %v706_v20, %v708_v32 }
 0x12d   : > { %735 = vst [vmem:[#allocation3 + $0x78] sm:$0xf] %v721_v33 }
 0x12e   : > { %v564_v34 = vpop.permute.xlu1 %563 }
 0x12f   : > { %v575_v35 = vsel %vm569_vm10, %v564_v34, %v3123_v44  ;;  %v3230_v36 = vpop.permute.xlu0 %711 }
 0x130   : > { %589 = vst [vmem:[#allocation3 + $0x28] sm:$0xf0] %v575_v35 }
 0x132   : > { %v660_v37 = vpop.permute.xlu1 %659 }
 0x133   : > { %v3232_v38 = vpop.permute.xlu0 %807 }
 0x134   : > { %v821_v39 = vsel %vm819_vm15, %v806_v24, %v3232_v38 }
 0x135   : > { %835 = vst [vmem:[#allocation3 + $0xb0] sm:$0xf] %v821_v39 }
 0x136   : > { %v664_v40 = vpop.permute.xlu1 %663 }
 0x137   : > { %v675_v41 = vsel %vm669_vm12, %v664_v40, %v3136_v52  ;;  %v3238_v42 = vpop.permute.xlu0 %811 }
 0x138   : > { %689 = vst [vmem:[#allocation3 + $0x60] sm:$0xf0] %v675_v41  ;;  %v963_v41 = vld [vmem:[#allocation3 + $0xa8] sm:$0xff] }
 0x13a   : > { %v3240_v43 = vpop.permute.xlu1 %759 }
 0x13b   : > { %v3242_v44 = vpop.permute.xlu0 %907 }
 0x13c   : > { %v921_v45 = vsel %vm919_vm1, %v906_v28, %v3242_v44 }
 0x13d   : > { %935 = vst [vmem:[#allocation3 + $0xe8] sm:$0xf] %v921_v45 }
 0x13e   : > { %v764_v46 = vpop.permute.xlu1 %763 }
 0x13f   : > { %v775_v48 = vsel %vm769_vm14, %v764_v46, %v3150_v58  ;;  %v558_v49 = vpop.permute.xlu0 %557 }
 0x140   : > { %789 = vst [vmem:[#allocation3 + $0x98] sm:$0xf0] %v775_v48  ;;  %v571_v50 = vsel %vm569_vm10, %v3206_v5, %v558_v49  ;;  %v572_v51 = vsel %vm569_vm10, %v558_v49, %v560_v31  ;;  %v956_v48 = vld [vmem:[#allocation3 + $0x70] sm:$0xff] }
 0x141   : > { %585 = vst [vmem:[#allocation3 + $0x8] sm:$0xf0] %v571_v50  ;;  %586 = vst [vmem:[#allocation3 + $0x10] sm:$0xf0] %v572_v51  ;;  %v2755_v50 = vpack.c.bf16 %v963_v41, %v956_v48 }
 0x142   : > { %v3251_v52 = vpop.permute.xlu1 %859 }
 0x143   : > { %v562_v53 = vpop.permute.xlu0 %561 }
 0x144   : > { %v573_v54 = vsel %vm569_vm10, %v560_v31, %v562_v53  ;;  %v574_v56 = vsel %vm569_vm10, %v562_v53, %v564_v34 }
 0x145   : > { %587 = vst [vmem:[#allocation3 + $0x18] sm:$0xf0] %v573_v54  ;;  %588 = vst [vmem:[#allocation3 + $0x20] sm:$0xf0] %v574_v56 }
 0x146   : > { %v610_v57 = vpop.permute.xlu1 %609 }
 0x147   : > { %v622_v58 = vsel %vm619_vm11, %v608_v25, %v610_v57  ;;  %v623_v59 = vsel %vm619_vm11, %v610_v57, %v612_v30  ;;  %v658_v60 = vpop.permute.xlu0 %657 }
 0x148   : > { %636 = vst [vmem:[#allocation3 + $0x48] sm:$0xf] %v622_v58  ;;  %637 = vst [vmem:[#allocation3 + $0x50] sm:$0xf] %v623_v59  ;;  %v671_v62 = vsel %vm669_vm12, %v3208_v7, %v658_v60  ;;  %v672_v63 = vsel %vm669_vm12, %v658_v60, %v660_v37  ;;  %v943_v14 = vld [vmem:[#allocation3 + $0x8] sm:$0xff]  ;;  %v944_v28 = vld [vmem:[#allocation3 + $0x10] sm:$0xff] }
 0x149   : > { %685 = vst [vmem:[#allocation3 + $0x40] sm:$0xf0] %v671_v62  ;;  %686 = vst [vmem:[#allocation3 + $0x48] sm:$0xf0] %v672_v63 }
 0x14a   : > { %v614_v1 = vpop.permute.xlu1 %613 }
 0x14b   : > { %v624_v2 = vsel %vm619_vm11, %v612_v30, %v614_v1  ;;  %v625_v3 = vsel %vm619_vm11, %v614_v1, %v3130_v47  ;;  %v662_v4 = vpop.permute.xlu0 %661  ;;  %v941_v1 = vld [vmem:[%s4485_s1] sm:$0xff] }
 0x14c   : > { %638 = vst [vmem:[#allocation3 + $0x58] sm:$0xf] %v624_v2  ;;  %639 = vst [vmem:[#allocation3 + $0x60] sm:$0xf] %v625_v3  ;;  %v673_v5 = vsel %vm669_vm12, %v660_v37, %v662_v4  ;;  %v674_v6 = vsel %vm669_vm12, %v662_v4, %v664_v40  ;;  %v945_v25 = vld [vmem:[#allocation3 + $0x18] sm:$0xff] }
 0x14d   : > { %687 = vst [vmem:[#allocation3 + $0x50] sm:$0xf0] %v673_v5  ;;  %688 = vst [vmem:[#allocation3 + $0x58] sm:$0xf0] %v674_v6  ;;  %v970_v5 = vld [vmem:[#allocation3 + $0xe0] sm:$0xf] }
 0x14e   : > { %v710_v7 = vpop.permute.xlu1 %709  ;;  %v947_v6 = vld [vmem:[#allocation3 + $0x28] sm:$0xff] }
 0x14f   : > { %v722_v8 = vsel %vm719_vm13, %v708_v32, %v710_v7  ;;  %v723_v10 = vsel %vm719_vm13, %v710_v7, %v3230_v36  ;;  %v758_v12 = vpop.permute.xlu0 %757 }
 0x150   : > { %736 = vst [vmem:[#allocation3 + $0x80] sm:$0xf] %v722_v8  ;;  %737 = vst [vmem:[#allocation3 + $0x88] sm:$0xf] %v723_v10  ;;  %v771_v47 = vsel %vm769_vm14, %v3210_v9, %v758_v12  ;;  %v772_v13 = vsel %vm769_vm14, %v758_v12, %v3240_v43  ;;  %v950_v15 = vld [vmem:[#allocation3 + $0x40] sm:$0xff]  ;;  %v951_v9 = vld [vmem:[#allocation3 + $0x48] sm:$0xff] }
 0x151   : > { %785 = vst [vmem:[#allocation3 + $0x78] sm:$0xf0] %v771_v47  ;;  %786 = vst [vmem:[#allocation3 + $0x80] sm:$0xf0] %v772_v13  ;;  %v2749_v16 = vpack.c.bf16 %v950_v15, %v943_v14  ;;  %v2759_v30 = vpack.c.bf16 %v951_v9, %v944_v28  ;;  %v946_v12 = vld [vmem:[#allocation3 + $0x20] sm:$0xff]  ;;  %v948_v47 = vld [vmem:[#allocation3 + $0x30] sm:$0xff] }
 0x152   : > { %v714_v18 = vpop.permute.xlu1 %713  ;;  %v955_v13 = vld [vmem:[#allocation3 + $0x68] sm:$0xff]  ;;  %v2808_v15 = vld [vmem:[#allocation2 + $0x18] sm:$0xff] }
 0x153   : > { %v724_v20 = vsel %vm719_vm13, %v3230_v36, %v714_v18  ;;  %v725_v21 = vsel %vm719_vm13, %v714_v18, %v3144_v55  ;;  %2750 = vmatprep.subr.bf16.mxu0 %v2749_v16  ;;  %v762_v22 = vpop.permute.xlu0 %761  ;;  %v954_v60 = vld [vmem:[#allocation3 + $0x60] sm:$0xff] }
 0x154   : > { %738 = vst [vmem:[#allocation3 + $0x90] sm:$0xf] %v724_v20  ;;  %739 = vst [vmem:[#allocation3 + $0x98] sm:$0xf] %v725_v21  ;;  %v773_v23 = vsel %vm769_vm14, %v3240_v43, %v762_v22  ;;  %v774_v24 = vsel %vm769_vm14, %v762_v22, %v764_v46  ;;  %2752 = vmatpush1.bf16.msra.mxu0 %v2751_v19  ;;  %v952_v26 = vld [vmem:[#allocation3 + $0x50] sm:$0xff]  ;;  %v953_v2 = vld [vmem:[#allocation3 + $0x58] sm:$0xff]  ;;  %v2765_v10 = vpack.c.bf16 %v954_v60, %v947_v6 }
 0x155   : > { %787 = vst [vmem:[#allocation3 + $0x88] sm:$0xf0] %v773_v23  ;;  %788 = vst [vmem:[#allocation3 + $0x90] sm:$0xf0] %v774_v24  ;;  %v2757_v27 = vpack.c.bf16 %v952_v26, %v945_v25  ;;  %v2767_v0 = vpack.c.bf16 %v953_v2, %v946_v12  ;;  %v2774_v21 = vpack.c.bf16 %v955_v13, %v948_v47  ;;  %v2831_v24 = vmov 0.0|0.0  }
 0x156   : > { %v810_v29 = vpop.permute.xlu1 %809 }
 0x157   : > { %v822_v55 = vsel %vm819_vm15, %v3232_v38, %v810_v29  ;;  %v823_v31 = vsel %vm819_vm15, %v810_v29, %v3238_v42  ;;  %2758 = vmatprep.subr.bf16.mxu1 %v2757_v27  ;;  %v858_v32 = vpop.permute.xlu0 %857  ;;  %v962_v27 = vld [vmem:[#allocation3 + $0xa0] sm:$0xff] }
 0x158   : > { %836 = vst [vmem:[#allocation3 + $0xb8] sm:$0xf] %v822_v55  ;;  %837 = vst [vmem:[#allocation3 + $0xc0] sm:$0xf] %v823_v31  ;;  %v871_v33 = vsel %vm869_vm0, %v3212_v11, %v858_v32  ;;  %v872_v34 = vsel %vm869_vm0, %v858_v32, %v3251_v52  ;;  %2760 = vmatpush1.bf16.msra.mxu1 %v2759_v30  ;;  %v957_v46 = vld [vmem:[#allocation3 + $0x78] sm:$0xff]  ;;  %v958_v59 = vld [vmem:[#allocation3 + $0x80] sm:$0xff] }
 0x159   : > { %885 = vst [vmem:[#allocation3 + $0xb0] sm:$0xf0] %v871_v33  ;;  %886 = vst [vmem:[#allocation3 + $0xb8] sm:$0xf0] %v872_v34  ;;  %v2833_v32 = vmov 1966171168   ;;  %v1297_v34 = vlaneseq }
 0x15a   : > { %v814_v35 = vpop.permute.xlu1 %813  ;;  %v1295_v33 = vunpack.c.l.s4 %v2833_v32 }
 0x15b   : > { %v824_v36 = vsel %vm819_vm15, %v3238_v42, %v814_v35  ;;  %v825_v37 = vsel %vm819_vm15, %v814_v35, %v3158_v61  ;;  %v862_v38 = vpop.permute.xlu0 %861  ;;  %v961_v18 = vld [vmem:[#allocation3 + $0x98] sm:$0xff] }
 0x15c   : > { %838 = vst [vmem:[#allocation3 + $0xc8] sm:$0xf] %v824_v36  ;;  %839 = vst [vmem:[#allocation3 + $0xd0] sm:$0xf] %v825_v37  ;;  %v873_v39 = vsel %vm869_vm0, %v3251_v52, %v862_v38  ;;  %v959_v56 = vld [vmem:[#allocation3 + $0x88] sm:$0xff]  ;;  %v960_v9 = vld [vmem:[#allocation3 + $0x90] sm:$0xff]  ;;  %v1296_v35 = vunpack.c.0.s8 %v1295_v33 }
 0x15d   : > { %887 = vst [vmem:[#allocation3 + $0xc0] sm:$0xf0] %v873_v39  ;;  %v1298_v36 = vshrl.u32 %v1297_v34, 7 }
 0x15e   : > { %v912_v11 = vpop.permute.xlu1 %911 }
 0x15f   : > { %v910_v40 = vpop.permute.xlu0 %909 }
 0x160   : > { %v922_v43 = vsel %vm919_vm1, %v3242_v44, %v910_v40  ;;  %v923_v45 = vsel %vm919_vm1, %v910_v40, %v912_v11  ;;  %v964_v42 = vld [vmem:[#allocation3 + $0xb0] sm:$0xff]  ;;  %v965_v52 = vld [vmem:[#allocation3 + $0xb8] sm:$0xff]  ;;  %v971_v44 = vld [vmem:[#allocation3 + $0xe8] sm:$0xf] }
 0x161   : > { %936 = vst [vmem:[#allocation3 + $0xf0] sm:$0xf] %v922_v43  ;;  %937 = vst [vmem:[#allocation3 + $0xf8] sm:$0xf] %v923_v45  ;;  %v2753_v61 = vpack.c.bf16 %v964_v42, %v957_v46  ;;  %v2763_v63 = vpack.c.bf16 %v965_v52, %v958_v59  ;;  %v3324_v45 = vsub.s32 0, %v1298_v36 }
 0x162   : > { %v866_v49 = vpop.permute.xlu1 %865 }
 0x163   : > { %2754 = vmatprep.subr.bf16.mxu0 %v2753_v61  ;;  %v864_v51 = vpop.permute.xlu0 %863 }
 0x164   : > { %v874_v53 = vsel %vm869_vm0, %v862_v38, %v864_v51  ;;  %v875_v54 = vsel %vm869_vm0, %v864_v51, %v866_v49  ;;  %2756 = vmatpush1.bf16.msra.mxu0 %v2755_v50  ;;  %v966_v57 = vld [vmem:[#allocation3 + $0xc0] sm:$0xff]  ;;  %v3318_v38 = vsub.s32 %v1296_v35, %v1298_v36 }
 0x165   : > { %888 = vst [vmem:[#allocation3 + $0xc8] sm:$0xf0] %v874_v53  ;;  %889 = vst [vmem:[#allocation3 + $0xd0] sm:$0xf0] %v875_v54  ;;  %2715 = vmatprep.subr.msk.mxu0 %vm987_vm2, %v971_v44  ;;  %v2761_v58 = vpack.c.bf16 %v966_v57, %v959_v56 }
 0x166   : > { %v914_v62 = vpop.permute.xlu1 %913 }
 0x167   : > { %v924_v3 = vsel %vm919_vm1, %v912_v11, %v914_v62  ;;  %2762 = vmatprep.subr.bf16.mxu1 %v2761_v58  ;;  %v868_v4 = vpop.permute.xlu0 %867 }
 0x168   : > { %938 = vst [vmem:[#allocation3 + $0x100] sm:$0xf] %v924_v3  ;;  %v876_v7 = vsel %vm869_vm0, %v866_v49, %v868_v4  ;;  %2716 = vmatpush1.msk.msra.mxu0 %vm987_vm2, %v970_v5  ;;  %2764 = vmatpush1.bf16.msra.mxu1 %v2763_v63  ;;  %v973_v8 = vld [vmem:[#allocation3 + $0xf8] sm:$0xf]  ;;  %v972_v17 = vld [vmem:[#allocation3 + $0xf0] sm:$0xf] }
 0x169   : > { %890 = vst [vmem:[#allocation3 + $0xd8] sm:$0xf0] %v876_v7  ;;  %2717 = vmatmul.mubr.msk.f32.vlgmr.msra.gmra.mrb[0].mxu0 %vm983_vm3, %v941_v1  ;;  %2718 = vmatprep.subr.msk.mxu1 %vm987_vm2, %v973_v8 }
 0x16a   : > { %2766 = vmatprep.subr.bf16.mxu0 %v2765_v10  ;;  %v918_v14 = vpop.permute.xlu1 %917  ;;  %1215 = vmatprep.mubr.f32.mxu0 %v2808_v15 }
 0x16b   : > { %2768 = vmatpush1.bf16.msra.mxu0 %v2767_v0  ;;  %v916_v16 = vpop.permute.xlu0 %915 }
 0x16c   : > { %v925_v19 = vsel %vm919_vm1, %v914_v62, %v916_v16  ;;  %2719 = vmatpush1.msk.msra.mxu1 %vm987_vm2, %v972_v17  ;;  %v926_v20 = vsel %vm919_vm1, %v916_v16, %v918_v14  ;;  %v968_v22 = vld [vmem:[#allocation3 + $0xd0] sm:$0xff]  ;;  %v967_v23 = vld [vmem:[#allocation3 + $0xc8] sm:$0xff] }
 0x16d   : > { %939 = vst [vmem:[#allocation3 + $0x108] sm:$0xf] %v925_v19  ;;  %940 = vst [vmem:[#allocation3 + $0x110] sm:$0xf] %v926_v20  ;;  %2720 = vmatmul.mubr.msk.f32.vlgmr.msra.gmra.mrb[0].mxu1 %vm983_vm3, %v941_v1  ;;  %2773 = vmatprep.subr.bf16.mxu1 %v2831_v24  ;;  %v2769_v25 = vpack.c.bf16 %v968_v22, %v961_v18  ;;  %v2771_v26 = vpack.c.bf16 %v967_v23, %v960_v9 }
 0x16e   : > { %2775 = vmatpush3.bf16.msra.mxu1 %v2774_v21  ;;  %2746 = vmatprep.mubr.msk.f32.mxu1 %vm2832_vm4, %v2808_v15 }
 0x16f   : > { %2770 = vmatprep.subr.bf16.mxu0 %v2769_v25  ;;  %2776 = vmatprep.subr.bf16.mxu1 %v2831_v24  ;;  %v974_v31 = vld [vmem:[#allocation3 + $0x100] sm:$0xf] }
 0x170   : > { %2772 = vmatpush1.bf16.msra.mxu0 %v2771_v26  ;;  %v969_v28 = vld [vmem:[#allocation3 + $0xd8] sm:$0xff] }
 0x171   : > { %v2777_v29 = vpack.c.bf16 %v969_v28, %v962_v27 }
 0x173   : > { %2778 = vmatpush3.bf16.msra.mxu1 %v2777_v29 }
 0x174   : > { %v975_v30 = vld [vmem:[#allocation3 + $0x108] sm:$0xf]  ;;  %2744 = vmatprep.subr.mxu1 %v2808_v15  ;;  %v976_v55 = vld [vmem:[#allocation3 + $0x110] sm:$0xf] }
 0x175   : > { %2721 = vmatprep.subr.msk.mxu0 %vm987_vm2, %v975_v30 }
 0x176   : > { %2722 = vmatpush1.msk.msra.mxu0 %vm987_vm2, %v974_v31 }
 0x177   : > { %2723 = vmatmul.mubr.msk.f32.vlgmr.msra.gmra.mrb[2].mxu0 %vm983_vm3, %v941_v1  ;;  %2745 = vmatpush3.msk.msra.mxu1 %vm987_vm2, %v976_v55 }
 0x178   : > { %2747 = vmatmul.mubr.msk.f32.vlgmr.msra.gmra.mrb[2].mxu1 %vm983_vm3, %v941_v1 }
 0x17c   : > { %v3316_v37 = vpop.permute.xlu0 %980 }
 0x23c   : > { %v1075_v39 = vpop.f32.mrb[0].mxu0 }
 0x23d   : > { %v1077_v11 = vpop.f32.mrb[1].mxu0  ;;  %v1076_v40 = vadd.f32 %v1075_v39, %v3316_v37 }
 0x23e   : > { %v1078_v41 = vadd.f32 %v1077_v11, %v3316_v37 }
 0x23f   : > { %v1300_v43 = vrot.slane %v1076_v40, %v3318_v38  ;;  %v1293_v51 = vcombine.high %v1076_v40, %v1076_v40 }
 0x240   : > { %v1488_v46 = vcombine.high %v1078_v41, %v1078_v41  ;;  %v1495_v42 = vrot.slane %v1078_v41, %v3318_v38  ;;  %v1146_v61 = vpop.f32.mrb[0].mxu1 }
 0x241   : > { %v1147_v48 = vadd.f32 %v1146_v61, %v3316_v37  ;;  %v1148_v49 = vpop.f32.mrb[1].mxu1  ;;  %v1316_v50 = vrot.slane %v1300_v43, %v3318_v38  ;;  %v1308_v52 = vcombine.high %v1300_v43, %v1300_v43  ;;  %v3375_v10 = vrot.slane %v1293_v51, %v3318_v38 }
 0x242   : > { %v1502_v53 = vrot.slane %v1488_v46, %v3318_v38  ;;  %v1503_v54 = vcombine.high %v1495_v42, %v1495_v42  ;;  %v1511_v44 = vrot.slane %v1495_v42, %v3318_v38  ;;  %v1149_v56 = vadd.f32 %v1148_v49, %v3316_v37 }
 0x243   : > { %v1682_v57 = vcombine.high %v1147_v48, %v1147_v48  ;;  %v1689_v58 = vrot.slane %v1147_v48, %v3318_v38  ;;  %v1362_v59 = vrot.slane %v1316_v50, %v3324_v45  ;;  %1351 = vst.msk [vmem:[%s3329_s10] sm:$0x1] %vm1350_vm5, %v1316_v50  ;;  %v3342_v60 = vrot.slane %v1308_v52, %v3318_v38 }
 0x244   : > { %v1504_v62 = vcombine.high %v1502_v53, %v1502_v53  ;;  %v3345_v63 = vrot.slane %v1502_v53, %v3318_v38  ;;  %v3348_v1 = vrot.slane %v1503_v54, %v3318_v38  ;;  %v3350_v2 = vcombine.high %v1511_v44, %v1511_v44  ;;  %1545 = vst.msk [vmem:[%s3329_s10 + $0x4] sm:$0x1] %vm1350_vm5, %v1511_v44 }
 0x245   : > { %v1696_v3 = vrot.slane %v1682_v57, %v3318_v38  ;;  %v1697_v4 = vcombine.high %v1689_v58, %v1689_v58  ;;  %v1705_v5 = vrot.slane %v1689_v58, %v3318_v38  ;;  %v1876_v6 = vcombine.high %v1149_v56, %v1149_v56  ;;  %1423 = vrot.lane.b32.xlu0 %v1362_v59, %s2827_s27 }
 0x246   : > { %1352 = vst.msk [vmem:[%s3329_s10 + $0x20] sm:$0x1] %vm1350_vm5, %v3342_v60  ;;  %v3361_v7 = vrot.slane %v1504_v62, %v3318_v38  ;;  %1546 = vst.msk [vmem:[%s3329_s10 + $0x24] sm:$0x1] %vm1350_vm5, %v3348_v1  ;;  %v1883_v8 = vrot.slane %v1149_v56, %v3318_v38  ;;  %1391 = vrot.lane.b32.xlu1 %v1362_v59, %s2824_s24  ;;  %v1366_v17 = vrot.slane %v3342_v60, %v3324_v45 }
 0x247   : > { %1547 = vst.msk [vmem:[%s3329_s10 + $0x44] sm:$0x1] %vm1350_vm5, %v3350_v2  ;;  %1549 = vst.msk [vmem:[%s3329_s10 + $0x84] sm:$0x1] %vm1350_vm5, %v3345_v63  ;;  %v1698_v12 = vcombine.high %v1696_v3, %v1696_v3  ;;  %v3378_v0 = vrot.slane %v1696_v3, %v3318_v38  ;;  %v3381_v47 = vrot.slane %v1697_v4, %v3318_v38 }
 0x248   : > { %v3383_v13 = vcombine.high %v1705_v5, %v1705_v5  ;;  %1739 = vst.msk [vmem:[%s3329_s10 + $0x8] sm:$0x1] %vm1350_vm5, %v1705_v5  ;;  %1550 = vst.msk [vmem:[%s3329_s10 + $0xa4] sm:$0x1] %vm1350_vm5, %v3361_v7  ;;  %v1890_v14 = vrot.slane %v1876_v6, %v3318_v38  ;;  %v1891_v15 = vcombine.high %v1883_v8, %v1883_v8 }
 0x249   : > { %v3392_v16 = vrot.slane %v1883_v8, %v3318_v38  ;;  %v3397_v18 = vrot.slane %v1698_v12, %v3318_v38  ;;  %1740 = vst.msk [vmem:[%s3329_s10 + $0x28] sm:$0x1] %vm1350_vm5, %v3381_v47  ;;  %1743 = vst.msk [vmem:[%s3329_s10 + $0x88] sm:$0x1] %vm1350_vm5, %v3378_v0  ;;  %1455 = vrot.lane.b32.xlu0 %v1362_v59, %s2834_s11  ;;  %v3409_v19 = vcombine.high %v1316_v50, %v1316_v50 }
 0x24a   : > { %1741 = vst.msk [vmem:[%s3329_s10 + $0x48] sm:$0x1] %vm1350_vm5, %v3383_v13  ;;  %v1892_v20 = vcombine.high %v1890_v14, %v1890_v14  ;;  %v3412_v21 = vrot.slane %v1890_v14, %v3318_v38  ;;  %v3415_v22 = vrot.slane %v1891_v15, %v3318_v38  ;;  %1393 = vrot.lane.b32.xlu1 %v1366_v17, %s2824_s24  ;;  %v1217_v23 = vpop.f32.mrb[2].mxu0 }
 0x24b   : > { %v3419_v9 = vcombine.high %v3392_v16, %v3392_v16  ;;  %1933 = vst.msk [vmem:[%s3329_s10 + $0xc] sm:$0x1] %vm1350_vm5, %v3392_v16  ;;  %1744 = vst.msk [vmem:[%s3329_s10 + $0xa8] sm:$0x1] %vm1350_vm5, %v3397_v18  ;;  %v1218_v24 = vadd.f32 %v1217_v23, %v3316_v37  ;;  %v1219_v25 = vpop.f32.mrb[3].mxu0  ;;  %v1288_v26 = vpop.f32.mrb[2].mxu1  ;;  %v3430_v27 = vrot.slane %v1705_v5, %v3324_v45 }
 0x24c   : > { %1353 = vst.msk [vmem:[%s3329_s10 + $0x40] sm:$0x1] %vm1350_vm5, %v3409_v19  ;;  %v3437_v28 = vrot.slane %v3375_v10, %v3318_v38  ;;  %v3440_v29 = vrot.slane %v1892_v20, %v3318_v38  ;;  %1934 = vst.msk [vmem:[%s3329_s10 + $0x2c] sm:$0x1] %vm1350_vm5, %v3415_v22  ;;  %v1220_v30 = vadd.f32 %v1219_v25, %v3316_v37  ;;  %v2748_v32 = vpop.f32.mrb[3].mxu1 }
 0x24d   : > { %1935 = vst.msk [vmem:[%s3329_s10 + $0x4c] sm:$0x1] %vm1350_vm5, %v3419_v9  ;;  %1937 = vst.msk [vmem:[%s3329_s10 + $0x8c] sm:$0x1] %vm1350_vm5, %v3412_v21  ;;  %v1289_v55 = vadd.f32 %v1288_v26, %v3316_v37  ;;  %v3454_v31 = vrot.slane %v1511_v44, %v3324_v45  ;;  %v2070_v33 = vcombine.high %v1218_v24, %v1218_v24  ;;  %1779 = vrot.lane.b32.xlu0 %v3430_v27, %s2824_s24 }
 0x24e   : > { %v2077_v34 = vrot.slane %v1218_v24, %v3318_v38  ;;  %v3461_v35 = vrot.slane %v3381_v47, %v3324_v45  ;;  %1355 = vst.msk [vmem:[%s3329_s10 + $0x80] sm:$0x1] %vm1350_vm5, %v3437_v28  ;;  %v3468_v36 = vcombine.high %v3342_v60, %v3342_v60  ;;  %1938 = vst.msk [vmem:[%s3329_s10 + $0xac] sm:$0x1] %vm1350_vm5, %v3440_v29  ;;  %1425 = vrot.lane.b32.xlu1 %v1366_v17, %s2827_s27 }
 0x24f   : > { %v2264_v37 = vcombine.high %v1220_v30, %v1220_v30  ;;  %v2271_v39 = vrot.slane %v1220_v30, %v3318_v38  ;;  %v2458_v11 = vcombine.high %v1289_v55, %v1289_v55  ;;  %v3477_v40 = vrot.slane %v3348_v1, %v3324_v45 }
 0x250   : > { %v2084_v41 = vrot.slane %v2070_v33, %v3318_v38  ;;  %v2085_v43 = vcombine.high %v2077_v34, %v2077_v34  ;;  %v3481_v46 = vrot.slane %v2077_v34, %v3318_v38  ;;  %v2465_v42 = vrot.slane %v1289_v55, %v3318_v38  ;;  %1354 = vst.msk [vmem:[%s3329_s10 + $0x60] sm:$0x1] %vm1350_vm5, %v3468_v36 }
 0x251   : > { %v2278_v61 = vrot.slane %v2264_v37, %v3318_v38  ;;  %v2279_v48 = vcombine.high %v2271_v39, %v2271_v39  ;;  %v3489_v49 = vrot.slane %v2271_v39, %v3318_v38  ;;  %v2472_v50 = vrot.slane %v2458_v11, %v3318_v38  ;;  %1811 = vrot.lane.b32.xlu0 %v3430_v27, %s2827_s27 }
 0x252   : > { %v2086_v51 = vcombine.high %v2084_v41, %v2084_v41  ;;  %v3493_v52 = vrot.slane %v2084_v41, %v3318_v38  ;;  %v3496_v53 = vrot.slane %v2085_v43, %v3318_v38  ;;  %v3500_v54 = vcombine.high %v3481_v46, %v3481_v46  ;;  %2127 = vst.msk [vmem:[%s3329_s10 + $0x10] sm:$0x1] %vm1350_vm5, %v3481_v46 }
 0x253   : > { %v2280_v44 = vcombine.high %v2278_v61, %v2278_v61  ;;  %v3508_v56 = vrot.slane %v2278_v61, %v3318_v38  ;;  %v3511_v57 = vrot.slane %v2279_v48, %v3318_v38  ;;  %v3515_v58 = vcombine.high %v3489_v49, %v3489_v49  ;;  %2321 = vst.msk [vmem:[%s3329_s10 + $0x14] sm:$0x1] %vm1350_vm5, %v3489_v49 }
 0x254   : > { %1457 = vrot.lane.b32.xlu1 %v1366_v17, %s2834_s11  ;;  %v3522_v59 = vrot.slane %v2086_v51, %v3318_v38  ;;  %2128 = vst.msk [vmem:[%s3329_s10 + $0x30] sm:$0x1] %vm1350_vm5, %v3496_v53  ;;  %2129 = vst.msk [vmem:[%s3329_s10 + $0x50] sm:$0x1] %vm1350_vm5, %v3500_v54  ;;  %v2473_v60 = vcombine.high %v2465_v42, %v2465_v42  ;;  %v2474_v62 = vcombine.high %v2472_v50, %v2472_v50 }
 0x255   : > { %2131 = vst.msk [vmem:[%s3329_s10 + $0x90] sm:$0x1] %vm1350_vm5, %v3493_v52  ;;  %v3534_v3 = vrot.slane %v2465_v42, %v3318_v38  ;;  %v3537_v4 = vrot.slane %v2280_v44, %v3318_v38  ;;  %2322 = vst.msk [vmem:[%s3329_s10 + $0x34] sm:$0x1] %vm1350_vm5, %v3511_v57  ;;  %v3549_v5 = vrot.slane %v2472_v50, %v3318_v38  ;;  %1843 = vrot.lane.b32.xlu0 %v3430_v27, %s2834_s11 }
 0x256   : > { %2323 = vst.msk [vmem:[%s3329_s10 + $0x54] sm:$0x1] %vm1350_vm5, %v3515_v58  ;;  %2325 = vst.msk [vmem:[%s3329_s10 + $0x94] sm:$0x1] %vm1350_vm5, %v3508_v56  ;;  %v1309_v6 = vcombine.high %v3375_v10, %v3375_v10  ;;  %v3555_v8 = vrot.slane %v3383_v13, %v3324_v45  ;;  %v3561_v12 = vrot.slane %v2473_v60, %v3318_v38 }
 0x257   : > { %2132 = vst.msk [vmem:[%s3329_s10 + $0xb0] sm:$0x1] %vm1350_vm5, %v3522_v59  ;;  %v3564_v14 = vrot.slane %v2474_v62, %v3318_v38  ;;  %v3568_v15 = vcombine.high %v3534_v3, %v3534_v3  ;;  %2515 = vst.msk [vmem:[%s3329_s10 + $0x18] sm:$0x1] %vm1350_vm5, %v3534_v3  ;;  %v3577_v10 = vrot.slane %v3378_v0, %v3324_v45 }
 0x258   : > { %2326 = vst.msk [vmem:[%s3329_s10 + $0xb4] sm:$0x1] %vm1350_vm5, %v3537_v4  ;;  %2519 = vst.msk [vmem:[%s3329_s10 + $0x98] sm:$0x1] %vm1350_vm5, %v3549_v5  ;;  %1781 = vrot.lane.b32.xlu1 %v3461_v35, %s2824_s24  ;;  %v3588_v13 = vrot.slane %v1309_v6, %v3318_v38  ;;  %v1729_v17 = vcombine.high %v3381_v47, %v3381_v47  ;;  %v3594_v20 = vrot.slane %v3397_v18, %v3324_v45 }
 0x259   : > { %v3598_v23 = vrot.slane %v3350_v2, %v3324_v45  ;;  %2516 = vst.msk [vmem:[%s3329_s10 + $0x38] sm:$0x1] %vm1350_vm5, %v3561_v12  ;;  %2517 = vst.msk [vmem:[%s3329_s10 + $0x58] sm:$0x1] %vm1350_vm5, %v3568_v15  ;;  %v3611_v38 = vrot.slane %v3345_v63, %v3324_v45  ;;  %v1535_v47 = vcombine.high %v3348_v1, %v3348_v1  ;;  %1585 = vrot.lane.b32.xlu0 %v3454_v31, %s2824_s24 }
 0x25a   : > { %2520 = vst.msk [vmem:[%s3329_s10 + $0xb8] sm:$0x1] %vm1350_vm5, %v3564_v14  ;;  %v3617_v2 = vrot.slane %v3361_v7, %v3324_v45  ;;  %v3621_v24 = vrot.slane %v3419_v9, %v3324_v45  ;;  %v3625_v25 = vrot.slane %v3392_v16, %v3324_v45  ;;  %1356 = vst.msk [vmem:[%s3329_s10 + $0xa0] sm:$0x1] %vm1350_vm5, %v3588_v13 }
 0x25b   : > { %1742 = vst.msk [vmem:[%s3329_s10 + $0x68] sm:$0x1] %vm1350_vm5, %v1729_v17  ;;  %v3633_v1 = vrot.slane %v1729_v17, %v3324_v45  ;;  %v3637_v26 = vrot.slane %v3412_v21, %v3324_v45  ;;  %v1923_v9 = vcombine.high %v3415_v22, %v3415_v22  ;;  %1548 = vst.msk [vmem:[%s3329_s10 + $0x64] sm:$0x1] %vm1350_vm5, %v1535_v47 }
 0x25c   : > { %v3646_v16 = vrot.slane %v1535_v47, %v3324_v45  ;;  %v3650_v27 = vrot.slane %v3440_v29, %v3324_v45  ;;  %v1339_v30 = vcombine.high %v3437_v28, %v3437_v28  ;;  %v1341_v55 = vcombine.high %v3588_v13, %v3588_v13  ;;  %1813 = vrot.lane.b32.xlu1 %v3461_v35, %s2827_s27 }
 0x25d   : > { %1936 = vst.msk [vmem:[%s3329_s10 + $0x6c] sm:$0x1] %vm1350_vm5, %v1923_v9  ;;  %v3661_v32 = vrot.slane %v1923_v9, %v3324_v45  ;;  %v1728_v33 = vcombine.high %v3378_v0, %v3378_v0  ;;  %v1730_v34 = vcombine.high %v3397_v18, %v3397_v18  ;;  %v1534_v37 = vcombine.high %v3345_v63, %v3345_v63 }
 0x25e   : > { %v3670_v39 = vrot.slane %v1339_v30, %v3324_v45  ;;  %1357 = vst.msk [vmem:[%s3329_s10 + $0xc0] sm:$0x1] %vm1350_vm5, %v1339_v30  ;;  %v3675_v11 = vrot.slane %v1341_v55, %v3324_v45  ;;  %1358 = vst.msk [vmem:[%s3329_s10 + $0xe0] sm:$0x1] %vm1350_vm5, %v1341_v55  ;;  %v1536_v0 = vcombine.high %v3361_v7, %v3361_v7  ;;  %1617 = vrot.lane.b32.xlu0 %v3454_v31, %s2827_s27 }
 0x25f   : > { %v1922_v18 = vcombine.high %v3412_v21, %v3412_v21  ;;  %1745 = vst.msk [vmem:[%s3329_s10 + $0xc8] sm:$0x1] %vm1350_vm5, %v1728_v33  ;;  %v3686_v63 = vrot.slane %v1728_v33, %v3324_v45  ;;  %1746 = vst.msk [vmem:[%s3329_s10 + $0xe8] sm:$0x1] %vm1350_vm5, %v1730_v34  ;;  %v3691_v41 = vrot.slane %v1730_v34, %v3324_v45 }
 0x260   : > { %1551 = vst.msk [vmem:[%s3329_s10 + $0xc4] sm:$0x1] %vm1350_vm5, %v1534_v37  ;;  %v3696_v43 = vrot.slane %v1534_v37, %v3324_v45  ;;  %v1924_v7 = vcombine.high %v3440_v29, %v3440_v29  ;;  %1552 = vst.msk [vmem:[%s3329_s10 + $0xe4] sm:$0x1] %vm1350_vm5, %v1536_v0  ;;  %v3705_v21 = vrot.slane %v1536_v0, %v3324_v45  ;;  %1845 = vrot.lane.b32.xlu1 %v3461_v35, %s2834_s11 }
 0x261   : > { %1939 = vst.msk [vmem:[%s3329_s10 + $0xcc] sm:$0x1] %vm1350_vm5, %v1922_v18  ;;  %v3710_v42 = vrot.slane %v1922_v18, %v3324_v45  ;;  %v3714_v61 = vrot.slane %v3481_v46, %v3324_v45  ;;  %v3718_v29 = vrot.slane %v3496_v53, %v3324_v45  ;;  %v3729_v50 = vrot.slane %v3534_v3, %v3324_v45 }
 0x262   : > { %1940 = vst.msk [vmem:[%s3329_s10 + $0xec] sm:$0x1] %vm1350_vm5, %v1924_v7  ;;  %v3725_v48 = vrot.slane %v1924_v7, %v3324_v45  ;;  %v3733_v46 = vrot.slane %v3561_v12, %v3324_v45  ;;  %v3737_v51 = vrot.slane %v3489_v49, %v3324_v45  ;;  %v3741_v35 = vrot.slane %v3511_v57, %v3324_v45 }
 0x263   : > { %v3745_v44 = vrot.slane %v3500_v54, %v3324_v45  ;;  %v3749_v60 = vrot.slane %v3493_v52, %v3324_v45  ;;  %v2117_v62 = vcombine.high %v3496_v53, %v3496_v53  ;;  %v3755_v49 = vrot.slane %v3522_v59, %v3324_v45  ;;  %1649 = vrot.lane.b32.xlu0 %v3454_v31, %s2834_s11 }
 0x264   : > { %v3759_v3 = vrot.slane %v3568_v15, %v3324_v45  ;;  %v3763_v6 = vrot.slane %v3549_v5, %v3324_v45  ;;  %v2505_v54 = vcombine.high %v3561_v12, %v3561_v12  ;;  %v3776_v15 = vrot.slane %v3564_v14, %v3324_v45  ;;  %1587 = vrot.lane.b32.xlu1 %v3477_v40, %s2824_s24 }
 0x265   : > { %2130 = vst.msk [vmem:[%s3329_s10 + $0x70] sm:$0x1] %vm1350_vm5, %v2117_v62  ;;  %v3772_v53 = vrot.slane %v2117_v62, %v3324_v45  ;;  %v3780_v17 = vrot.slane %v3515_v58, %v3324_v45  ;;  %v3784_v12 = vrot.slane %v3508_v56, %v3324_v45  ;;  %v2311_v47 = vcombine.high %v3511_v57, %v3511_v57 }
 0x266   : > { %2518 = vst.msk [vmem:[%s3329_s10 + $0x78] sm:$0x1] %vm1350_vm5, %v2505_v54  ;;  %v3791_v31 = vrot.slane %v2505_v54, %v3324_v45  ;;  %v3797_v58 = vrot.slane %v3537_v4, %v3324_v45  ;;  %v2116_v9 = vcombine.high %v3493_v52, %v3493_v52  ;;  %v2118_v30 = vcombine.high %v3522_v59, %v3522_v59 }
 0x267   : > { %v2504_v55 = vcombine.high %v3549_v5, %v3549_v5  ;;  %v2310_v33 = vcombine.high %v3508_v56, %v3508_v56  ;;  %v2506_v57 = vcombine.high %v3564_v14, %v3564_v14  ;;  %2324 = vst.msk [vmem:[%s3329_s10 + $0x74] sm:$0x1] %vm1350_vm5, %v2311_v47  ;;  %v3812_v34 = vrot.slane %v2311_v47, %v3324_v45 }
 0x268   : > { %2133 = vst.msk [vmem:[%s3329_s10 + $0xd0] sm:$0x1] %vm1350_vm5, %v2116_v9  ;;  %v3817_v52 = vrot.slane %v2116_v9, %v3324_v45  ;;  %v2312_v59 = vcombine.high %v3537_v4, %v3537_v4  ;;  %1973 = vrot.lane.b32.xlu0 %v3625_v25, %s2824_s24  ;;  %2134 = vst.msk [vmem:[%s3329_s10 + $0xf0] sm:$0x1] %vm1350_vm5, %v2118_v30  ;;  %v3826_v56 = vrot.slane %v2118_v30, %v3324_v45 }
 0x269   : > { %2521 = vst.msk [vmem:[%s3329_s10 + $0xd8] sm:$0x1] %vm1350_vm5, %v2504_v55  ;;  %v3831_v5 = vrot.slane %v2504_v55, %v3324_v45  ;;  %2327 = vst.msk [vmem:[%s3329_s10 + $0xd4] sm:$0x1] %vm1350_vm5, %v2310_v33  ;;  %v3836_v14 = vrot.slane %v2310_v33, %v3324_v45  ;;  %v3841_v4 = vrot.slane %v2506_v57, %v3324_v45  ;;  %1619 = vrot.lane.b32.xlu1 %v3477_v40, %s2827_s27 }
 0x26a   : > { %2522 = vst.msk [vmem:[%s3329_s10 + $0xf8] sm:$0x1] %vm1350_vm5, %v2506_v57  ;;  %2328 = vst.msk [vmem:[%s3329_s10 + $0xf4] sm:$0x1] %vm1350_vm5, %v2312_v59  ;;  %v3848_v37 = vrot.slane %v2312_v59, %v3324_v45  ;;  %v1948_v0 = vrot.slane %v3415_v22, %v3324_v45  ;;  %v1370_v18 = vrot.slane %v3409_v19, %v3324_v45 }
 0x26b   : > { %v1378_v7 = vrot.slane %v3437_v28, %v3324_v45  ;;  %v1374_v22 = vrot.slane %v3468_v36, %v3324_v45  ;;  %v1382_v19 = vrot.slane %v3588_v13, %v3324_v45 }
 0x26c   : > { %2005 = vrot.lane.b32.xlu0 %v3625_v25, %s2827_s27 }
 0x26d   : > { %1651 = vrot.lane.b32.xlu1 %v3477_v40, %s2834_s11 }
 0x270   : > { %2037 = vrot.lane.b32.xlu0 %v3625_v25, %s2834_s11 }
 0x271   : > { %1975 = vrot.lane.b32.xlu1 %v1948_v0, %s2824_s24 }
 0x274   : > { %1395 = vrot.lane.b32.xlu0 %v1370_v18, %s2824_s24 }
 0x275   : > { %2007 = vrot.lane.b32.xlu1 %v1948_v0, %s2827_s27 }
 0x278   : > { %1399 = vrot.lane.b32.xlu0 %v1378_v7, %s2824_s24 }
 0x279   : > { %2039 = vrot.lane.b32.xlu1 %v1948_v0, %s2834_s11 }
 0x27c   : > { %1427 = vrot.lane.b32.xlu0 %v1370_v18, %s2827_s27 }
 0x27d   : > { %1397 = vrot.lane.b32.xlu1 %v1374_v22, %s2824_s24 }
 0x280   : > { %1431 = vrot.lane.b32.xlu0 %v1378_v7, %s2827_s27 }
 0x281   : > { %1401 = vrot.lane.b32.xlu1 %v1382_v19, %s2824_s24 }
 0x284   : > { %1459 = vrot.lane.b32.xlu0 %v1370_v18, %s2834_s11 }
 0x285   : > { %1429 = vrot.lane.b32.xlu1 %v1374_v22, %s2827_s27 }
 0x288   : > { %1463 = vrot.lane.b32.xlu0 %v1378_v7, %s2834_s11 }
 0x289   : > { %1433 = vrot.lane.b32.xlu1 %v1382_v19, %s2827_s27 }
 0x28c   : > { %1783 = vrot.lane.b32.xlu0 %v3555_v8, %s2824_s24 }
 0x28d   : > { %1461 = vrot.lane.b32.xlu1 %v1374_v22, %s2834_s11 }
 0x290   : > { %1787 = vrot.lane.b32.xlu0 %v3577_v10, %s2824_s24 }
 0x291   : > { %1465 = vrot.lane.b32.xlu1 %v1382_v19, %s2834_s11 }
 0x294   : > { %1815 = vrot.lane.b32.xlu0 %v3555_v8, %s2827_s27 }
 0x295   : > { %1785 = vrot.lane.b32.xlu1 %v3633_v1, %s2824_s24 }
 0x298   : > { %1819 = vrot.lane.b32.xlu0 %v3577_v10, %s2827_s27 }
 0x299   : > { %1789 = vrot.lane.b32.xlu1 %v3594_v20, %s2824_s24 }
 0x29c   : > { %1847 = vrot.lane.b32.xlu0 %v3555_v8, %s2834_s11 }
 0x29d   : > { %1817 = vrot.lane.b32.xlu1 %v3633_v1, %s2827_s27 }
 0x2a0   : > { %1851 = vrot.lane.b32.xlu0 %v3577_v10, %s2834_s11 }
 0x2a1   : > { %1821 = vrot.lane.b32.xlu1 %v3594_v20, %s2827_s27 }
 0x2a4   : > { %1589 = vrot.lane.b32.xlu0 %v3598_v23, %s2824_s24 }
 0x2a5   : > { %1849 = vrot.lane.b32.xlu1 %v3633_v1, %s2834_s11 }
 0x2a8   : > { %1593 = vrot.lane.b32.xlu0 %v3611_v38, %s2824_s24 }
 0x2a9   : > { %1853 = vrot.lane.b32.xlu1 %v3594_v20, %s2834_s11 }
 0x2ac   : > { %1621 = vrot.lane.b32.xlu0 %v3598_v23, %s2827_s27 }
 0x2ad   : > { %1591 = vrot.lane.b32.xlu1 %v3646_v16, %s2824_s24 }
 0x2b0   : > { %1625 = vrot.lane.b32.xlu0 %v3611_v38, %s2827_s27 }
 0x2b1   : > { %1595 = vrot.lane.b32.xlu1 %v3617_v2, %s2824_s24 }
 0x2b4   : > { %1653 = vrot.lane.b32.xlu0 %v3598_v23, %s2834_s11 }
 0x2b5   : > { %1623 = vrot.lane.b32.xlu1 %v3646_v16, %s2827_s27 }
 0x2b7   : > { %v1424_v45 = vpop.permute.xlu0 %1423 }
 0x2b8   : > { %1657 = vrot.lane.b32.xlu0 %v3611_v38, %s2834_s11  ;;  %1447 = vst.msk [vmem:[%s3329_s10 + $0x2] sm:$0x1] %vm1350_vm5, %v1424_v45  ;;  %v1392_v28 = vpop.permute.xlu1 %1391 }
 0x2b9   : > { %1627 = vrot.lane.b32.xlu1 %v3617_v2, %s2827_s27  ;;  %1415 = vst.msk [vmem:[%s3329_s10 + $0x1] sm:$0x1] %vm1350_vm5, %v1392_v28 }
 0x2bb   : > { %v1456_v36 = vpop.permute.xlu0 %1455 }
 0x2bc   : > { %1977 = vrot.lane.b32.xlu0 %v3621_v24, %s2824_s24  ;;  %1479 = vst.msk [vmem:[%s3329_s10 + $0x3] sm:$0x1] %vm1350_vm5, %v1456_v36  ;;  %v1394_v40 = vpop.permute.xlu1 %1393 }
 0x2bd   : > { %1655 = vrot.lane.b32.xlu1 %v3646_v16, %s2834_s11  ;;  %1416 = vst.msk [vmem:[%s3329_s10 + $0x21] sm:$0x1] %vm1350_vm5, %v1394_v40 }
 0x2bf   : > { %v1780_v8 = vpop.permute.xlu0 %1779 }
 0x2c0   : > { %1981 = vrot.lane.b32.xlu0 %v3637_v26, %s2824_s24  ;;  %1803 = vst.msk [vmem:[%s3329_s10 + $0x9] sm:$0x1] %vm1350_vm5, %v1780_v8  ;;  %v1426_v10 = vpop.permute.xlu1 %1425 }
 0x2c1   : > { %1659 = vrot.lane.b32.xlu1 %v3617_v2, %s2834_s11  ;;  %1448 = vst.msk [vmem:[%s3329_s10 + $0x22] sm:$0x1] %vm1350_vm5, %v1426_v10 }
 0x2c3   : > { %v1812_v13 = vpop.permute.xlu0 %1811 }
 0x2c4   : > { %2009 = vrot.lane.b32.xlu0 %v3621_v24, %s2827_s27  ;;  %1835 = vst.msk [vmem:[%s3329_s10 + $0xa] sm:$0x1] %vm1350_vm5, %v1812_v13 }
 0x2c5   : > { %1979 = vrot.lane.b32.xlu1 %v3661_v32, %s2824_s24 }
 0x2c6   : > { %v1458_v20 = vpop.permute.xlu1 %1457 }
 0x2c7   : > { %1480 = vst.msk [vmem:[%s3329_s10 + $0x23] sm:$0x1] %vm1350_vm5, %v1458_v20  ;;  %v1844_v23 = vpop.permute.xlu0 %1843 }
 0x2c8   : > { %2013 = vrot.lane.b32.xlu0 %v3637_v26, %s2827_s27  ;;  %1867 = vst.msk [vmem:[%s3329_s10 + $0xb] sm:$0x1] %vm1350_vm5, %v1844_v23 }
 0x2c9   : > { %1983 = vrot.lane.b32.xlu1 %v3650_v27, %s2824_s24 }
 0x2ca   : > { %v1782_v38 = vpop.permute.xlu1 %1781 }
 0x2cb   : > { %1804 = vst.msk [vmem:[%s3329_s10 + $0x29] sm:$0x1] %vm1350_vm5, %v1782_v38  ;;  %v1586_v2 = vpop.permute.xlu0 %1585 }
 0x2cc   : > { %2041 = vrot.lane.b32.xlu0 %v3621_v24, %s2834_s11  ;;  %1609 = vst.msk [vmem:[%s3329_s10 + $0x5] sm:$0x1] %vm1350_vm5, %v1586_v2 }
 0x2cd   : > { %2011 = vrot.lane.b32.xlu1 %v3661_v32, %s2827_s27 }
 0x2ce   : > { %v1814_v25 = vpop.permute.xlu1 %1813 }
 0x2cf   : > { %1836 = vst.msk [vmem:[%s3329_s10 + $0x2a] sm:$0x1] %vm1350_vm5, %v1814_v25 }
 0x2d0   : > { %2045 = vrot.lane.b32.xlu0 %v3637_v26, %s2834_s11  ;;  %v1618_v1 = vpop.permute.xlu0 %1617 }
 0x2d1   : > { %2015 = vrot.lane.b32.xlu1 %v3650_v27, %s2827_s27  ;;  %1641 = vst.msk [vmem:[%s3329_s10 + $0x6] sm:$0x1] %vm1350_vm5, %v1618_v1 }
 0x2d2   : > { %v1846_v24 = vpop.permute.xlu1 %1845 }
 0x2d3   : > { %1868 = vst.msk [vmem:[%s3329_s10 + $0x2b] sm:$0x1] %vm1350_vm5, %v1846_v24 }
 0x2d4   : > { %1403 = vrot.lane.b32.xlu0 %v3670_v39, %s2824_s24 }
 0x2d5   : > { %2043 = vrot.lane.b32.xlu1 %v3661_v32, %s2834_s11  ;;  %v1650_v16 = vpop.permute.xlu0 %1649 }
 0x2d6   : > { %1673 = vst.msk [vmem:[%s3329_s10 + $0x7] sm:$0x1] %vm1350_vm5, %v1650_v16  ;;  %v1588_v26 = vpop.permute.xlu1 %1587 }
 0x2d7   : > { %1610 = vst.msk [vmem:[%s3329_s10 + $0x25] sm:$0x1] %vm1350_vm5, %v1588_v26 }
 0x2d8   : > { %1435 = vrot.lane.b32.xlu0 %v3670_v39, %s2827_s27 }
 0x2d9   : > { %2047 = vrot.lane.b32.xlu1 %v3650_v27, %s2834_s11 }
 0x2da   : > { %v1974_v62 = vpop.permute.xlu0 %1973 }
 0x2db   : > { %1997 = vst.msk [vmem:[%s3329_s10 + $0xd] sm:$0x1] %vm1350_vm5, %v1974_v62  ;;  %v1620_v54 = vpop.permute.xlu1 %1619 }
 0x2dc   : > { %1642 = vst.msk [vmem:[%s3329_s10 + $0x26] sm:$0x1] %vm1350_vm5, %v1620_v54  ;;  %1467 = vrot.lane.b32.xlu0 %v3670_v39, %s2834_s11 }
 0x2dd   : > { %1405 = vrot.lane.b32.xlu1 %v3675_v11, %s2824_s24 }
 0x2de   : > { %v2006_v32 = vpop.permute.xlu0 %2005 }
 0x2df   : > { %2029 = vst.msk [vmem:[%s3329_s10 + $0xe] sm:$0x1] %vm1350_vm5, %v2006_v32  ;;  %v1652_v47 = vpop.permute.xlu1 %1651 }
 0x2e0   : > { %1674 = vst.msk [vmem:[%s3329_s10 + $0x27] sm:$0x1] %vm1350_vm5, %v1652_v47  ;;  %1791 = vrot.lane.b32.xlu0 %v3686_v63, %s2824_s24 }
 0x2e1   : > { %1437 = vrot.lane.b32.xlu1 %v3675_v11, %s2827_s27 }
 0x2e2   : > { %v2038_v27 = vpop.permute.xlu0 %2037 }
 0x2e3   : > { %2061 = vst.msk [vmem:[%s3329_s10 + $0xf] sm:$0x1] %vm1350_vm5, %v2038_v27  ;;  %v1976_v39 = vpop.permute.xlu1 %1975 }
 0x2e4   : > { %1998 = vst.msk [vmem:[%s3329_s10 + $0x2d] sm:$0x1] %vm1350_vm5, %v1976_v39  ;;  %1823 = vrot.lane.b32.xlu0 %v3686_v63, %s2827_s27 }
 0x2e5   : > { %1469 = vrot.lane.b32.xlu1 %v3675_v11, %s2834_s11 }
 0x2e6   : > { %v1396_v9 = vpop.permute.xlu0 %1395 }
 0x2e7   : > { %1417 = vst.msk [vmem:[%s3329_s10 + $0x41] sm:$0x1] %vm1350_vm5, %v1396_v9  ;;  %v2008_v30 = vpop.permute.xlu1 %2007 }
 0x2e8   : > { %2030 = vst.msk [vmem:[%s3329_s10 + $0x2e] sm:$0x1] %vm1350_vm5, %v2008_v30  ;;  %1855 = vrot.lane.b32.xlu0 %v3686_v63, %s2834_s11 }
 0x2e9   : > { %1793 = vrot.lane.b32.xlu1 %v3691_v41, %s2824_s24 }
 0x2ea   : > { %v1400_v55 = vpop.permute.xlu0 %1399 }
 0x2eb   : > { %v2040_v33 = vpop.permute.xlu1 %2039  ;;  %1419 = vst.msk [vmem:[%s3329_s10 + $0x81] sm:$0x1] %vm1350_vm5, %v1400_v55 }
 0x2ec   : > { %2062 = vst.msk [vmem:[%s3329_s10 + $0x2f] sm:$0x1] %vm1350_vm5, %v2040_v33  ;;  %1597 = vrot.lane.b32.xlu0 %v3696_v43, %s2824_s24 }
 0x2ed   : > { %1825 = vrot.lane.b32.xlu1 %v3691_v41, %s2827_s27 }
 0x2ee   : > { %v1428_v11 = vpop.permute.xlu0 %1427 }
 0x2ef   : > { %v1398_v63 = vpop.permute.xlu1 %1397  ;;  %1449 = vst.msk [vmem:[%s3329_s10 + $0x42] sm:$0x1] %vm1350_vm5, %v1428_v11 }
 0x2f0   : > { %1418 = vst.msk [vmem:[%s3329_s10 + $0x61] sm:$0x1] %vm1350_vm5, %v1398_v63  ;;  %1629 = vrot.lane.b32.xlu0 %v3696_v43, %s2827_s27 }
 0x2f1   : > { %1857 = vrot.lane.b32.xlu1 %v3691_v41, %s2834_s11 }
 0x2f2   : > { %v1432_v57 = vpop.permute.xlu0 %1431 }
 0x2f3   : > { %1451 = vst.msk [vmem:[%s3329_s10 + $0x82] sm:$0x1] %vm1350_vm5, %v1432_v57  ;;  %v1402_v59 = vpop.permute.xlu1 %1401 }
 0x2f4   : > { %1420 = vst.msk [vmem:[%s3329_s10 + $0xa1] sm:$0x1] %vm1350_vm5, %v1402_v59  ;;  %1661 = vrot.lane.b32.xlu0 %v3696_v43, %s2834_s11 }
 0x2f5   : > { %1599 = vrot.lane.b32.xlu1 %v3705_v21, %s2824_s24 }
 0x2f6   : > { %v1460_v0 = vpop.permute.xlu0 %1459 }
 0x2f7   : > { %1481 = vst.msk [vmem:[%s3329_s10 + $0x43] sm:$0x1] %vm1350_vm5, %v1460_v0  ;;  %v1430_v18 = vpop.permute.xlu1 %1429 }
 0x2f8   : > { %1450 = vst.msk [vmem:[%s3329_s10 + $0x62] sm:$0x1] %vm1350_vm5, %v1430_v18  ;;  %1985 = vrot.lane.b32.xlu0 %v3710_v42, %s2824_s24 }
 0x2f9   : > { %1631 = vrot.lane.b32.xlu1 %v3705_v21, %s2827_s27 }
 0x2fa   : > { %v1464_v41 = vpop.permute.xlu0 %1463 }
 0x2fb   : > { %1483 = vst.msk [vmem:[%s3329_s10 + $0x83] sm:$0x1] %vm1350_vm5, %v1464_v41  ;;  %v1434_v43 = vpop.permute.xlu1 %1433 }
 0x2fc   : > { %1452 = vst.msk [vmem:[%s3329_s10 + $0xa2] sm:$0x1] %vm1350_vm5, %v1434_v43  ;;  %2017 = vrot.lane.b32.xlu0 %v3710_v42, %s2827_s27 }
 0x2fd   : > { %1663 = vrot.lane.b32.xlu1 %v3705_v21, %s2834_s11 }
 0x2fe   : > { %v1784_v7 = vpop.permute.xlu0 %1783 }
 0x2ff   : > { %1805 = vst.msk [vmem:[%s3329_s10 + $0x49] sm:$0x1] %vm1350_vm5, %v1784_v7  ;;  %v1462_v22 = vpop.permute.xlu1 %1461 }
 0x300   : > { %1482 = vst.msk [vmem:[%s3329_s10 + $0x63] sm:$0x1] %vm1350_vm5, %v1462_v22  ;;  %2049 = vrot.lane.b32.xlu0 %v3710_v42, %s2834_s11 }
 0x301   : > { %1987 = vrot.lane.b32.xlu1 %v3725_v48, %s2824_s24 }
 0x302   : > { %v1788_v19 = vpop.permute.xlu0 %1787 }
 0x303   : > { %1807 = vst.msk [vmem:[%s3329_s10 + $0x89] sm:$0x1] %vm1350_vm5, %v1788_v19  ;;  %v1466_v45 = vpop.permute.xlu1 %1465 }
 0x304   : > { %1484 = vst.msk [vmem:[%s3329_s10 + $0xa3] sm:$0x1] %vm1350_vm5, %v1466_v45  ;;  %2167 = vrot.lane.b32.xlu0 %v3714_v61, %s2824_s24 }
 0x305   : > { %2019 = vrot.lane.b32.xlu1 %v3725_v48, %s2827_s27 }
 0x306   : > { %v1816_v21 = vpop.permute.xlu0 %1815 }
 0x307   : > { %1837 = vst.msk [vmem:[%s3329_s10 + $0x4a] sm:$0x1] %vm1350_vm5, %v1816_v21  ;;  %v1786_v42 = vpop.permute.xlu1 %1785 }
 0x308   : > { %1806 = vst.msk [vmem:[%s3329_s10 + $0x69] sm:$0x1] %vm1350_vm5, %v1786_v42  ;;  %2199 = vrot.lane.b32.xlu0 %v3714_v61, %s2827_s27 }
 0x309   : > { %2051 = vrot.lane.b32.xlu1 %v3725_v48, %s2834_s11 }
 0x30a   : > { %v1820_v28 = vpop.permute.xlu0 %1819 }
 0x30b   : > { %1839 = vst.msk [vmem:[%s3329_s10 + $0x8a] sm:$0x1] %vm1350_vm5, %v1820_v28  ;;  %v1790_v36 = vpop.permute.xlu1 %1789 }
 0x30c   : > { %1808 = vst.msk [vmem:[%s3329_s10 + $0xa9] sm:$0x1] %vm1350_vm5, %v1790_v36  ;;  %2231 = vrot.lane.b32.xlu0 %v3714_v61, %s2834_s11 }
 0x30d   : > { %2169 = vrot.lane.b32.xlu1 %v3718_v29, %s2824_s24 }
 0x30e   : > { %v1848_v40 = vpop.permute.xlu0 %1847 }
 0x30f   : > { %1869 = vst.msk [vmem:[%s3329_s10 + $0x4b] sm:$0x1] %vm1350_vm5, %v1848_v40  ;;  %v1818_v8 = vpop.permute.xlu1 %1817 }
 0x310   : > { %1838 = vst.msk [vmem:[%s3329_s10 + $0x6a] sm:$0x1] %vm1350_vm5, %v1818_v8  ;;  %2555 = vrot.lane.b32.xlu0 %v3729_v50, %s2824_s24 }
 0x311   : > { %2201 = vrot.lane.b32.xlu1 %v3718_v29, %s2827_s27 }
 0x312   : > { %v1852_v48 = vpop.permute.xlu0 %1851 }
 0x313   : > { %1871 = vst.msk [vmem:[%s3329_s10 + $0x8b] sm:$0x1] %vm1350_vm5, %v1852_v48  ;;  %v1822_v61 = vpop.permute.xlu1 %1821 }
 0x314   : > { %1840 = vst.msk [vmem:[%s3329_s10 + $0xaa] sm:$0x1] %vm1350_vm5, %v1822_v61  ;;  %2587 = vrot.lane.b32.xlu0 %v3729_v50, %s2827_s27 }
 0x315   : > { %2233 = vrot.lane.b32.xlu1 %v3718_v29, %s2834_s11 }
 0x316   : > { %v1590_v10 = vpop.permute.xlu0 %1589 }
 0x317   : > { %1611 = vst.msk [vmem:[%s3329_s10 + $0x45] sm:$0x1] %vm1350_vm5, %v1590_v10  ;;  %v1850_v13 = vpop.permute.xlu1 %1849 }
 0x318   : > { %1870 = vst.msk [vmem:[%s3329_s10 + $0x6b] sm:$0x1] %vm1350_vm5, %v1850_v13  ;;  %2619 = vrot.lane.b32.xlu0 %v3729_v50, %s2834_s11 }
 0x319   : > { %2557 = vrot.lane.b32.xlu1 %v3733_v46, %s2824_s24 }
 0x31a   : > { %v1594_v20 = vpop.permute.xlu0 %1593 }
 0x31b   : > { %1613 = vst.msk [vmem:[%s3329_s10 + $0x85] sm:$0x1] %vm1350_vm5, %v1594_v20  ;;  %v1854_v23 = vpop.permute.xlu1 %1853 }
 0x31c   : > { %1872 = vst.msk [vmem:[%s3329_s10 + $0xab] sm:$0x1] %vm1350_vm5, %v1854_v23  ;;  %2361 = vrot.lane.b32.xlu0 %v3737_v51, %s2824_s24 }
 0x31d   : > { %2589 = vrot.lane.b32.xlu1 %v3733_v46, %s2827_s27 }
 0x31e   : > { %v1622_v29 = vpop.permute.xlu0 %1621 }
 0x31f   : > { %1643 = vst.msk [vmem:[%s3329_s10 + $0x46] sm:$0x1] %vm1350_vm5, %v1622_v29  ;;  %v1592_v50 = vpop.permute.xlu1 %1591 }
 0x320   : > { %1612 = vst.msk [vmem:[%s3329_s10 + $0x65] sm:$0x1] %vm1350_vm5, %v1592_v50  ;;  %2393 = vrot.lane.b32.xlu0 %v3737_v51, %s2827_s27 }
 0x321   : > { %2621 = vrot.lane.b32.xlu1 %v3733_v46, %s2834_s11 }
 0x322   : > { %v1626_v38 = vpop.permute.xlu0 %1625 }
 0x323   : > { %1645 = vst.msk [vmem:[%s3329_s10 + $0x86] sm:$0x1] %vm1350_vm5, %v1626_v38  ;;  %v1596_v2 = vpop.permute.xlu1 %1595 }
 0x324   : > { %1614 = vst.msk [vmem:[%s3329_s10 + $0xa5] sm:$0x1] %vm1350_vm5, %v1596_v2  ;;  %2425 = vrot.lane.b32.xlu0 %v3737_v51, %s2834_s11 }
 0x325   : > { %2363 = vrot.lane.b32.xlu1 %v3741_v35, %s2824_s24 }
 0x326   : > { %v1654_v25 = vpop.permute.xlu0 %1653 }
 0x327   : > { %1675 = vst.msk [vmem:[%s3329_s10 + $0x47] sm:$0x1] %vm1350_vm5, %v1654_v25  ;;  %v1624_v1 = vpop.permute.xlu1 %1623 }
 0x328   : > { %1644 = vst.msk [vmem:[%s3329_s10 + $0x66] sm:$0x1] %vm1350_vm5, %v1624_v1  ;;  %2171 = vrot.lane.b32.xlu0 %v3745_v44, %s2824_s24 }
 0x329   : > { %2395 = vrot.lane.b32.xlu1 %v3741_v35, %s2827_s27 }
 0x32a   : > { %v1658_v46 = vpop.permute.xlu0 %1657 }
 0x32b   : > { %1677 = vst.msk [vmem:[%s3329_s10 + $0x87] sm:$0x1] %vm1350_vm5, %v1658_v46  ;;  %v1628_v51 = vpop.permute.xlu1 %1627 }
 0x32c   : > { %1646 = vst.msk [vmem:[%s3329_s10 + $0xa6] sm:$0x1] %vm1350_vm5, %v1628_v51  ;;  %2175 = vrot.lane.b32.xlu0 %v3749_v60, %s2824_s24 }
 0x32d   : > { %2427 = vrot.lane.b32.xlu1 %v3741_v35, %s2834_s11 }
 0x32e   : > { %v1978_v24 = vpop.permute.xlu0 %1977 }
 0x32f   : > { %1999 = vst.msk [vmem:[%s3329_s10 + $0x4d] sm:$0x1] %vm1350_vm5, %v1978_v24  ;;  %v1656_v16 = vpop.permute.xlu1 %1655 }
 0x330   : > { %1676 = vst.msk [vmem:[%s3329_s10 + $0x67] sm:$0x1] %vm1350_vm5, %v1656_v16  ;;  %2203 = vrot.lane.b32.xlu0 %v3745_v44, %s2827_s27 }
 0x331   : > { %2173 = vrot.lane.b32.xlu1 %v3772_v53, %s2824_s24 }
 0x332   : > { %v1982_v26 = vpop.permute.xlu0 %1981 }
 0x333   : > { %2001 = vst.msk [vmem:[%s3329_s10 + $0x8d] sm:$0x1] %vm1350_vm5, %v1982_v26  ;;  %v1660_v62 = vpop.permute.xlu1 %1659 }
 0x334   : > { %1678 = vst.msk [vmem:[%s3329_s10 + $0xa7] sm:$0x1] %vm1350_vm5, %v1660_v62  ;;  %2207 = vrot.lane.b32.xlu0 %v3749_v60, %s2827_s27 }
 0x335   : > { %2177 = vrot.lane.b32.xlu1 %v3755_v49, %s2824_s24 }
 0x336   : > { %v2010_v35 = vpop.permute.xlu0 %2009 }
 0x337   : > { %2031 = vst.msk [vmem:[%s3329_s10 + $0x4e] sm:$0x1] %vm1350_vm5, %v2010_v35  ;;  %v1980_v54 = vpop.permute.xlu1 %1979 }
 0x338   : > { %2000 = vst.msk [vmem:[%s3329_s10 + $0x6d] sm:$0x1] %vm1350_vm5, %v1980_v54  ;;  %2235 = vrot.lane.b32.xlu0 %v3745_v44, %s2834_s11 }
 0x339   : > { %2205 = vrot.lane.b32.xlu1 %v3772_v53, %s2827_s27 }
 0x33a   : > { %v2014_v32 = vpop.permute.xlu0 %2013 }
 0x33b   : > { %2033 = vst.msk [vmem:[%s3329_s10 + $0x8e] sm:$0x1] %vm1350_vm5, %v2014_v32  ;;  %v1984_v47 = vpop.permute.xlu1 %1983 }
 0x33c   : > { %2002 = vst.msk [vmem:[%s3329_s10 + $0xad] sm:$0x1] %vm1350_vm5, %v1984_v47  ;;  %2239 = vrot.lane.b32.xlu0 %v3749_v60, %s2834_s11 }
 0x33d   : > { %2209 = vrot.lane.b32.xlu1 %v3755_v49, %s2827_s27 }
 0x33e   : > { %v2042_v27 = vpop.permute.xlu0 %2041 }
 0x33f   : > { %2063 = vst.msk [vmem:[%s3329_s10 + $0x4f] sm:$0x1] %vm1350_vm5, %v2042_v27  ;;  %v2012_v44 = vpop.permute.xlu1 %2011 }
 0x340   : > { %2032 = vst.msk [vmem:[%s3329_s10 + $0x6e] sm:$0x1] %vm1350_vm5, %v2012_v44  ;;  %2559 = vrot.lane.b32.xlu0 %v3759_v3, %s2824_s24 }
 0x341   : > { %2237 = vrot.lane.b32.xlu1 %v3772_v53, %s2834_s11 }
 0x342   : > { %v2046_v39 = vpop.permute.xlu0 %2045 }
 0x343   : > { %2065 = vst.msk [vmem:[%s3329_s10 + $0x8f] sm:$0x1] %vm1350_vm5, %v2046_v39  ;;  %v2016_v60 = vpop.permute.xlu1 %2015 }
 0x344   : > { %2034 = vst.msk [vmem:[%s3329_s10 + $0xae] sm:$0x1] %vm1350_vm5, %v2016_v60  ;;  %2563 = vrot.lane.b32.xlu0 %v3763_v6, %s2824_s24 }
 0x345   : > { %2241 = vrot.lane.b32.xlu1 %v3755_v49, %s2834_s11 }
 0x346   : > { %v1404_v9 = vpop.permute.xlu0 %1403 }
 0x347   : > { %1421 = vst.msk [vmem:[%s3329_s10 + $0xc1] sm:$0x1] %vm1350_vm5, %v1404_v9  ;;  %v2044_v30 = vpop.permute.xlu1 %2043 }
 0x348   : > { %2064 = vst.msk [vmem:[%s3329_s10 + $0x6f] sm:$0x1] %vm1350_vm5, %v2044_v30  ;;  %2591 = vrot.lane.b32.xlu0 %v3759_v3, %s2827_s27 }
 0x349   : > { %2561 = vrot.lane.b32.xlu1 %v3791_v31, %s2824_s24 }
 0x34a   : > { %v1436_v53 = vpop.permute.xlu0 %1435 }
 0x34b   : > { %1453 = vst.msk [vmem:[%s3329_s10 + $0xc2] sm:$0x1] %vm1350_vm5, %v1436_v53  ;;  %v2048_v55 = vpop.permute.xlu1 %2047 }
 0x34c   : > { %2066 = vst.msk [vmem:[%s3329_s10 + $0xaf] sm:$0x1] %vm1350_vm5, %v2048_v55  ;;  %2595 = vrot.lane.b32.xlu0 %v3763_v6, %s2827_s27 }
 0x34d   : > { %2565 = vrot.lane.b32.xlu1 %v3776_v15, %s2824_s24 }
 0x34e   : > { %v1468_v49 = vpop.permute.xlu0 %1467 }
 0x34f   : > { %1485 = vst.msk [vmem:[%s3329_s10 + $0xc3] sm:$0x1] %vm1350_vm5, %v1468_v49  ;;  %v1406_v33 = vpop.permute.xlu1 %1405 }
 0x350   : > { %1422 = vst.msk [vmem:[%s3329_s10 + $0xe1] sm:$0x1] %vm1350_vm5, %v1406_v33  ;;  %2623 = vrot.lane.b32.xlu0 %v3759_v3, %s2834_s11 }
 0x351   : > { %2593 = vrot.lane.b32.xlu1 %v3791_v31, %s2827_s27 }
 0x352   : > { %v1792_v11 = vpop.permute.xlu0 %1791 }
 0x353   : > { %1809 = vst.msk [vmem:[%s3329_s10 + $0xc9] sm:$0x1] %vm1350_vm5, %v1792_v11  ;;  %v1438_v63 = vpop.permute.xlu1 %1437 }
 0x354   : > { %1454 = vst.msk [vmem:[%s3329_s10 + $0xe2] sm:$0x1] %vm1350_vm5, %v1438_v63  ;;  %2627 = vrot.lane.b32.xlu0 %v3763_v6, %s2834_s11 }
 0x355   : > { %2597 = vrot.lane.b32.xlu1 %v3776_v15, %s2827_s27 }
 0x356   : > { %v1824_v57 = vpop.permute.xlu0 %1823 }
 0x357   : > { %1841 = vst.msk [vmem:[%s3329_s10 + $0xca] sm:$0x1] %vm1350_vm5, %v1824_v57  ;;  %v1470_v3 = vpop.permute.xlu1 %1469 }
 0x358   : > { %1486 = vst.msk [vmem:[%s3329_s10 + $0xe3] sm:$0x1] %vm1350_vm5, %v1470_v3  ;;  %2365 = vrot.lane.b32.xlu0 %v3780_v17, %s2824_s24 }
 0x359   : > { %2625 = vrot.lane.b32.xlu1 %v3791_v31, %s2834_s11 }
 0x35a   : > { %v1856_v59 = vpop.permute.xlu0 %1855 }
 0x35b   : > { %1873 = vst.msk [vmem:[%s3329_s10 + $0xcb] sm:$0x1] %vm1350_vm5, %v1856_v59  ;;  %v1794_v6 = vpop.permute.xlu1 %1793 }
 0x35c   : > { %1810 = vst.msk [vmem:[%s3329_s10 + $0xe9] sm:$0x1] %vm1350_vm5, %v1794_v6  ;;  %2369 = vrot.lane.b32.xlu0 %v3784_v12, %s2824_s24 }
 0x35d   : > { %2629 = vrot.lane.b32.xlu1 %v3776_v15, %s2834_s11 }
 0x35e   : > { %v1598_v0 = vpop.permute.xlu0 %1597 }
 0x35f   : > { %1615 = vst.msk [vmem:[%s3329_s10 + $0xc5] sm:$0x1] %vm1350_vm5, %v1598_v0  ;;  %v1826_v18 = vpop.permute.xlu1 %1825 }
 0x360   : > { %1842 = vst.msk [vmem:[%s3329_s10 + $0xea] sm:$0x1] %vm1350_vm5, %v1826_v18  ;;  %2397 = vrot.lane.b32.xlu0 %v3780_v17, %s2827_s27 }
 0x361   : > { %2367 = vrot.lane.b32.xlu1 %v3812_v34, %s2824_s24 }
 0x362   : > { %v1630_v31 = vpop.permute.xlu0 %1629 }
 0x363   : > { %1647 = vst.msk [vmem:[%s3329_s10 + $0xc6] sm:$0x1] %vm1350_vm5, %v1630_v31  ;;  %v1858_v41 = vpop.permute.xlu1 %1857 }
 0x364   : > { %1874 = vst.msk [vmem:[%s3329_s10 + $0xeb] sm:$0x1] %vm1350_vm5, %v1858_v41  ;;  %2401 = vrot.lane.b32.xlu0 %v3784_v12, %s2827_s27 }
 0x365   : > { %2371 = vrot.lane.b32.xlu1 %v3797_v58, %s2824_s24 }
 0x366   : > { %v1662_v15 = vpop.permute.xlu0 %1661 }
 0x367   : > { %1679 = vst.msk [vmem:[%s3329_s10 + $0xc7] sm:$0x1] %vm1350_vm5, %v1662_v15  ;;  %v1600_v43 = vpop.permute.xlu1 %1599 }
 0x368   : > { %1616 = vst.msk [vmem:[%s3329_s10 + $0xe5] sm:$0x1] %vm1350_vm5, %v1600_v43  ;;  %2429 = vrot.lane.b32.xlu0 %v3780_v17, %s2834_s11 }
 0x369   : > { %2399 = vrot.lane.b32.xlu1 %v3812_v34, %s2827_s27 }
 0x36a   : > { %v1986_v7 = vpop.permute.xlu0 %1985 }
 0x36b   : > { %2003 = vst.msk [vmem:[%s3329_s10 + $0xcd] sm:$0x1] %vm1350_vm5, %v1986_v7  ;;  %v1632_v22 = vpop.permute.xlu1 %1631 }
 0x36c   : > { %1648 = vst.msk [vmem:[%s3329_s10 + $0xe6] sm:$0x1] %vm1350_vm5, %v1632_v22  ;;  %2433 = vrot.lane.b32.xlu0 %v3784_v12, %s2834_s11 }
 0x36d   : > { %2403 = vrot.lane.b32.xlu1 %v3797_v58, %s2827_s27 }
 0x36e   : > { %v2018_v19 = vpop.permute.xlu0 %2017 }
 0x36f   : > { %2035 = vst.msk [vmem:[%s3329_s10 + $0xce] sm:$0x1] %vm1350_vm5, %v2018_v19  ;;  %v1664_v17 = vpop.permute.xlu1 %1663 }
 0x370   : > { %1680 = vst.msk [vmem:[%s3329_s10 + $0xe7] sm:$0x1] %vm1350_vm5, %v1664_v17  ;;  %2179 = vrot.lane.b32.xlu0 %v3817_v52, %s2824_s24 }
 0x371   : > { %2431 = vrot.lane.b32.xlu1 %v3812_v34, %s2834_s11 }
 0x372   : > { %v2050_v45 = vpop.permute.xlu0 %2049 }
 0x373   : > { %2067 = vst.msk [vmem:[%s3329_s10 + $0xcf] sm:$0x1] %vm1350_vm5, %v2050_v45  ;;  %v1988_v12 = vpop.permute.xlu1 %1987 }
 0x374   : > { %2004 = vst.msk [vmem:[%s3329_s10 + $0xed] sm:$0x1] %vm1350_vm5, %v1988_v12  ;;  %2211 = vrot.lane.b32.xlu0 %v3817_v52, %s2827_s27 }
 0x375   : > { %2435 = vrot.lane.b32.xlu1 %v3797_v58, %s2834_s11 }
 0x376   : > { %v2168_v21 = vpop.permute.xlu0 %2167 }
 0x377   : > { %2191 = vst.msk [vmem:[%s3329_s10 + $0x11] sm:$0x1] %vm1350_vm5, %v2168_v21  ;;  %v2020_v42 = vpop.permute.xlu1 %2019 }
 0x378   : > { %2036 = vst.msk [vmem:[%s3329_s10 + $0xee] sm:$0x1] %vm1350_vm5, %v2020_v42  ;;  %2243 = vrot.lane.b32.xlu0 %v3817_v52, %s2834_s11 }
 0x379   : > { %2181 = vrot.lane.b32.xlu1 %v3826_v56, %s2824_s24 }
 0x37a   : > { %v2200_v34 = vpop.permute.xlu0 %2199 }
 0x37b   : > { %2223 = vst.msk [vmem:[%s3329_s10 + $0x12] sm:$0x1] %vm1350_vm5, %v2200_v34  ;;  %v2052_v28 = vpop.permute.xlu1 %2051 }
 0x37c   : > { %2068 = vst.msk [vmem:[%s3329_s10 + $0xef] sm:$0x1] %vm1350_vm5, %v2052_v28  ;;  %2567 = vrot.lane.b32.xlu0 %v3831_v5, %s2824_s24 }
 0x37d   : > { %2213 = vrot.lane.b32.xlu1 %v3826_v56, %s2827_s27 }
 0x37e   : > { %v2232_v58 = vpop.permute.xlu0 %2231 }
 0x37f   : > { %2255 = vst.msk [vmem:[%s3329_s10 + $0x13] sm:$0x1] %vm1350_vm5, %v2232_v58  ;;  %v2170_v52 = vpop.permute.xlu1 %2169 }
 0x380   : > { %2192 = vst.msk [vmem:[%s3329_s10 + $0x31] sm:$0x1] %vm1350_vm5, %v2170_v52  ;;  %2599 = vrot.lane.b32.xlu0 %v3831_v5, %s2827_s27 }
 0x381   : > { %2245 = vrot.lane.b32.xlu1 %v3826_v56, %s2834_s11 }
 0x382   : > { %v2556_v36 = vpop.permute.xlu0 %2555 }
 0x383   : > { %2579 = vst.msk [vmem:[%s3329_s10 + $0x19] sm:$0x1] %vm1350_vm5, %v2556_v36  ;;  %v2202_v40 = vpop.permute.xlu1 %2201 }
 0x384   : > { %2224 = vst.msk [vmem:[%s3329_s10 + $0x32] sm:$0x1] %vm1350_vm5, %v2202_v40  ;;  %2373 = vrot.lane.b32.xlu0 %v3836_v14, %s2824_s24 }
 0x385   : > { %2569 = vrot.lane.b32.xlu1 %v3841_v4, %s2824_s24 }
 0x386   : > { %v2588_v8 = vpop.permute.xlu0 %2587 }
 0x387   : > { %2611 = vst.msk [vmem:[%s3329_s10 + $0x1a] sm:$0x1] %vm1350_vm5, %v2588_v8  ;;  %v2234_v48 = vpop.permute.xlu1 %2233 }
 0x388   : > { %2256 = vst.msk [vmem:[%s3329_s10 + $0x33] sm:$0x1] %vm1350_vm5, %v2234_v48  ;;  %2405 = vrot.lane.b32.xlu0 %v3836_v14, %s2827_s27 }
 0x389   : > { %2601 = vrot.lane.b32.xlu1 %v3841_v4, %s2827_s27 }
 0x38a   : > { %v2620_v56 = vpop.permute.xlu0 %2619 }
 0x38b   : > { %2643 = vst.msk [vmem:[%s3329_s10 + $0x1b] sm:$0x1] %vm1350_vm5, %v2620_v56  ;;  %v2558_v61 = vpop.permute.xlu1 %2557 }
 0x38c   : > { %2580 = vst.msk [vmem:[%s3329_s10 + $0x39] sm:$0x1] %vm1350_vm5, %v2558_v61  ;;  %2437 = vrot.lane.b32.xlu0 %v3836_v14, %s2834_s11 }
 0x38d   : > { %2375 = vrot.lane.b32.xlu1 %v3848_v37, %s2824_s24 }
 0x38e   : > { %v2362_v10 = vpop.permute.xlu0 %2361 }
 0x38f   : > { %2385 = vst.msk [vmem:[%s3329_s10 + $0x15] sm:$0x1] %vm1350_vm5, %v2362_v10  ;;  %v2590_v13 = vpop.permute.xlu1 %2589 }
 0x390   : > { %2612 = vst.msk [vmem:[%s3329_s10 + $0x3a] sm:$0x1] %vm1350_vm5, %v2590_v13  ;;  %2631 = vrot.lane.b32.xlu0 %v3831_v5, %s2834_s11 }
 0x391   : > { %2407 = vrot.lane.b32.xlu1 %v3848_v37, %s2827_s27 }
 0x392   : > { %v2394_v14 = vpop.permute.xlu0 %2393 }
 0x393   : > { %2417 = vst.msk [vmem:[%s3329_s10 + $0x16] sm:$0x1] %vm1350_vm5, %v2394_v14  ;;  %v2622_v20 = vpop.permute.xlu1 %2621 }
 0x394   : > { %2644 = vst.msk [vmem:[%s3329_s10 + $0x3b] sm:$0x1] %vm1350_vm5, %v2622_v20 }
 0x395   : > { %2439 = vrot.lane.b32.xlu1 %v3848_v37, %s2834_s11 }
 0x396   : > { %v2426_v23 = vpop.permute.xlu0 %2425 }
 0x397   : > { %2449 = vst.msk [vmem:[%s3329_s10 + $0x17] sm:$0x1] %vm1350_vm5, %v2426_v23  ;;  %v2364_v5 = vpop.permute.xlu1 %2363 }
 0x398   : > { %2386 = vst.msk [vmem:[%s3329_s10 + $0x35] sm:$0x1] %vm1350_vm5, %v2364_v5 }
 0x399   : > { %2633 = vrot.lane.b32.xlu1 %v3841_v4, %s2834_s11 }
 0x39a   : > { %v2172_v29 = vpop.permute.xlu0 %2171 }
 0x39b   : > { %2193 = vst.msk [vmem:[%s3329_s10 + $0x51] sm:$0x1] %vm1350_vm5, %v2172_v29  ;;  %v2396_v50 = vpop.permute.xlu1 %2395 }
 0x39c   : > { %2418 = vst.msk [vmem:[%s3329_s10 + $0x36] sm:$0x1] %vm1350_vm5, %v2396_v50 }
 0x39e   : > { %v2176_v37 = vpop.permute.xlu0 %2175 }
 0x39f   : > { %2195 = vst.msk [vmem:[%s3329_s10 + $0x91] sm:$0x1] %vm1350_vm5, %v2176_v37  ;;  %v2428_v38 = vpop.permute.xlu1 %2427 }
 0x3a0   : > { %2450 = vst.msk [vmem:[%s3329_s10 + $0x37] sm:$0x1] %vm1350_vm5, %v2428_v38 }
 0x3a2   : > { %v2204_v2 = vpop.permute.xlu0 %2203 }
 0x3a3   : > { %2225 = vst.msk [vmem:[%s3329_s10 + $0x52] sm:$0x1] %vm1350_vm5, %v2204_v2  ;;  %v2174_v4 = vpop.permute.xlu1 %2173 }
 0x3a4   : > { %2194 = vst.msk [vmem:[%s3329_s10 + $0x71] sm:$0x1] %vm1350_vm5, %v2174_v4 }
 0x3a6   : > { %v2208_v25 = vpop.permute.xlu0 %2207 }
 0x3a7   : > { %2227 = vst.msk [vmem:[%s3329_s10 + $0x92] sm:$0x1] %vm1350_vm5, %v2208_v25  ;;  %v2178_v1 = vpop.permute.xlu1 %2177 }
 0x3a8   : > { %2196 = vst.msk [vmem:[%s3329_s10 + $0xb1] sm:$0x1] %vm1350_vm5, %v2178_v1 }
 0x3aa   : > { %v2236_v46 = vpop.permute.xlu0 %2235 }
 0x3ab   : > { %2257 = vst.msk [vmem:[%s3329_s10 + $0x53] sm:$0x1] %vm1350_vm5, %v2236_v46  ;;  %v2206_v51 = vpop.permute.xlu1 %2205 }
 0x3ac   : > { %2226 = vst.msk [vmem:[%s3329_s10 + $0x72] sm:$0x1] %vm1350_vm5, %v2206_v51 }
 0x3ae   : > { %v2240_v24 = vpop.permute.xlu0 %2239 }
 0x3af   : > { %2259 = vst.msk [vmem:[%s3329_s10 + $0x93] sm:$0x1] %vm1350_vm5, %v2240_v24  ;;  %v2210_v16 = vpop.permute.xlu1 %2209 }
 0x3b0   : > { %2228 = vst.msk [vmem:[%s3329_s10 + $0xb2] sm:$0x1] %vm1350_vm5, %v2210_v16 }
 0x3b2   : > { %v2560_v26 = vpop.permute.xlu0 %2559 }
 0x3b3   : > { %2581 = vst.msk [vmem:[%s3329_s10 + $0x59] sm:$0x1] %vm1350_vm5, %v2560_v26  ;;  %v2238_v62 = vpop.permute.xlu1 %2237 }
 0x3b4   : > { %2258 = vst.msk [vmem:[%s3329_s10 + $0x73] sm:$0x1] %vm1350_vm5, %v2238_v62 }
 0x3b6   : > { %v2564_v35 = vpop.permute.xlu0 %2563 }
 0x3b7   : > { %2583 = vst.msk [vmem:[%s3329_s10 + $0x99] sm:$0x1] %vm1350_vm5, %v2564_v35  ;;  %v2242_v54 = vpop.permute.xlu1 %2241 }
 0x3b8   : > { %2260 = vst.msk [vmem:[%s3329_s10 + $0xb3] sm:$0x1] %vm1350_vm5, %v2242_v54 }
 0x3ba   : > { %v2592_v32 = vpop.permute.xlu0 %2591 }
 0x3bb   : > { %2613 = vst.msk [vmem:[%s3329_s10 + $0x5a] sm:$0x1] %vm1350_vm5, %v2592_v32  ;;  %v2562_v47 = vpop.permute.xlu1 %2561 }
 0x3bc   : > { %2582 = vst.msk [vmem:[%s3329_s10 + $0x79] sm:$0x1] %vm1350_vm5, %v2562_v47 }
 0x3be   : > { %v2596_v27 = vpop.permute.xlu0 %2595 }
 0x3bf   : > { %2615 = vst.msk [vmem:[%s3329_s10 + $0x9a] sm:$0x1] %vm1350_vm5, %v2596_v27  ;;  %v2566_v44 = vpop.permute.xlu1 %2565 }
 0x3c0   : > { %2584 = vst.msk [vmem:[%s3329_s10 + $0xb9] sm:$0x1] %vm1350_vm5, %v2566_v44 }
 0x3c2   : > { %v2624_v39 = vpop.permute.xlu0 %2623 }
 0x3c3   : > { %2645 = vst.msk [vmem:[%s3329_s10 + $0x5b] sm:$0x1] %vm1350_vm5, %v2624_v39  ;;  %v2594_v60 = vpop.permute.xlu1 %2593 }
 0x3c4   : > { %2614 = vst.msk [vmem:[%s3329_s10 + $0x7a] sm:$0x1] %vm1350_vm5, %v2594_v60 }
 0x3c6   : > { %v2628_v9 = vpop.permute.xlu0 %2627 }
 0x3c7   : > { %2647 = vst.msk [vmem:[%s3329_s10 + $0x9b] sm:$0x1] %vm1350_vm5, %v2628_v9  ;;  %v2598_v30 = vpop.permute.xlu1 %2597 }
 0x3c8   : > { %2616 = vst.msk [vmem:[%s3329_s10 + $0xba] sm:$0x1] %vm1350_vm5, %v2598_v30 }
 0x3ca   : > { %v2366_v53 = vpop.permute.xlu0 %2365 }
 0x3cb   : > { %2387 = vst.msk [vmem:[%s3329_s10 + $0x55] sm:$0x1] %vm1350_vm5, %v2366_v53  ;;  %v2626_v55 = vpop.permute.xlu1 %2625 }
 0x3cc   : > { %2646 = vst.msk [vmem:[%s3329_s10 + $0x7b] sm:$0x1] %vm1350_vm5, %v2626_v55 }
 0x3ce   : > { %v2370_v49 = vpop.permute.xlu0 %2369 }
 0x3cf   : > { %2389 = vst.msk [vmem:[%s3329_s10 + $0x95] sm:$0x1] %vm1350_vm5, %v2370_v49  ;;  %v2630_v33 = vpop.permute.xlu1 %2629 }
 0x3d0   : > { %2648 = vst.msk [vmem:[%s3329_s10 + $0xbb] sm:$0x1] %vm1350_vm5, %v2630_v33 }
 0x3d2   : > { %v2398_v11 = vpop.permute.xlu0 %2397 }
 0x3d3   : > { %2419 = vst.msk [vmem:[%s3329_s10 + $0x56] sm:$0x1] %vm1350_vm5, %v2398_v11  ;;  %v2368_v63 = vpop.permute.xlu1 %2367 }
 0x3d4   : > { %2388 = vst.msk [vmem:[%s3329_s10 + $0x75] sm:$0x1] %vm1350_vm5, %v2368_v63 }
 0x3d6   : > { %v2402_v57 = vpop.permute.xlu0 %2401 }
 0x3d7   : > { %2421 = vst.msk [vmem:[%s3329_s10 + $0x96] sm:$0x1] %vm1350_vm5, %v2402_v57  ;;  %v2372_v3 = vpop.permute.xlu1 %2371 }
 0x3d8   : > { %2390 = vst.msk [vmem:[%s3329_s10 + $0xb5] sm:$0x1] %vm1350_vm5, %v2372_v3 }
 0x3da   : > { %v2430_v59 = vpop.permute.xlu0 %2429 }
 0x3db   : > { %2451 = vst.msk [vmem:[%s3329_s10 + $0x57] sm:$0x1] %vm1350_vm5, %v2430_v59  ;;  %v2400_v6 = vpop.permute.xlu1 %2399 }
 0x3dc   : > { %2420 = vst.msk [vmem:[%s3329_s10 + $0x76] sm:$0x1] %vm1350_vm5, %v2400_v6 }
 0x3de   : > { %v2434_v0 = vpop.permute.xlu0 %2433 }
 0x3df   : > { %2453 = vst.msk [vmem:[%s3329_s10 + $0x97] sm:$0x1] %vm1350_vm5, %v2434_v0  ;;  %v2404_v18 = vpop.permute.xlu1 %2403 }
 0x3e0   : > { %2422 = vst.msk [vmem:[%s3329_s10 + $0xb6] sm:$0x1] %vm1350_vm5, %v2404_v18 }
 0x3e2   : > { %v2180_v31 = vpop.permute.xlu0 %2179 }
 0x3e3   : > { %2197 = vst.msk [vmem:[%s3329_s10 + $0xd1] sm:$0x1] %vm1350_vm5, %v2180_v31  ;;  %v2432_v41 = vpop.permute.xlu1 %2431 }
 0x3e4   : > { %2452 = vst.msk [vmem:[%s3329_s10 + $0x77] sm:$0x1] %vm1350_vm5, %v2432_v41 }
 0x3e6   : > { %v2212_v15 = vpop.permute.xlu0 %2211 }
 0x3e7   : > { %2229 = vst.msk [vmem:[%s3329_s10 + $0xd2] sm:$0x1] %vm1350_vm5, %v2212_v15  ;;  %v2436_v43 = vpop.permute.xlu1 %2435 }
 0x3e8   : > { %2454 = vst.msk [vmem:[%s3329_s10 + $0xb7] sm:$0x1] %vm1350_vm5, %v2436_v43 }
 0x3ea   : > { %v2244_v7 = vpop.permute.xlu0 %2243 }
 0x3eb   : > { %2261 = vst.msk [vmem:[%s3329_s10 + $0xd3] sm:$0x1] %vm1350_vm5, %v2244_v7  ;;  %v2182_v22 = vpop.permute.xlu1 %2181 }
 0x3ec   : > { %2198 = vst.msk [vmem:[%s3329_s10 + $0xf1] sm:$0x1] %vm1350_vm5, %v2182_v22 }
 0x3ee   : > { %v2568_v19 = vpop.permute.xlu0 %2567 }
 0x3ef   : > { %2585 = vst.msk [vmem:[%s3329_s10 + $0xd9] sm:$0x1] %vm1350_vm5, %v2568_v19  ;;  %v2214_v17 = vpop.permute.xlu1 %2213 }
 0x3f0   : > { %2230 = vst.msk [vmem:[%s3329_s10 + $0xf2] sm:$0x1] %vm1350_vm5, %v2214_v17 }
 0x3f2   : > { %v2600_v45 = vpop.permute.xlu0 %2599 }
 0x3f3   : > { %2617 = vst.msk [vmem:[%s3329_s10 + $0xda] sm:$0x1] %vm1350_vm5, %v2600_v45  ;;  %v2246_v12 = vpop.permute.xlu1 %2245 }
 0x3f4   : > { %2262 = vst.msk [vmem:[%s3329_s10 + $0xf3] sm:$0x1] %vm1350_vm5, %v2246_v12 }
 0x3f6   : > { %v2374_v21 = vpop.permute.xlu0 %2373 }
 0x3f7   : > { %2391 = vst.msk [vmem:[%s3329_s10 + $0xd5] sm:$0x1] %vm1350_vm5, %v2374_v21  ;;  %v2570_v42 = vpop.permute.xlu1 %2569 }
 0x3f8   : > { %2586 = vst.msk [vmem:[%s3329_s10 + $0xf9] sm:$0x1] %vm1350_vm5, %v2570_v42 }
 0x3fa   : > { %v2406_v34 = vpop.permute.xlu0 %2405 }
 0x3fb   : > { %2423 = vst.msk [vmem:[%s3329_s10 + $0xd6] sm:$0x1] %vm1350_vm5, %v2406_v34  ;;  %v2602_v28 = vpop.permute.xlu1 %2601 }
 0x3fc   : > { %2618 = vst.msk [vmem:[%s3329_s10 + $0xfa] sm:$0x1] %vm1350_vm5, %v2602_v28 }
 0x3fe   : > { %v2438_v58 = vpop.permute.xlu0 %2437 }
 0x3ff   : > { %2455 = vst.msk [vmem:[%s3329_s10 + $0xd7] sm:$0x1] %vm1350_vm5, %v2438_v58  ;;  %v2376_v52 = vpop.permute.xlu1 %2375 }
 0x400   : > { %2392 = vst.msk [vmem:[%s3329_s10 + $0xf5] sm:$0x1] %vm1350_vm5, %v2376_v52 }
 0x402   : > { %v2632_v36 = vpop.permute.xlu0 %2631 }
 0x403   : > { %2649 = vst.msk [vmem:[%s3329_s10 + $0xdb] sm:$0x1] %vm1350_vm5, %v2632_v36  ;;  %v2408_v40 = vpop.permute.xlu1 %2407 }
 0x404   : > { %2424 = vst.msk [vmem:[%s3329_s10 + $0xf6] sm:$0x1] %vm1350_vm5, %v2408_v40 }
 0x407   : > { %v2440_v8 = vpop.permute.xlu1 %2439 }
 0x408   : > { %2456 = vst.msk [vmem:[%s3329_s10 + $0xf7] sm:$0x1] %vm1350_vm5, %v2440_v8 }
 0x40b   : > { %v2634_v48 = vpop.permute.xlu1 %2633 }
 0x40c   : > { %2650 = vst.msk [vmem:[%s3329_s10 + $0xfb] sm:$0x1] %vm1350_vm5, %v2634_v48 }
 0x40d PF: > { %s13_s12 = sadd.s32 1, %s2815_s12  }
 0x40e   : > { %p10_p4 = scmp.ge.s32.totalorder %s13_s12, 4  }
 0x410   :  { %12 = sbr.rel (!%p10_p4) target bundleno = 1 (0x1), region = 62 }

</bundles_post_ra>
